<compile_context>
chip_gen: v7x
topology: tpu7x:2x2x1
jax: 0.10.0
libtpu: 0.0.40
codegen_flags: <defaults>
</compile_context>

<pallas_src>
import functools

import jax
import jax.numpy as jnp
from jax import lax
from jax.experimental import pallas as pl
from jax.experimental.pallas import tpu as pltpu

DIM = 32            # embedding dim
HEADS = 4           # num_attention_heads
HEAD_DIM = 8        # attention_head_dim  (HEADS * HEAD_DIM == DIM)
FF_INNER = 4 * DIM  # GEGLU inner width (diffusers FeedForward mult=4)
EPS = 1e-5          # nn.LayerNorm default eps
NEG_INF = -1e30

# MXU input dtype.  f32 everywhere for parity with the PyTorch reference (and v5e has
# no bf16 VPU path).  Set to jnp.bfloat16 on v6e/v7x for ~2x MXU rate -- accumulation
# stays f32 via preferred_element_type.
MXU_DTYPE = jnp.float32


# ----------------------------------------------------------------------------
# In-kernel helpers (traced inline inside the Pallas body)
# ----------------------------------------------------------------------------
def _mdot(a, b):
    return jnp.dot(a.astype(MXU_DTYPE), b.astype(MXU_DTYPE),
                   preferred_element_type=jnp.float32)


def _layer_norm(x):
    mean = jnp.mean(x, axis=-1, keepdims=True)
    var = jnp.mean(jnp.square(x - mean), axis=-1, keepdims=True)
    return (x - mean) * lax.rsqrt(var + EPS)


def _block_diag_bias(cu_ref, num_seqs, n_pad):
    """Additive attention bias: 0 where query/key share a varlen segment, -inf else.

    cu_ref: SMEM int32 ref, shape (num_seqs + 1,), cumulative sequence lengths.
    Padding tokens (index >= cu[num_seqs]) fall into their own segment, so their
    softmax rows stay finite (they are sliced off by the wrapper).
    """
    row = lax.broadcasted_iota(jnp.int32, (n_pad, 1), 0)
    col = lax.broadcasted_iota(jnp.int32, (1, n_pad), 1)
    seg_r = jnp.zeros((n_pad, 1), jnp.int32)
    seg_c = jnp.zeros((1, n_pad), jnp.int32)
    for j in range(1, num_seqs + 1):
        b = cu_ref[j]
        seg_r = seg_r + (row >= b).astype(jnp.int32)
        seg_c = seg_c + (col >= b).astype(jnp.int32)
    return jnp.where(seg_r == seg_c, 0.0, NEG_INF).astype(jnp.float32)


def _attn_block(x, mul, shift, bias, wqkv, wout, bout):
    """AdaLN-modulated fused-QKV multi-head attention + output projection.

    x:(N,D) mul/shift:(N,D) bias:(N,N) wqkv:(D,3D) wout:(D,D) bout:(1,D) -> (N,D).
    Heads use static lane slices (no (N,H,hd) reshape); the out-projection is folded
    per head:  concat_h(p_h @ v_h) @ Wout == sum_h p_h @ (v_h @ Wout[h*hd:(h+1)*hd]).
    """
    n = x.shape[0]
    y = _layer_norm(x) * mul + shift                       # AdaLN (no-affine LN)
    qkv = _mdot(y, wqkv)                                   # (N, 3D), one MXU pass
    inv_scale = 1.0 / float(HEAD_DIM) ** 0.5
    acc = jnp.zeros((n, DIM), jnp.float32)
    for h in range(HEADS):
        q = qkv[:, h * HEAD_DIM:(h + 1) * HEAD_DIM]
        k = qkv[:, DIM + h * HEAD_DIM:DIM + (h + 1) * HEAD_DIM]
        v = qkv[:, 2 * DIM + h * HEAD_DIM:2 * DIM + (h + 1) * HEAD_DIM]
        s = lax.dot_general(q, k, (((1,), (1,)), ((), ())),
                            preferred_element_type=jnp.float32)     # q @ k^T, (N, N)
        s = s * inv_scale + bias
        m = jnp.max(s, axis=-1, keepdims=True)
        p = jnp.exp(s - m)
        l = jnp.sum(p, axis=-1, keepdims=True)
        p = p * pl.reciprocal(l, approx=True)                       # EUP slot, ~free
        vo = _mdot(v, wout[h * HEAD_DIM:(h + 1) * HEAD_DIM, :])     # (N, D)
        acc = acc + _mdot(p, vo)                                    # (N,N) @ (N,D)
    return acc + bout


# ----------------------------------------------------------------------------
# Single fused EncoderLayer kernel
# ----------------------------------------------------------------------------
def _encoder_layer_kernel(num_self, num_glob,
                          cu_s_ref, cu_g_ref,
                          x_ref, cond_ref, gate_ref,
                          wqkv_s_ref, wout_s_ref, bout_s_ref,
                          wqkv_g_ref, wout_g_ref, bout_g_ref,
                          g3_ref, b3_ref, w1_ref, b1_ref, w2_ref, b2_ref,
                          o_ref):
    n_pad = x_ref.shape[0]
    x = x_ref[...].astype(jnp.float32)                     # (N, D)
    cond = cond_ref[...].astype(jnp.float32)               # (N, 4D) lane-dense slab
    mul1 = cond[:, 0 * DIM:1 * DIM]                        # 1 + scale1
    sh1 = cond[:, 1 * DIM:2 * DIM]
    mul2 = cond[:, 2 * DIM:3 * DIM]                        # 1 + scale2
    sh2 = cond[:, 3 * DIM:4 * DIM]

    # --- self-attention block (varlen via block-diagonal bias) + coarse gate ---
    bias_s = _block_diag_bias(cu_s_ref, num_self, n_pad)
    attn = _attn_block(x, mul1, sh1, bias_s,
                       wqkv_s_ref[...], wout_s_ref[...], bout_s_ref[...])
    h = (x + attn) * (1.0 + gate_ref[...].astype(jnp.float32))

    # --- global-attention block ---
    bias_g = _block_diag_bias(cu_g_ref, num_glob, n_pad)
    attn = _attn_block(h, mul2, sh2, bias_g,
                       wqkv_g_ref[...], wout_g_ref[...], bout_g_ref[...])
    h = h + attn

    # --- norm3 (affine) + GEGLU feed-forward + residual (dropout p=0) ---
    hn = _layer_norm(h) * g3_ref[...] + b3_ref[...]
    u = _mdot(hn, w1_ref[...]) + b1_ref[...]                # (N, 2*FF_INNER)
    act = u[:, :FF_INNER] * jax.nn.gelu(u[:, FF_INNER:], approximate=True)
    ff = _mdot(act, w2_ref[...]) + b2_ref[...]
    o_ref[...] = (h + ff).astype(o_ref.dtype)


# ----------------------------------------------------------------------------
# pallas_call wrapper
# ----------------------------------------------------------------------------
def _round_up(x, m):
    return (x + m - 1) // m * m


def fused_encoder_layer(cu_s, cu_g, x, cond, gate, params, *, num_self, num_glob):
    n_pad = x.shape[0]
    d3 = 3 * DIM
    kern = functools.partial(_encoder_layer_kernel, num_self, num_glob)

    # Advisory cost estimate so XLA schedules the tiny conditioning MLP around us.
    attn_flops = (2 * n_pad * DIM * d3
                  + HEADS * (2 * n_pad * n_pad * HEAD_DIM
                             + 2 * n_pad * HEAD_DIM * DIM
                             + 2 * n_pad * n_pad * DIM))
    ff_flops = 2 * n_pad * DIM * 2 * FF_INNER + 2 * n_pad * FF_INNER * DIM
    flops = 2 * attn_flops + ff_flops
    transcendentals = 2 * HEADS * n_pad * n_pad + n_pad * FF_INNER
    bytes_accessed = 4 * (n_pad * (2 * DIM + 4 * DIM + 1)
                          + 2 * (DIM * d3 + DIM * DIM + DIM) + 2 * DIM
                          + DIM * 2 * FF_INNER + 2 * FF_INNER + FF_INNER * DIM + DIM
                          + (num_self + 1) + (num_glob + 1))

    def full(shape):
        return pl.BlockSpec(shape, lambda i: (0,) * len(shape))

    return pl.pallas_call(
        kern,
        out_shape=jax.ShapeDtypeStruct((n_pad, DIM), x.dtype),
        grid=(1,),
        in_specs=[
            pl.BlockSpec(memory_space=pltpu.MemorySpace.SMEM),   # cu_seqlens (self)
            pl.BlockSpec(memory_space=pltpu.MemorySpace.SMEM),   # cu_seqlens (global)
            full((n_pad, DIM)),            # x
            full((n_pad, 4 * DIM)),        # AdaLN cond slab
            full((n_pad, 1)),              # coarse gate
            full((DIM, d3)), full((DIM, DIM)), full((1, DIM)),   # self attn weights
            full((DIM, d3)), full((DIM, DIM)), full((1, DIM)),   # global attn weights
            full((1, DIM)), full((1, DIM)),                      # norm3 gamma/beta
            full((DIM, 2 * FF_INNER)), full((1, 2 * FF_INNER)),  # GEGLU proj
            full((FF_INNER, DIM)), full((1, DIM)),               # FF out proj
        ],
        out_specs=full((n_pad, DIM)),
        compiler_params=pltpu.CompilerParams(
            dimension_semantics=("arbitrary",),
            vmem_limit_bytes=32 * 1024 * 1024),
        cost_estimate=pl.CostEstimate(flops=flops,
                                      transcendentals=transcendentals,
                                      bytes_accessed=bytes_accessed),
    )(cu_s, cu_g, x, cond, gate,
      params["self_qkv_w"], params["self_out_w"], params["self_out_b"].reshape(1, DIM),
      params["global_qkv_w"], params["global_out_w"], params["global_out_b"].reshape(1, DIM),
      params["norm3_g"].reshape(1, DIM), params["norm3_b"].reshape(1, DIM),
      params["ff_w1"], params["ff_b1"].reshape(1, 2 * FF_INNER),
      params["ff_w2"], params["ff_b2"].reshape(1, DIM))


# ----------------------------------------------------------------------------
# AdaLN conditioning MLP (tiny, per batch sample -> stays in XLA)
# ----------------------------------------------------------------------------
def adaln_scale_shift(timestep, p, prefix):
    """Timesteps(256, flip_sin_to_cos) -> TimestepEmbedding -> SiLU -> Linear(dim, 2*dim)."""
    half = 128
    exponent = -jnp.log(10000.0) * jnp.arange(half, dtype=jnp.float32) / half
    freqs = jnp.exp(exponent)
    args = timestep.astype(jnp.float32)[:, None] * freqs[None, :]
    emb = jnp.concatenate([jnp.cos(args), jnp.sin(args)], axis=-1)   # flip_sin_to_cos
    h = jax.nn.silu(emb @ p[f"{prefix}_te_w1"] + p[f"{prefix}_te_b1"])
    h = h @ p[f"{prefix}_te_w2"] + p[f"{prefix}_te_b2"]
    e = jax.nn.silu(h) @ p[f"{prefix}_ada_w"] + p[f"{prefix}_ada_b"]
    return e[:, :DIM], e[:, DIM:]                                    # (n_batch, D) each


# ----------------------------------------------------------------------------
# Full EncoderLayer forward (flat token layout in and out; no re-layout gathers)
# ----------------------------------------------------------------------------
def encoder_layer_forward(params, hidden_states, timestep, batch,
                          self_seqlens, global_seqlens, coarse_seg_pred=None):
    n = hidden_states.shape[0]
    num_self = int(self_seqlens.shape[0])
    num_glob = int(global_seqlens.shape[0])
    n_pad = _round_up(n, 8)
    pad = n_pad - n

    cu_s = jnp.concatenate([jnp.zeros((1,), jnp.int32),
                            jnp.cumsum(self_seqlens).astype(jnp.int32)])
    cu_g = jnp.concatenate([jnp.zeros((1,), jnp.int32),
                            jnp.cumsum(global_seqlens).astype(jnp.int32)])

    # Per-token AdaLN conditioning, packed into one lane-dense (n_pad, 128) slab.
    scale1, shift1 = adaln_scale_shift(timestep, params, "norm1")
    scale2, shift2 = adaln_scale_shift(timestep, params, "norm2")
    cond = jnp.concatenate([1.0 + scale1[batch], shift1[batch],
                            1.0 + scale2[batch], shift2[batch]], axis=-1)

    if coarse_seg_pred is None:
        gate = jnp.zeros((n, 1), hidden_states.dtype)
    else:
        gate = coarse_seg_pred.astype(hidden_states.dtype)[:, None]

    x = jnp.pad(hidden_states, ((0, pad), (0, 0)))
    cond = jnp.pad(cond.astype(jnp.float32), ((0, pad), (0, 0)))
    gate = jnp.pad(gate, ((0, pad), (0, 0)))

    out = fused_encoder_layer(cu_s, cu_g, x, cond, gate, params,
                              num_self=num_self, num_glob=num_glob)
    return out[:n]


# ----------------------------------------------------------------------------
# Deterministic parameter init (synthetic; weights stored as (in, out))
# ----------------------------------------------------------------------------
def init_params(key):
    ks = list(jax.random.split(key, 32))

    def w(shape, scale=0.05):
        return (scale * jax.random.normal(ks.pop(), shape)).astype(jnp.float32)

    p = {}
    for prefix in ("norm1", "norm2"):
        p[f"{prefix}_te_w1"] = w((256, DIM))
        p[f"{prefix}_te_b1"] = w((DIM,))
        p[f"{prefix}_te_w2"] = w((DIM, DIM))
        p[f"{prefix}_te_b2"] = w((DIM,))
        p[f"{prefix}_ada_w"] = w((DIM, 2 * DIM))
        p[f"{prefix}_ada_b"] = w((2 * DIM,))
    p["self_qkv_w"] = w((DIM, 3 * DIM))            # attention_bias=False -> no bias
    p["self_out_w"] = w((DIM, DIM))
    p["self_out_b"] = w((DIM,))
    p["global_qkv_w"] = w((DIM, 3 * DIM))
    p["global_out_w"] = w((DIM, DIM))
    p["global_out_b"] = w((DIM,))
    p["norm3_g"] = jnp.ones((DIM,), jnp.float32)   # nn.LayerNorm default init
    p["norm3_b"] = jnp.zeros((DIM,), jnp.float32)
    p["ff_w1"] = w((DIM, 2 * FF_INNER))            # GEGLU proj (linear | gate)
    p["ff_b1"] = w((2 * FF_INNER,))
    p["ff_w2"] = w((FF_INNER, DIM))
    p["ff_b2"] = w((DIM,))
    return p


if __name__ == "__main__":
    key = jax.random.PRNGKey(0)
    kp, kx, kc = jax.random.split(key, 3)
    params = init_params(kp)

    # two batch samples (20 + 28 tokens); self-attn partitions nested inside them
    n_points = 48
    self_seqlens = jnp.array([8, 12, 16, 12], jnp.int32)     # cu = [0,8,20,36,48]
    global_seqlens = jnp.array([20, 28], jnp.int32)           # cu = [0,20,48]
    batch = jnp.concatenate([jnp.zeros(20, jnp.int32), jnp.ones(28, jnp.int32)])
    timestep = jnp.array([3.0, 17.0], jnp.float32)

    hidden = jax.random.normal(kx, (n_points, DIM), jnp.float32)
    coarse = 0.1 * jax.random.normal(kc, (n_points,), jnp.float32)

    fwd = jax.jit(encoder_layer_forward)
    out = fwd(params, hidden, timestep, batch, self_seqlens, global_seqlens, coarse)
    out = jax.block_until_ready(out)
    assert out.shape == (n_points, DIM)
    assert bool(jnp.all(jnp.isfinite(out)))
    print("KERNEL_OK")
</pallas_src>

<mosaic_0001>
module attributes {stable_mosaic.version = 11 : i64} {
  func.func @_encoder_layer_kernel(%arg0: i32, %arg1: memref<5xi32, #tpu.memory_space<smem>>, %arg2: memref<3xi32, #tpu.memory_space<smem>>, %arg3: memref<48x32xf32, #tpu.memory_space<vmem>>, %arg4: memref<48x128xf32, #tpu.memory_space<vmem>>, %arg5: memref<48x1xf32, #tpu.memory_space<vmem>>, %arg6: memref<32x96xf32, #tpu.memory_space<vmem>>, %arg7: memref<32x32xf32, #tpu.memory_space<vmem>>, %arg8: memref<1x32xf32, #tpu.memory_space<vmem>>, %arg9: memref<32x96xf32, #tpu.memory_space<vmem>>, %arg10: memref<32x32xf32, #tpu.memory_space<vmem>>, %arg11: memref<1x32xf32, #tpu.memory_space<vmem>>, %arg12: memref<1x32xf32, #tpu.memory_space<vmem>>, %arg13: memref<1x32xf32, #tpu.memory_space<vmem>>, %arg14: memref<32x256xf32, #tpu.memory_space<vmem>>, %arg15: memref<1x256xf32, #tpu.memory_space<vmem>>, %arg16: memref<128x32xf32, #tpu.memory_space<vmem>>, %arg17: memref<1x32xf32, #tpu.memory_space<vmem>>, %arg18: memref<48x32xf32, #tpu.memory_space<vmem>>) attributes {dimension_semantics = [#tpu.dimension_semantics<arbitrary>], iteration_bounds = array<i64: 1>, scalar_prefetch = 0 : i64, scratch_operands = 0 : i64, tpu.core_type = #tpu.core_type<tc>, window_params = [{transform_indices = @transform_0, window_bounds = array<i64: 5>}, {transform_indices = @transform_1, window_bounds = array<i64: 3>}, {pipeline_mode = #tpu.pipeline_mode<synchronous>, transform_indices = @transform_2, window_bounds = array<i64: 48, 32>}, {pipeline_mode = #tpu.pipeline_mode<synchronous>, transform_indices = @transform_3, window_bounds = array<i64: 48, 128>}, {pipeline_mode = #tpu.pipeline_mode<synchronous>, transform_indices = @transform_4, window_bounds = array<i64: 48, 1>}, {pipeline_mode = #tpu.pipeline_mode<synchronous>, transform_indices = @transform_5, window_bounds = array<i64: 32, 96>}, {pipeline_mode = #tpu.pipeline_mode<synchronous>, transform_indices = @transform_6, window_bounds = array<i64: 32, 32>}, {pipeline_mode = #tpu.pipeline_mode<synchronous>, transform_indices = @transform_7, window_bounds = array<i64: 1, 32>}, {pipeline_mode = #tpu.pipeline_mode<synchronous>, transform_indices = @transform_8, window_bounds = array<i64: 32, 96>}, {pipeline_mode = #tpu.pipeline_mode<synchronous>, transform_indices = @transform_9, window_bounds = array<i64: 32, 32>}, {pipeline_mode = #tpu.pipeline_mode<synchronous>, transform_indices = @transform_10, window_bounds = array<i64: 1, 32>}, {pipeline_mode = #tpu.pipeline_mode<synchronous>, transform_indices = @transform_11, window_bounds = array<i64: 1, 32>}, {pipeline_mode = #tpu.pipeline_mode<synchronous>, transform_indices = @transform_12, window_bounds = array<i64: 1, 32>}, {pipeline_mode = #tpu.pipeline_mode<synchronous>, transform_indices = @transform_13, window_bounds = array<i64: 32, 256>}, {pipeline_mode = #tpu.pipeline_mode<synchronous>, transform_indices = @transform_14, window_bounds = array<i64: 1, 256>}, {pipeline_mode = #tpu.pipeline_mode<synchronous>, transform_indices = @transform_15, window_bounds = array<i64: 128, 32>}, {pipeline_mode = #tpu.pipeline_mode<synchronous>, transform_indices = @transform_16, window_bounds = array<i64: 1, 32>}, {pipeline_mode = #tpu.pipeline_mode<synchronous>, transform_indices = @transform_17, window_bounds = array<i64: 48, 32>}]} {
    %c0 = arith.constant 0 : index
    %c0_0 = arith.constant 0 : index
    %0 = vector.load %arg3[%c0, %c0_0] : memref<48x32xf32, #tpu.memory_space<vmem>>, vector<48x32xf32>
    %c0_1 = arith.constant 0 : index
    %c0_2 = arith.constant 0 : index
    %1 = vector.load %arg4[%c0_1, %c0_2] : memref<48x128xf32, #tpu.memory_space<vmem>>, vector<48x128xf32>
    %2 = vector.extract_strided_slice %1 {offsets = [0, 0], sizes = [48, 32], strides = [1, 1]} : vector<48x128xf32> to vector<48x32xf32>
    %3 = vector.extract_strided_slice %1 {offsets = [0, 32], sizes = [48, 32], strides = [1, 1]} : vector<48x128xf32> to vector<48x32xf32>
    %4 = vector.extract_strided_slice %1 {offsets = [0, 64], sizes = [48, 32], strides = [1, 1]} : vector<48x128xf32> to vector<48x32xf32>
    %5 = vector.extract_strided_slice %1 {offsets = [0, 96], sizes = [48, 32], strides = [1, 1]} : vector<48x128xf32> to vector<48x32xf32>
    %6 = tpu.iota {dimensions = array<i32: 0>} : vector<48x1xi32>
    %7 = tpu.iota {dimensions = array<i32: 1>} : vector<1x48xi32>
    %c0_i32 = arith.constant 0 : i32
    %8 = vector.broadcast %c0_i32 : i32 to vector<48x1xi32>
    %c0_i32_3 = arith.constant 0 : i32
    %9 = vector.broadcast %c0_i32_3 : i32 to vector<1x48xi32>
    %c1 = arith.constant 1 : index
    %10 = memref.load %arg1[%c1] : memref<5xi32, #tpu.memory_space<smem>>
    %11 = vector.broadcast %10 : i32 to vector<48x1xi32>
    %12 = arith.cmpi sge, %6, %11 : vector<48x1xi32>
    %13 = arith.extui %12 : vector<48x1xi1> to vector<48x1xi32>
    %14 = arith.addi %8, %13 : vector<48x1xi32>
    %15 = vector.broadcast %10 : i32 to vector<1x48xi32>
    %16 = arith.cmpi sge, %7, %15 : vector<1x48xi32>
    %17 = arith.extui %16 : vector<1x48xi1> to vector<1x48xi32>
    %18 = arith.addi %9, %17 : vector<1x48xi32>
    %c2 = arith.constant 2 : index
    %19 = memref.load %arg1[%c2] : memref<5xi32, #tpu.memory_space<smem>>
    %20 = vector.broadcast %19 : i32 to vector<48x1xi32>
    %21 = arith.cmpi sge, %6, %20 : vector<48x1xi32>
    %22 = arith.extui %21 : vector<48x1xi1> to vector<48x1xi32>
    %23 = arith.addi %14, %22 : vector<48x1xi32>
    %24 = vector.broadcast %19 : i32 to vector<1x48xi32>
    %25 = arith.cmpi sge, %7, %24 : vector<1x48xi32>
    %26 = arith.extui %25 : vector<1x48xi1> to vector<1x48xi32>
    %27 = arith.addi %18, %26 : vector<1x48xi32>
    %c3 = arith.constant 3 : index
    %28 = memref.load %arg1[%c3] : memref<5xi32, #tpu.memory_space<smem>>
    %29 = vector.broadcast %28 : i32 to vector<48x1xi32>
    %30 = arith.cmpi sge, %6, %29 : vector<48x1xi32>
    %31 = arith.extui %30 : vector<48x1xi1> to vector<48x1xi32>
    %32 = arith.addi %23, %31 : vector<48x1xi32>
    %33 = vector.broadcast %28 : i32 to vector<1x48xi32>
    %34 = arith.cmpi sge, %7, %33 : vector<1x48xi32>
    %35 = arith.extui %34 : vector<1x48xi1> to vector<1x48xi32>
    %36 = arith.addi %27, %35 : vector<1x48xi32>
    %c4 = arith.constant 4 : index
    %37 = memref.load %arg1[%c4] : memref<5xi32, #tpu.memory_space<smem>>
    %38 = vector.broadcast %37 : i32 to vector<48x1xi32>
    %39 = arith.cmpi sge, %6, %38 : vector<48x1xi32>
    %40 = arith.extui %39 : vector<48x1xi1> to vector<48x1xi32>
    %41 = arith.addi %32, %40 : vector<48x1xi32>
    %42 = vector.broadcast %37 : i32 to vector<1x48xi32>
    %43 = arith.cmpi sge, %7, %42 : vector<1x48xi32>
    %44 = arith.extui %43 : vector<1x48xi1> to vector<1x48xi32>
    %45 = arith.addi %36, %44 : vector<1x48xi32>
    %46 = vector.broadcast %41 : vector<48x1xi32> to vector<48x48xi32>
    %47 = vector.broadcast %45 : vector<1x48xi32> to vector<48x48xi32>
    %48 = arith.cmpi eq, %46, %47 : vector<48x48xi32>
    %cst = arith.constant 0.000000e+00 : f32
    %cst_4 = arith.constant -1.000000e+30 : f32
    %49 = vector.broadcast %cst : f32 to vector<48x48xf32>
    %50 = vector.broadcast %cst_4 : f32 to vector<48x48xf32>
    %51 = arith.select %48, %49, %50 : vector<48x48xi1>, vector<48x48xf32>
    %c0_5 = arith.constant 0 : index
    %c0_6 = arith.constant 0 : index
    %52 = vector.load %arg6[%c0_5, %c0_6] : memref<32x96xf32, #tpu.memory_space<vmem>>, vector<32x96xf32>
    %c0_7 = arith.constant 0 : index
    %c0_8 = arith.constant 0 : index
    %53 = vector.load %arg7[%c0_7, %c0_8] : memref<32x32xf32, #tpu.memory_space<vmem>>, vector<32x32xf32>
    %c0_9 = arith.constant 0 : index
    %c0_10 = arith.constant 0 : index
    %54 = vector.load %arg8[%c0_9, %c0_10] : memref<1x32xf32, #tpu.memory_space<vmem>>, vector<1x32xf32>
    %cst_11 = arith.constant dense<0.000000e+00> : vector<48xf32>
    %55 = vector.multi_reduction <add>, %0, %cst_11 [1] : vector<48x32xf32> to vector<48xf32>
    %56 = vector.shape_cast %55 : vector<48xf32> to vector<48x1xf32>
    %cst_12 = arith.constant 3.200000e+01 : f32
    %57 = vector.broadcast %cst_12 : f32 to vector<48x1xf32>
    %58 = arith.divf %56, %57 : vector<48x1xf32>
    %59 = vector.broadcast %58 : vector<48x1xf32> to vector<48x32xf32>
    %60 = arith.subf %0, %59 : vector<48x32xf32>
    %61 = arith.mulf %60, %60 : vector<48x32xf32>
    %cst_13 = arith.constant dense<0.000000e+00> : vector<48xf32>
    %62 = vector.multi_reduction <add>, %61, %cst_13 [1] : vector<48x32xf32> to vector<48xf32>
    %63 = vector.shape_cast %62 : vector<48xf32> to vector<48x1xf32>
    %cst_14 = arith.constant 3.200000e+01 : f32
    %64 = vector.broadcast %cst_14 : f32 to vector<48x1xf32>
    %65 = arith.divf %63, %64 : vector<48x1xf32>
    %66 = vector.broadcast %58 : vector<48x1xf32> to vector<48x32xf32>
    %67 = arith.subf %0, %66 : vector<48x32xf32>
    %cst_15 = arith.constant 9.99999974E-6 : f32
    %68 = vector.broadcast %cst_15 : f32 to vector<48x1xf32>
    %69 = arith.addf %65, %68 : vector<48x1xf32>
    %70 = math.rsqrt %69 : vector<48x1xf32>
    %71 = vector.broadcast %70 : vector<48x1xf32> to vector<48x32xf32>
    %72 = arith.mulf %67, %71 : vector<48x32xf32>
    %73 = arith.mulf %72, %2 : vector<48x32xf32>
    %74 = arith.addf %73, %3 : vector<48x32xf32>
    %cst_16 = arith.constant dense<0.000000e+00> : vector<48x96xf32>
    %75 = tpu.matmul %74, %52, %cst_16 {dimension_numbers = #tpu.dot_dimension_numbers<[1], [0], [0], [1], [0, 0, 1, 1], [], []>} : vector<48x32xf32>, vector<32x96xf32>, vector<48x96xf32> -> vector<48x96xf32>
    %cst_17 = arith.constant 0.000000e+00 : f32
    %76 = vector.broadcast %cst_17 : f32 to vector<48x32xf32>
    %77 = vector.extract_strided_slice %75 {offsets = [0, 0], sizes = [48, 8], strides = [1, 1]} : vector<48x96xf32> to vector<48x8xf32>
    %78 = vector.extract_strided_slice %75 {offsets = [0, 32], sizes = [48, 8], strides = [1, 1]} : vector<48x96xf32> to vector<48x8xf32>
    %79 = vector.extract_strided_slice %75 {offsets = [0, 64], sizes = [48, 8], strides = [1, 1]} : vector<48x96xf32> to vector<48x8xf32>
    %cst_18 = arith.constant dense<0.000000e+00> : vector<48x48xf32>
    %80 = tpu.matmul %77, %78, %cst_18 {dimension_numbers = #tpu.dot_dimension_numbers<[1], [1], [0], [0], [0, 0, 1, 0], [], []>} : vector<48x8xf32>, vector<48x8xf32>, vector<48x48xf32> -> vector<48x48xf32>
    %cst_19 = arith.constant 0.353553385 : f32
    %81 = vector.broadcast %cst_19 : f32 to vector<48x48xf32>
    %82 = arith.mulf %80, %81 : vector<48x48xf32>
    %83 = arith.addf %82, %51 : vector<48x48xf32>
    %cst_20 = arith.constant dense<0xFF800000> : vector<48xf32>
    %84 = vector.multi_reduction <maximumf>, %83, %cst_20 [1] : vector<48x48xf32> to vector<48xf32>
    %85 = vector.shape_cast %84 : vector<48xf32> to vector<48x1xf32>
    %86 = vector.broadcast %85 : vector<48x1xf32> to vector<48x48xf32>
    %87 = arith.subf %83, %86 : vector<48x48xf32>
    %88 = math.exp %87 : vector<48x48xf32>
    %cst_21 = arith.constant dense<0.000000e+00> : vector<48xf32>
    %89 = vector.multi_reduction <add>, %88, %cst_21 [1] : vector<48x48xf32> to vector<48xf32>
    %90 = vector.shape_cast %89 : vector<48xf32> to vector<48x1xf32>
    %91 = tpu.reciprocal %90 {approx = true} : vector<48x1xf32> -> vector<48x1xf32>
    %92 = vector.broadcast %91 : vector<48x1xf32> to vector<48x48xf32>
    %93 = arith.mulf %88, %92 : vector<48x48xf32>
    %94 = vector.extract_strided_slice %53 {offsets = [0, 0], sizes = [8, 32], strides = [1, 1]} : vector<32x32xf32> to vector<8x32xf32>
    %cst_22 = arith.constant dense<0.000000e+00> : vector<48x32xf32>
    %95 = tpu.matmul %79, %94, %cst_22 {dimension_numbers = #tpu.dot_dimension_numbers<[1], [0], [0], [1], [0, 0, 1, 1], [], []>} : vector<48x8xf32>, vector<8x32xf32>, vector<48x32xf32> -> vector<48x32xf32>
    %cst_23 = arith.constant dense<0.000000e+00> : vector<48x32xf32>
    %96 = tpu.matmul %93, %95, %cst_23 {dimension_numbers = #tpu.dot_dimension_numbers<[1], [0], [0], [1], [0, 0, 1, 1], [], []>} : vector<48x48xf32>, vector<48x32xf32>, vector<48x32xf32> -> vector<48x32xf32>
    %97 = arith.addf %76, %96 : vector<48x32xf32>
    %98 = vector.extract_strided_slice %75 {offsets = [0, 8], sizes = [48, 8], strides = [1, 1]} : vector<48x96xf32> to vector<48x8xf32>
    %99 = vector.extract_strided_slice %75 {offsets = [0, 40], sizes = [48, 8], strides = [1, 1]} : vector<48x96xf32> to vector<48x8xf32>
    %100 = vector.extract_strided_slice %75 {offsets = [0, 72], sizes = [48, 8], strides = [1, 1]} : vector<48x96xf32> to vector<48x8xf32>
    %cst_24 = arith.constant dense<0.000000e+00> : vector<48x48xf32>
    %101 = tpu.matmul %98, %99, %cst_24 {dimension_numbers = #tpu.dot_dimension_numbers<[1], [1], [0], [0], [0, 0, 1, 0], [], []>} : vector<48x8xf32>, vector<48x8xf32>, vector<48x48xf32> -> vector<48x48xf32>
    %cst_25 = arith.constant 0.353553385 : f32
    %102 = vector.broadcast %cst_25 : f32 to vector<48x48xf32>
    %103 = arith.mulf %101, %102 : vector<48x48xf32>
    %104 = arith.addf %103, %51 : vector<48x48xf32>
    %cst_26 = arith.constant dense<0xFF800000> : vector<48xf32>
    %105 = vector.multi_reduction <maximumf>, %104, %cst_26 [1] : vector<48x48xf32> to vector<48xf32>
    %106 = vector.shape_cast %105 : vector<48xf32> to vector<48x1xf32>
    %107 = vector.broadcast %106 : vector<48x1xf32> to vector<48x48xf32>
    %108 = arith.subf %104, %107 : vector<48x48xf32>
    %109 = math.exp %108 : vector<48x48xf32>
    %cst_27 = arith.constant dense<0.000000e+00> : vector<48xf32>
    %110 = vector.multi_reduction <add>, %109, %cst_27 [1] : vector<48x48xf32> to vector<48xf32>
    %111 = vector.shape_cast %110 : vector<48xf32> to vector<48x1xf32>
    %112 = tpu.reciprocal %111 {approx = true} : vector<48x1xf32> -> vector<48x1xf32>
    %113 = vector.broadcast %112 : vector<48x1xf32> to vector<48x48xf32>
    %114 = arith.mulf %109, %113 : vector<48x48xf32>
    %115 = vector.extract_strided_slice %53 {offsets = [8, 0], sizes = [8, 32], strides = [1, 1]} : vector<32x32xf32> to vector<8x32xf32>
    %cst_28 = arith.constant dense<0.000000e+00> : vector<48x32xf32>
    %116 = tpu.matmul %100, %115, %cst_28 {dimension_numbers = #tpu.dot_dimension_numbers<[1], [0], [0], [1], [0, 0, 1, 1], [], []>} : vector<48x8xf32>, vector<8x32xf32>, vector<48x32xf32> -> vector<48x32xf32>
    %cst_29 = arith.constant dense<0.000000e+00> : vector<48x32xf32>
    %117 = tpu.matmul %114, %116, %cst_29 {dimension_numbers = #tpu.dot_dimension_numbers<[1], [0], [0], [1], [0, 0, 1, 1], [], []>} : vector<48x48xf32>, vector<48x32xf32>, vector<48x32xf32> -> vector<48x32xf32>
    %118 = arith.addf %97, %117 : vector<48x32xf32>
    %119 = vector.extract_strided_slice %75 {offsets = [0, 16], sizes = [48, 8], strides = [1, 1]} : vector<48x96xf32> to vector<48x8xf32>
    %120 = vector.extract_strided_slice %75 {offsets = [0, 48], sizes = [48, 8], strides = [1, 1]} : vector<48x96xf32> to vector<48x8xf32>
    %121 = vector.extract_strided_slice %75 {offsets = [0, 80], sizes = [48, 8], strides = [1, 1]} : vector<48x96xf32> to vector<48x8xf32>
    %cst_30 = arith.constant dense<0.000000e+00> : vector<48x48xf32>
    %122 = tpu.matmul %119, %120, %cst_30 {dimension_numbers = #tpu.dot_dimension_numbers<[1], [1], [0], [0], [0, 0, 1, 0], [], []>} : vector<48x8xf32>, vector<48x8xf32>, vector<48x48xf32> -> vector<48x48xf32>
    %cst_31 = arith.constant 0.353553385 : f32
    %123 = vector.broadcast %cst_31 : f32 to vector<48x48xf32>
    %124 = arith.mulf %122, %123 : vector<48x48xf32>
    %125 = arith.addf %124, %51 : vector<48x48xf32>
    %cst_32 = arith.constant dense<0xFF800000> : vector<48xf32>
    %126 = vector.multi_reduction <maximumf>, %125, %cst_32 [1] : vector<48x48xf32> to vector<48xf32>
    %127 = vector.shape_cast %126 : vector<48xf32> to vector<48x1xf32>
    %128 = vector.broadcast %127 : vector<48x1xf32> to vector<48x48xf32>
    %129 = arith.subf %125, %128 : vector<48x48xf32>
    %130 = math.exp %129 : vector<48x48xf32>
    %cst_33 = arith.constant dense<0.000000e+00> : vector<48xf32>
    %131 = vector.multi_reduction <add>, %130, %cst_33 [1] : vector<48x48xf32> to vector<48xf32>
    %132 = vector.shape_cast %131 : vector<48xf32> to vector<48x1xf32>
    %133 = tpu.reciprocal %132 {approx = true} : vector<48x1xf32> -> vector<48x1xf32>
    %134 = vector.broadcast %133 : vector<48x1xf32> to vector<48x48xf32>
    %135 = arith.mulf %130, %134 : vector<48x48xf32>
    %136 = vector.extract_strided_slice %53 {offsets = [16, 0], sizes = [8, 32], strides = [1, 1]} : vector<32x32xf32> to vector<8x32xf32>
    %cst_34 = arith.constant dense<0.000000e+00> : vector<48x32xf32>
    %137 = tpu.matmul %121, %136, %cst_34 {dimension_numbers = #tpu.dot_dimension_numbers<[1], [0], [0], [1], [0, 0, 1, 1], [], []>} : vector<48x8xf32>, vector<8x32xf32>, vector<48x32xf32> -> vector<48x32xf32>
    %cst_35 = arith.constant dense<0.000000e+00> : vector<48x32xf32>
    %138 = tpu.matmul %135, %137, %cst_35 {dimension_numbers = #tpu.dot_dimension_numbers<[1], [0], [0], [1], [0, 0, 1, 1], [], []>} : vector<48x48xf32>, vector<48x32xf32>, vector<48x32xf32> -> vector<48x32xf32>
    %139 = arith.addf %118, %138 : vector<48x32xf32>
    %140 = vector.extract_strided_slice %75 {offsets = [0, 24], sizes = [48, 8], strides = [1, 1]} : vector<48x96xf32> to vector<48x8xf32>
    %141 = vector.extract_strided_slice %75 {offsets = [0, 56], sizes = [48, 8], strides = [1, 1]} : vector<48x96xf32> to vector<48x8xf32>
    %142 = vector.extract_strided_slice %75 {offsets = [0, 88], sizes = [48, 8], strides = [1, 1]} : vector<48x96xf32> to vector<48x8xf32>
    %cst_36 = arith.constant dense<0.000000e+00> : vector<48x48xf32>
    %143 = tpu.matmul %140, %141, %cst_36 {dimension_numbers = #tpu.dot_dimension_numbers<[1], [1], [0], [0], [0, 0, 1, 0], [], []>} : vector<48x8xf32>, vector<48x8xf32>, vector<48x48xf32> -> vector<48x48xf32>
    %cst_37 = arith.constant 0.353553385 : f32
    %144 = vector.broadcast %cst_37 : f32 to vector<48x48xf32>
    %145 = arith.mulf %143, %144 : vector<48x48xf32>
    %146 = arith.addf %145, %51 : vector<48x48xf32>
    %cst_38 = arith.constant dense<0xFF800000> : vector<48xf32>
    %147 = vector.multi_reduction <maximumf>, %146, %cst_38 [1] : vector<48x48xf32> to vector<48xf32>
    %148 = vector.shape_cast %147 : vector<48xf32> to vector<48x1xf32>
    %149 = vector.broadcast %148 : vector<48x1xf32> to vector<48x48xf32>
    %150 = arith.subf %146, %149 : vector<48x48xf32>
    %151 = math.exp %150 : vector<48x48xf32>
    %cst_39 = arith.constant dense<0.000000e+00> : vector<48xf32>
    %152 = vector.multi_reduction <add>, %151, %cst_39 [1] : vector<48x48xf32> to vector<48xf32>
    %153 = vector.shape_cast %152 : vector<48xf32> to vector<48x1xf32>
    %154 = tpu.reciprocal %153 {approx = true} : vector<48x1xf32> -> vector<48x1xf32>
    %155 = vector.broadcast %154 : vector<48x1xf32> to vector<48x48xf32>
    %156 = arith.mulf %151, %155 : vector<48x48xf32>
    %157 = vector.extract_strided_slice %53 {offsets = [24, 0], sizes = [8, 32], strides = [1, 1]} : vector<32x32xf32> to vector<8x32xf32>
    %cst_40 = arith.constant dense<0.000000e+00> : vector<48x32xf32>
    %158 = tpu.matmul %142, %157, %cst_40 {dimension_numbers = #tpu.dot_dimension_numbers<[1], [0], [0], [1], [0, 0, 1, 1], [], []>} : vector<48x8xf32>, vector<8x32xf32>, vector<48x32xf32> -> vector<48x32xf32>
    %cst_41 = arith.constant dense<0.000000e+00> : vector<48x32xf32>
    %159 = tpu.matmul %156, %158, %cst_41 {dimension_numbers = #tpu.dot_dimension_numbers<[1], [0], [0], [1], [0, 0, 1, 1], [], []>} : vector<48x48xf32>, vector<48x32xf32>, vector<48x32xf32> -> vector<48x32xf32>
    %160 = arith.addf %139, %159 : vector<48x32xf32>
    %161 = vector.broadcast %54 : vector<1x32xf32> to vector<48x32xf32>
    %162 = arith.addf %160, %161 : vector<48x32xf32>
    %163 = arith.addf %0, %162 : vector<48x32xf32>
    %c0_42 = arith.constant 0 : index
    %c0_43 = arith.constant 0 : index
    %164 = vector.load %arg5[%c0_42, %c0_43] : memref<48x1xf32, #tpu.memory_space<vmem>>, vector<48x1xf32>
    %cst_44 = arith.constant 1.000000e+00 : f32
    %165 = vector.broadcast %cst_44 : f32 to vector<48x1xf32>
    %166 = arith.addf %165, %164 : vector<48x1xf32>
    %167 = vector.broadcast %166 : vector<48x1xf32> to vector<48x32xf32>
    %168 = arith.mulf %163, %167 : vector<48x32xf32>
    %169 = tpu.iota {dimensions = array<i32: 0>} : vector<48x1xi32>
    %170 = tpu.iota {dimensions = array<i32: 1>} : vector<1x48xi32>
    %c0_i32_45 = arith.constant 0 : i32
    %171 = vector.broadcast %c0_i32_45 : i32 to vector<48x1xi32>
    %c0_i32_46 = arith.constant 0 : i32
    %172 = vector.broadcast %c0_i32_46 : i32 to vector<1x48xi32>
    %c1_47 = arith.constant 1 : index
    %173 = memref.load %arg2[%c1_47] : memref<3xi32, #tpu.memory_space<smem>>
    %174 = vector.broadcast %173 : i32 to vector<48x1xi32>
    %175 = arith.cmpi sge, %169, %174 : vector<48x1xi32>
    %176 = arith.extui %175 : vector<48x1xi1> to vector<48x1xi32>
    %177 = arith.addi %171, %176 : vector<48x1xi32>
    %178 = vector.broadcast %173 : i32 to vector<1x48xi32>
    %179 = arith.cmpi sge, %170, %178 : vector<1x48xi32>
    %180 = arith.extui %179 : vector<1x48xi1> to vector<1x48xi32>
    %181 = arith.addi %172, %180 : vector<1x48xi32>
    %c2_48 = arith.constant 2 : index
    %182 = memref.load %arg2[%c2_48] : memref<3xi32, #tpu.memory_space<smem>>
    %183 = vector.broadcast %182 : i32 to vector<48x1xi32>
    %184 = arith.cmpi sge, %169, %183 : vector<48x1xi32>
    %185 = arith.extui %184 : vector<48x1xi1> to vector<48x1xi32>
    %186 = arith.addi %177, %185 : vector<48x1xi32>
    %187 = vector.broadcast %182 : i32 to vector<1x48xi32>
    %188 = arith.cmpi sge, %170, %187 : vector<1x48xi32>
    %189 = arith.extui %188 : vector<1x48xi1> to vector<1x48xi32>
    %190 = arith.addi %181, %189 : vector<1x48xi32>
    %191 = vector.broadcast %186 : vector<48x1xi32> to vector<48x48xi32>
    %192 = vector.broadcast %190 : vector<1x48xi32> to vector<48x48xi32>
    %193 = arith.cmpi eq, %191, %192 : vector<48x48xi32>
    %cst_49 = arith.constant 0.000000e+00 : f32
    %cst_50 = arith.constant -1.000000e+30 : f32
    %194 = vector.broadcast %cst_49 : f32 to vector<48x48xf32>
    %195 = vector.broadcast %cst_50 : f32 to vector<48x48xf32>
    %196 = arith.select %193, %194, %195 : vector<48x48xi1>, vector<48x48xf32>
    %c0_51 = arith.constant 0 : index
    %c0_52 = arith.constant 0 : index
    %197 = vector.load %arg9[%c0_51, %c0_52] : memref<32x96xf32, #tpu.memory_space<vmem>>, vector<32x96xf32>
    %c0_53 = arith.constant 0 : index
    %c0_54 = arith.constant 0 : index
    %198 = vector.load %arg10[%c0_53, %c0_54] : memref<32x32xf32, #tpu.memory_space<vmem>>, vector<32x32xf32>
    %c0_55 = arith.constant 0 : index
    %c0_56 = arith.constant 0 : index
    %199 = vector.load %arg11[%c0_55, %c0_56] : memref<1x32xf32, #tpu.memory_space<vmem>>, vector<1x32xf32>
    %cst_57 = arith.constant dense<0.000000e+00> : vector<48xf32>
    %200 = vector.multi_reduction <add>, %168, %cst_57 [1] : vector<48x32xf32> to vector<48xf32>
    %201 = vector.shape_cast %200 : vector<48xf32> to vector<48x1xf32>
    %cst_58 = arith.constant 3.200000e+01 : f32
    %202 = vector.broadcast %cst_58 : f32 to vector<48x1xf32>
    %203 = arith.divf %201, %202 : vector<48x1xf32>
    %204 = vector.broadcast %203 : vector<48x1xf32> to vector<48x32xf32>
    %205 = arith.subf %168, %204 : vector<48x32xf32>
    %206 = arith.mulf %205, %205 : vector<48x32xf32>
    %cst_59 = arith.constant dense<0.000000e+00> : vector<48xf32>
    %207 = vector.multi_reduction <add>, %206, %cst_59 [1] : vector<48x32xf32> to vector<48xf32>
    %208 = vector.shape_cast %207 : vector<48xf32> to vector<48x1xf32>
    %cst_60 = arith.constant 3.200000e+01 : f32
    %209 = vector.broadcast %cst_60 : f32 to vector<48x1xf32>
    %210 = arith.divf %208, %209 : vector<48x1xf32>
    %211 = vector.broadcast %203 : vector<48x1xf32> to vector<48x32xf32>
    %212 = arith.subf %168, %211 : vector<48x32xf32>
    %cst_61 = arith.constant 9.99999974E-6 : f32
    %213 = vector.broadcast %cst_61 : f32 to vector<48x1xf32>
    %214 = arith.addf %210, %213 : vector<48x1xf32>
    %215 = math.rsqrt %214 : vector<48x1xf32>
    %216 = vector.broadcast %215 : vector<48x1xf32> to vector<48x32xf32>
    %217 = arith.mulf %212, %216 : vector<48x32xf32>
    %218 = arith.mulf %217, %4 : vector<48x32xf32>
    %219 = arith.addf %218, %5 : vector<48x32xf32>
    %cst_62 = arith.constant dense<0.000000e+00> : vector<48x96xf32>
    %220 = tpu.matmul %219, %197, %cst_62 {dimension_numbers = #tpu.dot_dimension_numbers<[1], [0], [0], [1], [0, 0, 1, 1], [], []>} : vector<48x32xf32>, vector<32x96xf32>, vector<48x96xf32> -> vector<48x96xf32>
    %cst_63 = arith.constant 0.000000e+00 : f32
    %221 = vector.broadcast %cst_63 : f32 to vector<48x32xf32>
    %222 = vector.extract_strided_slice %220 {offsets = [0, 0], sizes = [48, 8], strides = [1, 1]} : vector<48x96xf32> to vector<48x8xf32>
    %223 = vector.extract_strided_slice %220 {offsets = [0, 32], sizes = [48, 8], strides = [1, 1]} : vector<48x96xf32> to vector<48x8xf32>
    %224 = vector.extract_strided_slice %220 {offsets = [0, 64], sizes = [48, 8], strides = [1, 1]} : vector<48x96xf32> to vector<48x8xf32>
    %cst_64 = arith.constant dense<0.000000e+00> : vector<48x48xf32>
    %225 = tpu.matmul %222, %223, %cst_64 {dimension_numbers = #tpu.dot_dimension_numbers<[1], [1], [0], [0], [0, 0, 1, 0], [], []>} : vector<48x8xf32>, vector<48x8xf32>, vector<48x48xf32> -> vector<48x48xf32>
    %cst_65 = arith.constant 0.353553385 : f32
    %226 = vector.broadcast %cst_65 : f32 to vector<48x48xf32>
    %227 = arith.mulf %225, %226 : vector<48x48xf32>
    %228 = arith.addf %227, %196 : vector<48x48xf32>
    %cst_66 = arith.constant dense<0xFF800000> : vector<48xf32>
    %229 = vector.multi_reduction <maximumf>, %228, %cst_66 [1] : vector<48x48xf32> to vector<48xf32>
    %230 = vector.shape_cast %229 : vector<48xf32> to vector<48x1xf32>
    %231 = vector.broadcast %230 : vector<48x1xf32> to vector<48x48xf32>
    %232 = arith.subf %228, %231 : vector<48x48xf32>
    %233 = math.exp %232 : vector<48x48xf32>
    %cst_67 = arith.constant dense<0.000000e+00> : vector<48xf32>
    %234 = vector.multi_reduction <add>, %233, %cst_67 [1] : vector<48x48xf32> to vector<48xf32>
    %235 = vector.shape_cast %234 : vector<48xf32> to vector<48x1xf32>
    %236 = tpu.reciprocal %235 {approx = true} : vector<48x1xf32> -> vector<48x1xf32>
    %237 = vector.broadcast %236 : vector<48x1xf32> to vector<48x48xf32>
    %238 = arith.mulf %233, %237 : vector<48x48xf32>
    %239 = vector.extract_strided_slice %198 {offsets = [0, 0], sizes = [8, 32], strides = [1, 1]} : vector<32x32xf32> to vector<8x32xf32>
    %cst_68 = arith.constant dense<0.000000e+00> : vector<48x32xf32>
    %240 = tpu.matmul %224, %239, %cst_68 {dimension_numbers = #tpu.dot_dimension_numbers<[1], [0], [0], [1], [0, 0, 1, 1], [], []>} : vector<48x8xf32>, vector<8x32xf32>, vector<48x32xf32> -> vector<48x32xf32>
    %cst_69 = arith.constant dense<0.000000e+00> : vector<48x32xf32>
    %241 = tpu.matmul %238, %240, %cst_69 {dimension_numbers = #tpu.dot_dimension_numbers<[1], [0], [0], [1], [0, 0, 1, 1], [], []>} : vector<48x48xf32>, vector<48x32xf32>, vector<48x32xf32> -> vector<48x32xf32>
    %242 = arith.addf %221, %241 : vector<48x32xf32>
    %243 = vector.extract_strided_slice %220 {offsets = [0, 8], sizes = [48, 8], strides = [1, 1]} : vector<48x96xf32> to vector<48x8xf32>
    %244 = vector.extract_strided_slice %220 {offsets = [0, 40], sizes = [48, 8], strides = [1, 1]} : vector<48x96xf32> to vector<48x8xf32>
    %245 = vector.extract_strided_slice %220 {offsets = [0, 72], sizes = [48, 8], strides = [1, 1]} : vector<48x96xf32> to vector<48x8xf32>
    %cst_70 = arith.constant dense<0.000000e+00> : vector<48x48xf32>
    %246 = tpu.matmul %243, %244, %cst_70 {dimension_numbers = #tpu.dot_dimension_numbers<[1], [1], [0], [0], [0, 0, 1, 0], [], []>} : vector<48x8xf32>, vector<48x8xf32>, vector<48x48xf32> -> vector<48x48xf32>
    %cst_71 = arith.constant 0.353553385 : f32
    %247 = vector.broadcast %cst_71 : f32 to vector<48x48xf32>
    %248 = arith.mulf %246, %247 : vector<48x48xf32>
    %249 = arith.addf %248, %196 : vector<48x48xf32>
    %cst_72 = arith.constant dense<0xFF800000> : vector<48xf32>
    %250 = vector.multi_reduction <maximumf>, %249, %cst_72 [1] : vector<48x48xf32> to vector<48xf32>
    %251 = vector.shape_cast %250 : vector<48xf32> to vector<48x1xf32>
    %252 = vector.broadcast %251 : vector<48x1xf32> to vector<48x48xf32>
    %253 = arith.subf %249, %252 : vector<48x48xf32>
    %254 = math.exp %253 : vector<48x48xf32>
    %cst_73 = arith.constant dense<0.000000e+00> : vector<48xf32>
    %255 = vector.multi_reduction <add>, %254, %cst_73 [1] : vector<48x48xf32> to vector<48xf32>
    %256 = vector.shape_cast %255 : vector<48xf32> to vector<48x1xf32>
    %257 = tpu.reciprocal %256 {approx = true} : vector<48x1xf32> -> vector<48x1xf32>
    %258 = vector.broadcast %257 : vector<48x1xf32> to vector<48x48xf32>
    %259 = arith.mulf %254, %258 : vector<48x48xf32>
    %260 = vector.extract_strided_slice %198 {offsets = [8, 0], sizes = [8, 32], strides = [1, 1]} : vector<32x32xf32> to vector<8x32xf32>
    %cst_74 = arith.constant dense<0.000000e+00> : vector<48x32xf32>
    %261 = tpu.matmul %245, %260, %cst_74 {dimension_numbers = #tpu.dot_dimension_numbers<[1], [0], [0], [1], [0, 0, 1, 1], [], []>} : vector<48x8xf32>, vector<8x32xf32>, vector<48x32xf32> -> vector<48x32xf32>
    %cst_75 = arith.constant dense<0.000000e+00> : vector<48x32xf32>
    %262 = tpu.matmul %259, %261, %cst_75 {dimension_numbers = #tpu.dot_dimension_numbers<[1], [0], [0], [1], [0, 0, 1, 1], [], []>} : vector<48x48xf32>, vector<48x32xf32>, vector<48x32xf32> -> vector<48x32xf32>
    %263 = arith.addf %242, %262 : vector<48x32xf32>
    %264 = vector.extract_strided_slice %220 {offsets = [0, 16], sizes = [48, 8], strides = [1, 1]} : vector<48x96xf32> to vector<48x8xf32>
    %265 = vector.extract_strided_slice %220 {offsets = [0, 48], sizes = [48, 8], strides = [1, 1]} : vector<48x96xf32> to vector<48x8xf32>
    %266 = vector.extract_strided_slice %220 {offsets = [0, 80], sizes = [48, 8], strides = [1, 1]} : vector<48x96xf32> to vector<48x8xf32>
    %cst_76 = arith.constant dense<0.000000e+00> : vector<48x48xf32>
    %267 = tpu.matmul %264, %265, %cst_76 {dimension_numbers = #tpu.dot_dimension_numbers<[1], [1], [0], [0], [0, 0, 1, 0], [], []>} : vector<48x8xf32>, vector<48x8xf32>, vector<48x48xf32> -> vector<48x48xf32>
    %cst_77 = arith.constant 0.353553385 : f32
    %268 = vector.broadcast %cst_77 : f32 to vector<48x48xf32>
    %269 = arith.mulf %267, %268 : vector<48x48xf32>
    %270 = arith.addf %269, %196 : vector<48x48xf32>
    %cst_78 = arith.constant dense<0xFF800000> : vector<48xf32>
    %271 = vector.multi_reduction <maximumf>, %270, %cst_78 [1] : vector<48x48xf32> to vector<48xf32>
    %272 = vector.shape_cast %271 : vector<48xf32> to vector<48x1xf32>
    %273 = vector.broadcast %272 : vector<48x1xf32> to vector<48x48xf32>
    %274 = arith.subf %270, %273 : vector<48x48xf32>
    %275 = math.exp %274 : vector<48x48xf32>
    %cst_79 = arith.constant dense<0.000000e+00> : vector<48xf32>
    %276 = vector.multi_reduction <add>, %275, %cst_79 [1] : vector<48x48xf32> to vector<48xf32>
    %277 = vector.shape_cast %276 : vector<48xf32> to vector<48x1xf32>
    %278 = tpu.reciprocal %277 {approx = true} : vector<48x1xf32> -> vector<48x1xf32>
    %279 = vector.broadcast %278 : vector<48x1xf32> to vector<48x48xf32>
    %280 = arith.mulf %275, %279 : vector<48x48xf32>
    %281 = vector.extract_strided_slice %198 {offsets = [16, 0], sizes = [8, 32], strides = [1, 1]} : vector<32x32xf32> to vector<8x32xf32>
    %cst_80 = arith.constant dense<0.000000e+00> : vector<48x32xf32>
    %282 = tpu.matmul %266, %281, %cst_80 {dimension_numbers = #tpu.dot_dimension_numbers<[1], [0], [0], [1], [0, 0, 1, 1], [], []>} : vector<48x8xf32>, vector<8x32xf32>, vector<48x32xf32> -> vector<48x32xf32>
    %cst_81 = arith.constant dense<0.000000e+00> : vector<48x32xf32>
    %283 = tpu.matmul %280, %282, %cst_81 {dimension_numbers = #tpu.dot_dimension_numbers<[1], [0], [0], [1], [0, 0, 1, 1], [], []>} : vector<48x48xf32>, vector<48x32xf32>, vector<48x32xf32> -> vector<48x32xf32>
    %284 = arith.addf %263, %283 : vector<48x32xf32>
    %285 = vector.extract_strided_slice %220 {offsets = [0, 24], sizes = [48, 8], strides = [1, 1]} : vector<48x96xf32> to vector<48x8xf32>
    %286 = vector.extract_strided_slice %220 {offsets = [0, 56], sizes = [48, 8], strides = [1, 1]} : vector<48x96xf32> to vector<48x8xf32>
    %287 = vector.extract_strided_slice %220 {offsets = [0, 88], sizes = [48, 8], strides = [1, 1]} : vector<48x96xf32> to vector<48x8xf32>
    %cst_82 = arith.constant dense<0.000000e+00> : vector<48x48xf32>
    %288 = tpu.matmul %285, %286, %cst_82 {dimension_numbers = #tpu.dot_dimension_numbers<[1], [1], [0], [0], [0, 0, 1, 0], [], []>} : vector<48x8xf32>, vector<48x8xf32>, vector<48x48xf32> -> vector<48x48xf32>
    %cst_83 = arith.constant 0.353553385 : f32
    %289 = vector.broadcast %cst_83 : f32 to vector<48x48xf32>
    %290 = arith.mulf %288, %289 : vector<48x48xf32>
    %291 = arith.addf %290, %196 : vector<48x48xf32>
    %cst_84 = arith.constant dense<0xFF800000> : vector<48xf32>
    %292 = vector.multi_reduction <maximumf>, %291, %cst_84 [1] : vector<48x48xf32> to vector<48xf32>
    %293 = vector.shape_cast %292 : vector<48xf32> to vector<48x1xf32>
    %294 = vector.broadcast %293 : vector<48x1xf32> to vector<48x48xf32>
    %295 = arith.subf %291, %294 : vector<48x48xf32>
    %296 = math.exp %295 : vector<48x48xf32>
    %cst_85 = arith.constant dense<0.000000e+00> : vector<48xf32>
    %297 = vector.multi_reduction <add>, %296, %cst_85 [1] : vector<48x48xf32> to vector<48xf32>
    %298 = vector.shape_cast %297 : vector<48xf32> to vector<48x1xf32>
    %299 = tpu.reciprocal %298 {approx = true} : vector<48x1xf32> -> vector<48x1xf32>
    %300 = vector.broadcast %299 : vector<48x1xf32> to vector<48x48xf32>
    %301 = arith.mulf %296, %300 : vector<48x48xf32>
    %302 = vector.extract_strided_slice %198 {offsets = [24, 0], sizes = [8, 32], strides = [1, 1]} : vector<32x32xf32> to vector<8x32xf32>
    %cst_86 = arith.constant dense<0.000000e+00> : vector<48x32xf32>
    %303 = tpu.matmul %287, %302, %cst_86 {dimension_numbers = #tpu.dot_dimension_numbers<[1], [0], [0], [1], [0, 0, 1, 1], [], []>} : vector<48x8xf32>, vector<8x32xf32>, vector<48x32xf32> -> vector<48x32xf32>
    %cst_87 = arith.constant dense<0.000000e+00> : vector<48x32xf32>
    %304 = tpu.matmul %301, %303, %cst_87 {dimension_numbers = #tpu.dot_dimension_numbers<[1], [0], [0], [1], [0, 0, 1, 1], [], []>} : vector<48x48xf32>, vector<48x32xf32>, vector<48x32xf32> -> vector<48x32xf32>
    %305 = arith.addf %284, %304 : vector<48x32xf32>
    %306 = vector.broadcast %199 : vector<1x32xf32> to vector<48x32xf32>
    %307 = arith.addf %305, %306 : vector<48x32xf32>
    %308 = arith.addf %168, %307 : vector<48x32xf32>
    %cst_88 = arith.constant dense<0.000000e+00> : vector<48xf32>
    %309 = vector.multi_reduction <add>, %308, %cst_88 [1] : vector<48x32xf32> to vector<48xf32>
    %310 = vector.shape_cast %309 : vector<48xf32> to vector<48x1xf32>
    %cst_89 = arith.constant 3.200000e+01 : f32
    %311 = vector.broadcast %cst_89 : f32 to vector<48x1xf32>
    %312 = arith.divf %310, %311 : vector<48x1xf32>
    %313 = vector.broadcast %312 : vector<48x1xf32> to vector<48x32xf32>
    %314 = arith.subf %308, %313 : vector<48x32xf32>
    %315 = arith.mulf %314, %314 : vector<48x32xf32>
    %cst_90 = arith.constant dense<0.000000e+00> : vector<48xf32>
    %316 = vector.multi_reduction <add>, %315, %cst_90 [1] : vector<48x32xf32> to vector<48xf32>
    %317 = vector.shape_cast %316 : vector<48xf32> to vector<48x1xf32>
    %cst_91 = arith.constant 3.200000e+01 : f32
    %318 = vector.broadcast %cst_91 : f32 to vector<48x1xf32>
    %319 = arith.divf %317, %318 : vector<48x1xf32>
    %320 = vector.broadcast %312 : vector<48x1xf32> to vector<48x32xf32>
    %321 = arith.subf %308, %320 : vector<48x32xf32>
    %cst_92 = arith.constant 9.99999974E-6 : f32
    %322 = vector.broadcast %cst_92 : f32 to vector<48x1xf32>
    %323 = arith.addf %319, %322 : vector<48x1xf32>
    %324 = math.rsqrt %323 : vector<48x1xf32>
    %325 = vector.broadcast %324 : vector<48x1xf32> to vector<48x32xf32>
    %326 = arith.mulf %321, %325 : vector<48x32xf32>
    %c0_93 = arith.constant 0 : index
    %c0_94 = arith.constant 0 : index
    %327 = vector.load %arg12[%c0_93, %c0_94] : memref<1x32xf32, #tpu.memory_space<vmem>>, vector<1x32xf32>
    %328 = vector.broadcast %327 : vector<1x32xf32> to vector<48x32xf32>
    %329 = arith.mulf %326, %328 : vector<48x32xf32>
    %c0_95 = arith.constant 0 : index
    %c0_96 = arith.constant 0 : index
    %330 = vector.load %arg13[%c0_95, %c0_96] : memref<1x32xf32, #tpu.memory_space<vmem>>, vector<1x32xf32>
    %331 = vector.broadcast %330 : vector<1x32xf32> to vector<48x32xf32>
    %332 = arith.addf %329, %331 : vector<48x32xf32>
    %c0_97 = arith.constant 0 : index
    %c0_98 = arith.constant 0 : index
    %333 = vector.load %arg14[%c0_97, %c0_98] : memref<32x256xf32, #tpu.memory_space<vmem>>, vector<32x256xf32>
    %cst_99 = arith.constant dense<0.000000e+00> : vector<48x256xf32>
    %334 = tpu.matmul %332, %333, %cst_99 {dimension_numbers = #tpu.dot_dimension_numbers<[1], [0], [0], [1], [0, 0, 1, 1], [], []>} : vector<48x32xf32>, vector<32x256xf32>, vector<48x256xf32> -> vector<48x256xf32>
    %c0_100 = arith.constant 0 : index
    %c0_101 = arith.constant 0 : index
    %335 = vector.load %arg15[%c0_100, %c0_101] : memref<1x256xf32, #tpu.memory_space<vmem>>, vector<1x256xf32>
    %336 = vector.broadcast %335 : vector<1x256xf32> to vector<48x256xf32>
    %337 = arith.addf %334, %336 : vector<48x256xf32>
    %338 = vector.extract_strided_slice %337 {offsets = [0, 0], sizes = [48, 128], strides = [1, 1]} : vector<48x256xf32> to vector<48x128xf32>
    %339 = vector.extract_strided_slice %337 {offsets = [0, 128], sizes = [48, 128], strides = [1, 1]} : vector<48x256xf32> to vector<48x128xf32>
    %340 = arith.mulf %339, %339 : vector<48x128xf32>
    %341 = arith.mulf %339, %340 : vector<48x128xf32>
    %cst_102 = arith.constant 4.471500e-02 : f32
    %342 = vector.broadcast %cst_102 : f32 to vector<48x128xf32>
    %343 = arith.mulf %342, %341 : vector<48x128xf32>
    %344 = arith.addf %339, %343 : vector<48x128xf32>
    %cst_103 = arith.constant 0.797884583 : f32
    %345 = vector.broadcast %cst_103 : f32 to vector<48x128xf32>
    %346 = arith.mulf %345, %344 : vector<48x128xf32>
    %347 = math.tanh %346 : vector<48x128xf32>
    %cst_104 = arith.constant 1.000000e+00 : f32
    %348 = vector.broadcast %cst_104 : f32 to vector<48x128xf32>
    %349 = arith.addf %348, %347 : vector<48x128xf32>
    %cst_105 = arith.constant 5.000000e-01 : f32
    %350 = vector.broadcast %cst_105 : f32 to vector<48x128xf32>
    %351 = arith.mulf %350, %349 : vector<48x128xf32>
    %352 = arith.mulf %339, %351 : vector<48x128xf32>
    %353 = arith.mulf %338, %352 : vector<48x128xf32>
    %c0_106 = arith.constant 0 : index
    %c0_107 = arith.constant 0 : index
    %354 = vector.load %arg16[%c0_106, %c0_107] : memref<128x32xf32, #tpu.memory_space<vmem>>, vector<128x32xf32>
    %cst_108 = arith.constant dense<0.000000e+00> : vector<48x32xf32>
    %355 = tpu.matmul %353, %354, %cst_108 {dimension_numbers = #tpu.dot_dimension_numbers<[1], [0], [0], [1], [0, 0, 1, 1], [], []>} : vector<48x128xf32>, vector<128x32xf32>, vector<48x32xf32> -> vector<48x32xf32>
    %c0_109 = arith.constant 0 : index
    %c0_110 = arith.constant 0 : index
    %356 = vector.load %arg17[%c0_109, %c0_110] : memref<1x32xf32, #tpu.memory_space<vmem>>, vector<1x32xf32>
    %357 = vector.broadcast %356 : vector<1x32xf32> to vector<48x32xf32>
    %358 = arith.addf %355, %357 : vector<48x32xf32>
    %359 = arith.addf %308, %358 : vector<48x32xf32>
    %c0_111 = arith.constant 0 : index
    %c0_112 = arith.constant 0 : index
    %360 = vector.load %arg18[%c0_111, %c0_112] : memref<48x32xf32, #tpu.memory_space<vmem>>, vector<48x32xf32>
    tpu.vector_store %arg18[%c0_111, %c0_112], %359 {strides = array<i32>} : memref<48x32xf32, #tpu.memory_space<vmem>>, vector<48x32xf32>,
    return
  }
  func.func @transform_0(%arg0: i32) -> i32 {
    %c0_i32 = arith.constant 0 : i32
    %c0_i32_0 = arith.constant 0 : i32
    return %c0_i32 : i32
  }
  func.func @transform_1(%arg0: i32) -> i32 {
    %c0_i32 = arith.constant 0 : i32
    %c0_i32_0 = arith.constant 0 : i32
    return %c0_i32 : i32
  }
  func.func @transform_2(%arg0: i32) -> (i32, i32) {
    %c0_i32 = arith.constant 0 : i32
    %c0_i32_0 = arith.constant 0 : i32
    %c0_i32_1 = arith.constant 0 : i32
    return %c0_i32, %c0_i32_0 : i32, i32
  }
  func.func @transform_3(%arg0: i32) -> (i32, i32) {
    %c0_i32 = arith.constant 0 : i32
    %c0_i32_0 = arith.constant 0 : i32
    %c0_i32_1 = arith.constant 0 : i32
    return %c0_i32, %c0_i32_0 : i32, i32
  }
  func.func @transform_4(%arg0: i32) -> (i32, i32) {
    %c0_i32 = arith.constant 0 : i32
    %c0_i32_0 = arith.constant 0 : i32
    %c0_i32_1 = arith.constant 0 : i32
    return %c0_i32, %c0_i32_0 : i32, i32
  }
  func.func @transform_5(%arg0: i32) -> (i32, i32) {
    %c0_i32 = arith.constant 0 : i32
    %c0_i32_0 = arith.constant 0 : i32
    %c0_i32_1 = arith.constant 0 : i32
    return %c0_i32, %c0_i32_0 : i32, i32
  }
  func.func @transform_6(%arg0: i32) -> (i32, i32) {
    %c0_i32 = arith.constant 0 : i32
    %c0_i32_0 = arith.constant 0 : i32
    %c0_i32_1 = arith.constant 0 : i32
    return %c0_i32, %c0_i32_0 : i32, i32
  }
  func.func @transform_7(%arg0: i32) -> (i32, i32) {
    %c0_i32 = arith.constant 0 : i32
    %c0_i32_0 = arith.constant 0 : i32
    %c0_i32_1 = arith.constant 0 : i32
    return %c0_i32, %c0_i32_0 : i32, i32
  }
  func.func @transform_8(%arg0: i32) -> (i32, i32) {
    %c0_i32 = arith.constant 0 : i32
    %c0_i32_0 = arith.constant 0 : i32
    %c0_i32_1 = arith.constant 0 : i32
    return %c0_i32, %c0_i32_0 : i32, i32
  }
  func.func @transform_9(%arg0: i32) -> (i32, i32) {
    %c0_i32 = arith.constant 0 : i32
    %c0_i32_0 = arith.constant 0 : i32
    %c0_i32_1 = arith.constant 0 : i32
    return %c0_i32, %c0_i32_0 : i32, i32
  }
  func.func @transform_10(%arg0: i32) -> (i32, i32) {
    %c0_i32 = arith.constant 0 : i32
    %c0_i32_0 = arith.constant 0 : i32
    %c0_i32_1 = arith.constant 0 : i32
    return %c0_i32, %c0_i32_0 : i32, i32
  }
  func.func @transform_11(%arg0: i32) -> (i32, i32) {
    %c0_i32 = arith.constant 0 : i32
    %c0_i32_0 = arith.constant 0 : i32
    %c0_i32_1 = arith.constant 0 : i32
    return %c0_i32, %c0_i32_0 : i32, i32
  }
  func.func @transform_12(%arg0: i32) -> (i32, i32) {
    %c0_i32 = arith.constant 0 : i32
    %c0_i32_0 = arith.constant 0 : i32
    %c0_i32_1 = arith.constant 0 : i32
    return %c0_i32, %c0_i32_0 : i32, i32
  }
  func.func @transform_13(%arg0: i32) -> (i32, i32) {
    %c0_i32 = arith.constant 0 : i32
    %c0_i32_0 = arith.constant 0 : i32
    %c0_i32_1 = arith.constant 0 : i32
    return %c0_i32, %c0_i32_0 : i32, i32
  }
  func.func @transform_14(%arg0: i32) -> (i32, i32) {
    %c0_i32 = arith.constant 0 : i32
    %c0_i32_0 = arith.constant 0 : i32
    %c0_i32_1 = arith.constant 0 : i32
    return %c0_i32, %c0_i32_0 : i32, i32
  }
  func.func @transform_15(%arg0: i32) -> (i32, i32) {
    %c0_i32 = arith.constant 0 : i32
    %c0_i32_0 = arith.constant 0 : i32
    %c0_i32_1 = arith.constant 0 : i32
    return %c0_i32, %c0_i32_0 : i32, i32
  }
  func.func @transform_16(%arg0: i32) -> (i32, i32) {
    %c0_i32 = arith.constant 0 : i32
    %c0_i32_0 = arith.constant 0 : i32
    %c0_i32_1 = arith.constant 0 : i32
    return %c0_i32, %c0_i32_0 : i32, i32
  }
  func.func @transform_17(%arg0: i32) -> (i32, i32) {
    %c0_i32 = arith.constant 0 : i32
    %c0_i32_0 = arith.constant 0 : i32
    %c0_i32_1 = arith.constant 0 : i32
    return %c0_i32, %c0_i32_0 : i32, i32
  }
}

</mosaic_0001>

<bundles_post_ra>
// kernel: encoder_layer_forward.1
= control target key start
LH: loop header
LB: loop body
LE: loop exit
PB: predicated region body
PF: predicated region fallthrough
CT: control target
= control target key end

     0   :  { %s8518_s0 = inlined_call_operand.vmem [shape: s32[5], index: 0, kind: input, shape index: {}]   ;;  %s8519_s1 = inlined_call_operand.vmem [shape: s32[3], index: 1, kind: input, shape index: {}]   ;;  %s8520_s2 = inlined_call_operand.vmem [shape: f32[48,32], index: 2, kind: input, shape index: {}]   ;;  %s8521_s3 = inlined_call_operand.vmem [shape: f32[48,128], index: 3, kind: input, shape index: {}]   ;;  %s8522_s4 = inlined_call_operand.vmem [shape: f32[48,1], index: 4, kind: input, shape index: {}]   ;;  %s8523_s5 = inlined_call_operand.vmem [shape: f32[32,96], index: 5, kind: input, shape index: {}]   ;;  %s8524_s6 = inlined_call_operand.vmem [shape: f32[32,32], index: 6, kind: input, shape index: {}]   ;;  %s8525_s7 = inlined_call_operand.vmem [shape: f32[1,32], index: 7, kind: input, shape index: {}]   ;;  %s8526_s8 = inlined_call_operand.vmem [shape: f32[32,96], index: 8, kind: input, shape index: {}]   ;;  %s8527_s9 = inlined_call_operand.vmem [shape: f32[32,32], index: 9, kind: input, shape index: {}]   ;;  %s8528_s10 = inlined_call_operand.vmem [shape: f32[1,32], index: 10, kind: input, shape index: {}]   ;;  %s8529_s11 = inlined_call_operand.vmem [shape: f32[1,32], index: 11, kind: input, shape index: {}]   ;;  %s8530_s12 = inlined_call_operand.vmem [shape: f32[1,32], index: 12, kind: input, shape index: {}]   ;;  %s8531_s13 = inlined_call_operand.vmem [shape: f32[32,256], index: 13, kind: input, shape index: {}]   ;;  %s8532_s14 = inlined_call_operand.vmem [shape: f32[1,256], index: 14, kind: input, shape index: {}]   ;;  %s8533_s15 = inlined_call_operand.vmem [shape: f32[128,32], index: 15, kind: input, shape index: {}]   ;;  %s8534_s16 = inlined_call_operand.vmem [shape: f32[1,32], index: 16, kind: input, shape index: {}]   ;;  %s8535_s17 = inlined_call_operand.vmem [shape: f32[48,32], index: 17, kind: output, shape index: {}]  }
   0x1   :  { %8542 = sst [smem:[#allocation8_spill]] %s8518_s0 }
   0x2   :  { %8543 = sst [smem:[#allocation9_spill]] %s8519_s1 }
   0x3   :  { %22 = vsyncpa [#allocation3], 0  ;;  %s8544_s26 = sld [smem:[#allocation8_spill]] }
   0x9   :  { %s30_s27 = sshll.u32 %s8544_s26, 4  ;;  %s31_s27 = int_to_ptr.vmem [resolvable:$true] %s30_s27 }
   0xa   :  { %23 = vsyncpa [#allocation5], 0  ;;  %s8545_s0 = sld [smem:[#allocation9_spill]]  ;;  %s6630_s18 = scalar_lea.vmem %s31_s27, 16 }
   0xb   :  { %p6631_p0 = scmp.ne.s32.totalorder %s31_s27, %s6630_s18  ;;  %p6635_p1 = scmp.lt.s32.totalorder %s31_s27, %s31_s27 }
   0xc   :  { %p6636_p2 = scmp.lt.s32.totalorder %s6630_s18, %s6630_s18 }
   0xe   :  { %p6637_p3 = por %p6636_p2, %p6635_p1 }
  0x10   :  { %s40_s30 = sshll.u32 %s8545_s0, 4  ;;  %p6638_p4 = pnand %p6637_p3, %p6631_p0  ;;  %s41_s30 = int_to_ptr.vmem [resolvable:$true] %s40_s30 }
  0x12   :  { %6641 = shalt.err (!%p6638_p4)
}
  0x13   :  { %s6658_s19 = smov [#allocation2]   ;;  %s6642_s1 = scalar_lea.vmem %s41_s30, 16 }
  0x14   :  { %33 = dma.vmem_to_smem %s31_s27, 16, %s6658_s19, [#allocation3]  }
  0x15   :  { %p6643_p5 = scmp.ne.s32.totalorder %s41_s30, %s6642_s1  ;;  %p6647_p6 = scmp.lt.s32.totalorder %s41_s30, %s41_s30 }
  0x16   :  { %p6648_p7 = scmp.lt.s32.totalorder %s6642_s1, %s6642_s1 }
  0x18   :  { %p6649_p8 = por %p6648_p7, %p6647_p6 }
  0x1a   :  { %p6650_p9 = pnand %p6649_p8, %p6643_p5 }
  0x1c   :  { %6653 = shalt.err (!%p6650_p9)
}
  0x1d   :  { %s6659_s20 = smov [#allocation4]  }
  0x1e   :  { %43 = dma.vmem_to_smem %s41_s30, 16, %s6659_s20, [#allocation5]  }
  0x1f   :  { %6654 = dma.done.wait [#allocation3], 16  }
  0x20   :  { %6655 = vsyncadd [#allocation3], 4294967280 }
  0x21   :  { %6656 = dma.done.wait [#allocation5], 16  }
  0x22   :  { %6657 = vsyncadd [#allocation5], 4294967280 }
  0x23   :  { %80 = sfence }
  0x24   :  { %v81_v0 = vld [vmem:[%s8520_s2] sm:$0xff]  ;;  %vm208_vm0 = vcmask 261120   ;;  %v83_v1 = vld [vmem:[%s8520_s2 + $0x10] sm:$0xff]  ;;  %v82_v2 = vld [vmem:[%s8520_s2 + $0x8] sm:$0xff]  ;;  %s6660_s20 = smov 96   ;;  %vm455_vm1 = vcmask 64512  }
  0x25   :  { %v209_v3 = vsel %vm208_vm0, %v81_v0, 0.0  ;;  %v215_v4 = vsel %vm208_vm0, %v83_v1, 0.0  ;;  %v84_v5 = vld [vmem:[%s8520_s2 + $0x18] sm:$0xff]  ;;  %v212_v6 = vsel %vm208_vm0, %v82_v2, 0.0  ;;  %v85_v8 = vld [vmem:[%s8520_s2 + $0x20] sm:$0xff]  ;;  %v86_v9 = vld [vmem:[%s8520_s2 + $0x28] sm:$0xff] }
  0x26   :  { %210 = vadd.xlane.f32.xlu0 %v209_v3  ;;  %216 = vadd.xlane.f32.xlu1 %v215_v4  ;;  %v218_v7 = vsel %vm208_vm0, %v84_v5, 0.0  ;;  %v221_v10 = vsel %vm208_vm0, %v85_v8, 0.0  ;;  %v224_v11 = vsel %vm208_vm0, %v86_v9, 0.0  ;;  %v88_v37 = vld [vmem:[%s8521_s3 + $0x8] sm:$0xff]  ;;  %v89_v38 = vld [vmem:[%s8521_s3 + $0x10] sm:$0xff]  ;;  %v87_v39 = vld [vmem:[%s8521_s3] sm:$0xff] }
  0x27   :  { %v199_v40 = vld [vmem:[%s8523_s5] sm:$0xff]  ;;  %v200_v41 = vld [vmem:[%s8523_s5 + $0x8] sm:$0xff]  ;;  %v90_v42 = vld [vmem:[%s8521_s3 + $0x18] sm:$0xff]  ;;  %s6661_s26 = smov 64   ;;  %s6662_s27 = smov 88  }
  0x28   :  { %v5907_v43 = vpack.c.bf16 %v200_v41, %v199_v40  ;;  %v6844_v44 = vld [vmem:[%s8521_s3 + $0x20] sm:$0xff]  ;;  %v201_v45 = vld [vmem:[%s8523_s5 + $0x10] sm:$0xff]  ;;  %v202_v46 = vld [vmem:[%s8523_s5 + $0x18] sm:$0xff]  ;;  %s6663_s28 = smov 120   ;;  %s6664_s29 = smov 56  }
  0x29   :  { %v5911_v47 = vpack.c.bf16 %v202_v46, %v201_v45  ;;  %v92_v53 = vld [vmem:[%s8521_s3 + $0x28] sm:$0xff]  ;;  %s6665_s0 = smov 80   ;;  %s6666_s30 = smov 112   ;;  %vm6970_vm2 = vmpackc.low %vm455_vm1, %vm455_vm1 }
  0x2a   :  { %213 = vadd.xlane.f32.xlu0 %v212_v6  ;;  %219 = vadd.xlane.f32.xlu1 %v218_v7  ;;  %s4897_s1 = sld [smem:[#allocation2 + $0x1]]  ;;  %s4898_s21 = sld [smem:[#allocation2 + $0x2]] }
  0x2b   :  { %5908 = vmatprep.subr.bf16.mxu0 %v5907_v43  ;;  %s4899_s22 = sld [smem:[#allocation2 + $0x3]]  ;;  %s4900_s23 = sld [smem:[#allocation2 + $0x4]] }
  0x2c   :  { %5910 = vmatpush3.bf16.msra.mxu0 %v5907_v43  ;;  %s6669_s24 = smov 48   ;;  %s8540_s5 = smov 72  }
  0x2d   :  { %5912 = vmatprep.subr.bf16.mxu0 %v5911_v47  ;;  %s8538_s25 = smov 104  }
  0x2e   :  { %222 = vadd.xlane.f32.xlu0 %v221_v10  ;;  %225 = vadd.xlane.f32.xlu1 %v224_v11 }
  0x30   :  { %5914 = vmatpush3.bf16.msra.mxu0 %v5911_v47 }
  0xb3   :  { %v211_v12 = vpop.xlane.xlu0 %210  ;;  %v217_v13 = vpop.xlane.xlu1 %216 }
  0xb4   :  { %v228_v14 = vmul.f32 0.03125, %v211_v12  ;;  %v230_v15 = vmul.f32 0.03125, %v217_v13 }
  0xb6   :  { %v6795_v16 = vsub.f32 %v81_v0, %v228_v14  ;;  %v6797_v17 = vsub.f32 %v83_v1, %v230_v15 }
  0xb7   :  { %v214_v18 = vpop.xlane.xlu0 %213  ;;  %v220_v19 = vpop.xlane.xlu1 %219 }
  0xb8   :  { %v229_v20 = vmul.f32 0.03125, %v214_v18  ;;  %v231_v21 = vmul.f32 0.03125, %v220_v19  ;;  %v240_v22 = vmul.f32 %v6795_v16, %v6795_v16  ;;  %v242_v23 = vmul.f32 %v6797_v17, %v6797_v17 }
  0xba   :  { %v6803_v24 = vsub.f32 %v82_v2, %v229_v20  ;;  %v6805_v25 = vsub.f32 %v84_v5, %v231_v21  ;;  %v246_v26 = vsel %vm208_vm0, %v240_v22, 0.0  ;;  %v252_v29 = vsel %vm208_vm0, %v242_v23, 0.0 }
  0xbb   :  { %247 = vadd.xlane.f32.xlu0 %v246_v26  ;;  %v223_v27 = vpop.xlane.xlu0 %222  ;;  %v226_v48 = vpop.xlane.xlu1 %225 }
  0xbc   :  { %v232_v28 = vmul.f32 0.03125, %v223_v27  ;;  %v241_v30 = vmul.f32 %v6803_v24, %v6803_v24  ;;  %v243_v31 = vmul.f32 %v6805_v25, %v6805_v25  ;;  %v233_v49 = vmul.f32 0.03125, %v226_v48 }
  0xbe   :  { %v6813_v32 = vsub.f32 %v85_v8, %v232_v28  ;;  %v249_v33 = vsel %vm208_vm0, %v241_v30, 0.0  ;;  %v255_v34 = vsel %vm208_vm0, %v243_v31, 0.0  ;;  %v239_v50 = vsub.f32 %v86_v9, %v233_v49 }
  0xbf   :  { %253 = vadd.xlane.f32.xlu0 %v252_v29  ;;  %250 = vadd.xlane.f32.xlu1 %v249_v33 }
  0xc0   :  { %v244_v35 = vmul.f32 %v6813_v32, %v6813_v32  ;;  %v245_v51 = vmul.f32 %v239_v50, %v239_v50 }
  0xc2   :  { %v258_v36 = vsel %vm208_vm0, %v244_v35, 0.0  ;;  %v261_v52 = vsel %vm208_vm0, %v245_v51, 0.0 }
  0xc3   :  { %256 = vadd.xlane.f32.xlu1 %v255_v34  ;;  %259 = vadd.xlane.f32.xlu0 %v258_v36 }
  0xd4   :  { %302 = vrot.lane.b32.xlu1 %v88_v37, %s6660_s20 }
  0xd8   :  { %304 = vrot.lane.b32.xlu1 %v89_v38, %s6660_s20 }
  0xd9   :  { %300 = vrot.lane.b32.xlu0 %v87_v39, %s6660_s20 }
  0xdc   :  { %306 = vrot.lane.b32.xlu1 %v90_v42, %s6660_s20 }
  0xdd   :  { %308 = vrot.lane.b32.xlu0 %v6844_v44, %s6660_s20 }
 0x100   :  { %262 = vadd.xlane.f32.xlu1 %v261_v52 }
 0x111   :  { %310 = vrot.lane.b32.xlu1 %v92_v53, %s6660_s20 }
 0x148   :  { %v248_v54 = vpop.xlane.xlu0 %247 }
 0x149   :  { %v264_v55 = vmul.f32 0.03125, %v248_v54 }
 0x14b   :  { %v270_v56 = vadd.f32 1e-05, %v264_v55 }
 0x14c   :  { %v251_v57 = vpop.xlane.xlu1 %250  ;;  %v254_v58 = vpop.xlane.xlu0 %253 }
 0x14d   :  { %6378 = vrsqrt.f32 %v270_v56  ;;  %v265_v59 = vmul.f32 0.03125, %v251_v57  ;;  %v266_v60 = vmul.f32 0.03125, %v254_v58 }
 0x14f   :  { %v271_v61 = vadd.f32 1e-05, %v265_v59  ;;  %v272_v62 = vadd.f32 1e-05, %v266_v60 }
 0x150   :  { %v257_v63 = vpop.xlane.xlu1 %256  ;;  %v260_v0 = vpop.xlane.xlu0 %259 }
 0x151   :  { %6380 = vrsqrt.f32 %v271_v61  ;;  %v267_v1 = vmul.f32 0.03125, %v257_v63  ;;  %v268_v2 = vmul.f32 0.03125, %v260_v0 }
 0x152   :  { %6382 = vrsqrt.f32 %v272_v62 }
 0x153   :  { %v273_v3 = vadd.f32 1e-05, %v267_v1  ;;  %v274_v4 = vadd.f32 1e-05, %v268_v2 }
 0x154   :  { %v303_v6 = vpop.permute.xlu1 %302  ;;  %v301_v8 = vpop.permute.xlu0 %300 }
 0x155   :  { %6384 = vrsqrt.f32 %v273_v3 }
 0x156   :  { %6386 = vrsqrt.f32 %v274_v4 }
 0x157   :  { %v6379_v5 = vpop.eup %6378 }
 0x158   :  { %v282_v7 = vmul.f32 %v6379_v5, %v6795_v16  ;;  %v305_v14 = vpop.permute.xlu1 %304 }
 0x15a   :  { %v288_v9 = vmul.f32 %v282_v7, %v87_v39 }
 0x15b   :  { %v6381_v10 = vpop.eup %6380 }
 0x15c   :  { %v6383_v11 = vpop.eup %6382  ;;  %v283_v12 = vmul.f32 %v6381_v10, %v6803_v24  ;;  %v318_v13 = vadd.f32 %v301_v8, %v288_v9  ;;  %v309_v24 = vpop.permute.xlu0 %308 }
 0x15d   :  { %v284_v15 = vmul.f32 %v6383_v11, %v6797_v17  ;;  %v307_v28 = vpop.permute.xlu1 %306 }
 0x15e   :  { %v289_v18 = vmul.f32 %v283_v12, %v88_v37  ;;  %5416 = vmatprep.mubr.msk.f32.mxu0 %vm208_vm0, %v318_v13  ;;  %v204_v13 = vld [vmem:[%s8524_s6 + $0x8] sm:$0xff] }
 0x15f   :  { %v6385_v19 = vpop.eup %6384  ;;  %v290_v20 = vmul.f32 %v284_v15, %v89_v38  ;;  %v203_v38 = vld [vmem:[%s8524_s6] sm:$0xff] }
 0x160   :  { %v6387_v21 = vpop.eup %6386  ;;  %v319_v22 = vadd.f32 %v303_v6, %v289_v18  ;;  %v285_v23 = vmul.f32 %v6385_v19, %v6805_v25  ;;  %5446 = vmatprep.subr.mxu0 %v203_v38 }
 0x161   :  { %v320_v16 = vadd.f32 %v305_v14, %v290_v20  ;;  %v286_v26 = vmul.f32 %v6387_v21, %v6813_v32 }
 0x162   :  { %v291_v27 = vmul.f32 %v285_v23, %v90_v42  ;;  %5417 = vmatmul.mubr.msk.f32.vlgmr.msra.gmra.mrb[0].mxu0 %vm208_vm0, %v319_v22 }
 0x163   :  { %5419 = vmatprep.mubr.msk.f32.mxu0 %vm208_vm0, %v320_v16  ;;  %v292_v17 = vmul.f32 %v286_v26, %v6844_v44  ;;  %5447 = vmatpush3.msra.mxu0 %v203_v38 }
 0x164   :  { %v321_v29 = vadd.f32 %v307_v28, %v291_v27 }
 0x165   :  { %v322_v30 = vadd.f32 %v309_v24, %v292_v17 }
 0x166   :  { %5420 = vmatmul.mubr.msk.f32.gmra.mrb[2].mxu0 %vm208_vm0, %v321_v29 }
 0x167   :  { %5422 = vmatprep.mubr.msk.f32.mxu0 %vm208_vm0, %v322_v30 }
 0x18d   :  { %v263_v31 = vpop.xlane.xlu1 %262 }
 0x18e   :  { %v269_v25 = vmul.f32 0.03125, %v263_v31 }
 0x190   :  { %v275_v33 = vadd.f32 1e-05, %v269_v25 }
 0x191   :  { %v311_v35 = vpop.permute.xlu1 %310 }
 0x192   :  { %6388 = vrsqrt.f32 %v275_v33 }
 0x19c   :  { %v6389_v32 = vpop.eup %6388 }
 0x19d   :  { %v287_v34 = vmul.f32 %v6389_v32, %v239_v50 }
 0x19f   :  { %v293_v36 = vmul.f32 %v287_v34, %v92_v53 }
 0x1a1   :  { %v323_v37 = vadd.f32 %v311_v35, %v293_v36 }
 0x1a3   :  { %5423 = vmatmul.mubr.msk.f32.gmra.mrb[4].mxu0 %vm208_vm0, %v323_v37 }
 0x235   :  { %v6875_v39 = vpop.f32.mrb[0].mxu0 }
 0x236   :  { %v6877_v40 = vpop.f32.mrb[1].mxu0 }
 0x237   :  { %654 = vrot.lane.b32.xlu1 %v6877_v40, %s6661_s26  ;;  %5437 = vmatprep.mubr.msk.f32.mxu1 %vm455_vm1, %v6877_v40  ;;  %v6885_v41 = vpack.i.bf16 %v6875_v39, %v6877_v40 }
 0x239   :  { %6257 = vrot.lane.b32.xlu0 %v6885_v41, %s6662_s27  ;;  %v6889_v42 = vpop.f32.mrb[2].mxu0 }
 0x23a   :  { %v6891_v43 = vpop.f32.mrb[3].mxu0 }
 0x23b   :  { %v6895_v44 = vpack.i.bf16 %v6889_v42, %v6891_v43 }
 0x23d   :  { %656 = vrot.lane.b32.xlu0 %v6875_v39, %s6661_s26  ;;  %6267 = vrot.lane.b32.xlu1 %v6895_v44, %s6662_s27 }
 0x241   :  { %6262 = vrot.lane.b32.xlu0 %v6885_v41, %s6660_s20  ;;  %660 = vrot.lane.b32.xlu1 %v6889_v42, %s6661_s26 }
 0x245   :  { %658 = vrot.lane.b32.xlu0 %v6891_v43, %s6661_s26 }
 0x249   :  { %6272 = vrot.lane.b32.xlu0 %v6895_v44, %s6660_s20 }
 0x276   :  { %v6909_v45 = vpop.f32.mrb[4].mxu0 }
 0x277   :  { %664 = vrot.lane.b32.xlu0 %v6909_v45, %s6661_s26  ;;  %v6913_v46 = vpop.f32.mrb[5].mxu0 }
 0x278   :  { %v6917_v47 = vpack.i.bf16 %v6909_v45, %v6913_v46 }
 0x27a   :  { %6277 = vrot.lane.b32.xlu1 %v6917_v47, %s6662_s27 }
 0x27b   :  { %775 = vrot.lane.b32.xlu0 %v6875_v39, %s6663_s28 }
 0x27e   :  { %662 = vrot.lane.b32.xlu1 %v6913_v46, %s6661_s26 }
 0x27f   :  { %777 = vrot.lane.b32.xlu0 %v6891_v43, %s6663_s28 }
 0x282   :  { %773 = vrot.lane.b32.xlu1 %v6877_v40, %s6663_s28 }
 0x283   :  { %781 = vrot.lane.b32.xlu0 %v6913_v46, %s6663_s28 }
 0x286   :  { %6282 = vrot.lane.b32.xlu1 %v6917_v47, %s6660_s20 }
 0x287   :  { %994 = vrot.lane.b32.xlu0 %v6877_v40, %s6664_s29 }
 0x28a   :  { %779 = vrot.lane.b32.xlu1 %v6889_v42, %s6663_s28 }
 0x28b   :  { %998 = vrot.lane.b32.xlu0 %v6891_v43, %s6664_s29 }
 0x28e   :  { %783 = vrot.lane.b32.xlu1 %v6909_v45, %s6663_s28 }
 0x28f   :  { %1002 = vrot.lane.b32.xlu0 %v6913_v46, %s6664_s29 }
 0x292   :  { %996 = vrot.lane.b32.xlu1 %v6875_v39, %s6664_s29 }
 0x293   :  { %6287 = vrot.lane.b32.xlu0 %v6885_v41, %s6665_s0 }
 0x296   :  { %1000 = vrot.lane.b32.xlu1 %v6889_v42, %s6664_s29 }
 0x297   :  { %6297 = vrot.lane.b32.xlu0 %v6917_v47, %s6665_s0 }
 0x29a   :  { %1004 = vrot.lane.b32.xlu1 %v6909_v45, %s6664_s29 }
 0x29b   :  { %1341 = vrot.lane.b32.xlu0 %v6875_v39, %s6666_s30 }
 0x29e   :  { %6292 = vrot.lane.b32.xlu1 %v6895_v44, %s6665_s0 }
 0x29f   :  { %1345 = vrot.lane.b32.xlu0 %v6889_v42, %s6666_s30 }
 0x2a2   :  { %1339 = vrot.lane.b32.xlu1 %v6877_v40, %s6666_s30 }
 0x2a3   :  { %1349 = vrot.lane.b32.xlu0 %v6909_v45, %s6666_s30 }
 0x2a6   :  { %1343 = vrot.lane.b32.xlu1 %v6891_v43, %s6666_s30 }
 0x2a9   :  { %v655_v48 = vpop.permute.xlu1 %654 }
 0x2aa   :  { %5448 = vmatprep.mubr.msk.f32.mxu0 %vm455_vm1, %v655_v48  ;;  %1347 = vrot.lane.b32.xlu1 %v6913_v46, %s6666_s30 }
 0x2ab   :  { %v6258_v49 = vpop.permute.xlu0 %6257 }
 0x2ac   :  { %v6260_v50 = vunpack.i.h.bf16 %v6258_v49  ;;  %v6259_v51 = vunpack.i.l.bf16 %v6258_v49 }
 0x2ae   :  { %v5933_v53 = vpack.c.bf16 %v6260_v50, %v6259_v51 }
 0x2af   :  { %v6268_v54 = vpop.permute.xlu1 %6267  ;;  %v657_v55 = vpop.permute.xlu0 %656 }
 0x2b0   :  { %v6270_v56 = vunpack.i.h.bf16 %v6268_v54  ;;  %v6269_v57 = vunpack.i.l.bf16 %v6268_v54  ;;  %5449 = vmatmul.mubr.msk.f32.vlgmr.msra.gmra.mrb[6].mxu0 %vm455_vm1, %v657_v55  ;;  %5935 = vmatprep.subr.msk.bf16.mxu0 %vm6970_vm2, %v5933_v53 }
 0x2b1   :  { %5938 = vmatpush3.bf16.xpose.msk.msra.mxu0 %vm6970_vm2, %v5933_v53 }
 0x2b2   :  { %v5939_v58 = vpack.c.bf16 %v6270_v56, %v6269_v57  ;;  %v6667_v56 = vmov 0  }
 0x2b3   :  { %v6263_v59 = vpop.permute.xlu0 %6262  ;;  %v661_v0 = vpop.permute.xlu1 %660  ;;  %6317 = vset.pattern.permute.xlu1 %v6667_v56  ;;  %6316 = vset.pattern.permute.xlu0 %v6667_v56 }
 0x2b4   :  { %5941 = vmatprep.subr.msk.bf16.mxu0 %vm6970_vm2, %v5939_v58  ;;  %v6265_v60 = vunpack.i.h.bf16 %v6263_v59  ;;  %v6264_v61 = vunpack.i.l.bf16 %v6263_v59 }
 0x2b6   :  { %v5915_v62 = vpack.c.bf16 %v6265_v60, %v6264_v61 }
 0x2b7   :  { %v659_v63 = vpop.permute.xlu0 %658 }
 0x2b8   :  { %5917 = vmatprep.subr.msk.bf16.mxu1 %vm6970_vm2, %v5915_v62  ;;  %5451 = vmatprep.mubr.msk.f32.mxu0 %vm455_vm1, %v659_v63  ;;  %v93_v63 = vlaneseq }
 0x2b9   :  { %5920 = vmatpush3.bf16.xpose.msk.msra.mxu1 %vm6970_vm2, %v5915_v62  ;;  %5452 = vmatmul.mubr.msk.f32.gmra.mrb[8].mxu0 %vm455_vm1, %v661_v0 }
 0x2ba   :  { %5944 = vmatpush3.bf16.xpose.msk.msra.mxu0 %vm6970_vm2, %v5939_v58  ;;  %v7052_v0 = vshrl.u32 %v93_v63, 7 }
 0x2bb   :  { %v6273_v1 = vpop.permute.xlu0 %6272 }
 0x2bc   :  { %v6275_v2 = vunpack.i.h.bf16 %v6273_v1  ;;  %v6274_v3 = vunpack.i.l.bf16 %v6273_v1  ;;  %v7055_v1 = vadd.s32 8, %v7052_v0 }
 0x2be   :  { %v5921_v4 = vpack.c.bf16 %v6275_v2, %v6274_v3  ;;  %v7057_v2 = vand.u32 127, %v93_v63  ;;  %v7059_v3 = vstv %s4897_s1  ;;  %s8536_s1 = smov 40  }
 0x2bf   :  { %vm105_vm3 = vcmp.ge.s32.totalorder %v7055_v1, %v7059_v3  ;;  %vm104_vm7 = vcmp.ge.s32.totalorder %v7052_v0, %v7059_v3 }
 0x2c0   :  { %5923 = vmatprep.subr.msk.bf16.mxu1 %vm6970_vm2, %v5921_v4  ;;  %vm116_vm4 = vcmp.ge.s32.totalorder %v7057_v2, %v7059_v3 }
 0x2c1   :  { %5926 = vmatpush3.bf16.xpose.msk.msra.mxu1 %vm6970_vm2, %v5921_v4  ;;  %v7061_v4 = vstv %s4898_s21 }
 0x2c2   :  { %vm121_vm5 = vcmp.ge.s32.totalorder %v7055_v1, %v7061_v4  ;;  %vm138_vm6 = vcmp.ge.s32.totalorder %v7057_v2, %v7061_v4  ;;  %vm120_vm8 = vcmp.ge.s32.totalorder %v7052_v0, %v7061_v4 }
 0x2e9   :  { %v665_v5 = vpop.permute.xlu0 %664 }
 0x2ec   :  { %v6278_v6 = vpop.permute.xlu1 %6277 }
 0x2ed   :  { %v6280_v7 = vunpack.i.h.bf16 %v6278_v6  ;;  %v6279_v8 = vunpack.i.l.bf16 %v6278_v6  ;;  %v776_v9 = vpop.permute.xlu0 %775  ;;  %v111_v6 = vsel %vm105_vm3, 1, %v6667_v56 }
 0x2ef   :  { %v5945_v10 = vpack.c.bf16 %v6280_v7, %v6279_v8  ;;  %v117_v7 = vsel %vm116_vm4, 1, %v6667_v56  ;;  %v127_v8 = vsel %vm121_vm5, 1, %v6667_v56 }
 0x2f0   :  { %v663_v11 = vpop.permute.xlu1 %662 }
 0x2f1   :  { %5454 = vmatprep.mubr.msk.f32.mxu0 %vm455_vm1, %v663_v11  ;;  %v778_v12 = vpop.permute.xlu0 %777  ;;  %5947 = vmatprep.subr.msk.bf16.mxu0 %vm6970_vm2, %v5945_v10  ;;  %v7088_v11 = vstv %s4900_s23 }
 0x2f2   :  { %5455 = vmatmul.mubr.msk.f32.gmra.mrb[10].mxu0 %vm455_vm1, %v665_v5  ;;  %v7071_v5 = vstv %s4899_s22  ;;  %vm167_vm14 = vcmp.ge.s32.totalorder %v7055_v1, %v7088_v11  ;;  %vm184_vm15 = vcmp.ge.s32.totalorder %v7057_v2, %v7088_v11  ;;  %vm166_vm3 = vcmp.ge.s32.totalorder %v7052_v0, %v7088_v11 }
 0x2f3   :  { %5950 = vmatpush3.bf16.xpose.msk.msra.mxu0 %vm6970_vm2, %v5945_v10  ;;  %v7082_v10 = vadd.s32 16, %v7052_v0  ;;  %vm144_vm9 = vcmp.ge.s32.totalorder %v7055_v1, %v7071_v5  ;;  %vm161_vm10 = vcmp.ge.s32.totalorder %v7057_v2, %v7071_v5  ;;  %vm143_vm11 = vcmp.ge.s32.totalorder %v7052_v0, %v7071_v5 }
 0x2f4   :  { %v774_v14 = vpop.permute.xlu1 %773  ;;  %5478 = vmatprep.subr.mxu0 %v204_v13 }
 0x2f5   :  { %5469 = vmatprep.mubr.msk.f32.mxu0 %vm455_vm1, %v774_v14  ;;  %v782_v15 = vpop.permute.xlu0 %781  ;;  %v7093_v14 = vadd.s32 24, %v7052_v0  ;;  %vm106_vm12 = vcmp.ge.s32.totalorder %v7082_v10, %v7059_v3  ;;  %vm122_vm13 = vcmp.ge.s32.totalorder %v7082_v10, %v7061_v4 }
 0x2f7   :  { %vm107_vm4 = vcmp.ge.s32.totalorder %v7093_v14, %v7059_v3  ;;  %vm123_vm5 = vcmp.ge.s32.totalorder %v7093_v14, %v7061_v4 }
 0x2f8   :  { %v6283_v18 = vpop.permute.xlu1 %6282 }
 0x2f9   :  { %v6285_v19 = vunpack.i.h.bf16 %v6283_v18  ;;  %v6284_v20 = vunpack.i.l.bf16 %v6283_v18  ;;  %v995_v21 = vpop.permute.xlu0 %994 }
 0x2fa   :  { %5470 = vmatmul.mubr.msk.f32.vlgmr.msra.gmra.mrb[12].mxu0 %vm455_vm1, %v776_v9  ;;  %v139_v9 = vsel %vm138_vm6, 1, %v6667_v56  ;;  %vm145_vm6 = vcmp.ge.s32.totalorder %v7082_v10, %v7071_v5 }
 0x2fb   :  { %v5927_v22 = vpack.c.bf16 %v6285_v19, %v6284_v20  ;;  %5472 = vmatprep.mubr.msk.f32.mxu0 %vm455_vm1, %v778_v12  ;;  %5479 = vmatpush3.msra.mxu0 %v204_v13  ;;  %v110_v12 = vsel %vm104_vm7, 1, %v6667_v56  ;;  %v126_v13 = vsel %vm120_vm8, 1, %v6667_v56  ;;  %v140_v18 = vadd.s32 %v139_v9, %v117_v7 }
 0x2fc   :  { %v780_v23 = vpop.permute.xlu1 %779  ;;  %v150_v19 = vsel %vm144_vm9, 1, %v6667_v56  ;;  %v162_v20 = vsel %vm161_vm10, 1, %v6667_v56  ;;  %vm146_vm7 = vcmp.ge.s32.totalorder %v7093_v14, %v7071_v5  ;;  %vm168_vm10 = vcmp.ge.s32.totalorder %v7082_v10, %v7088_v11 }
 0x2fd   :  { %v999_v16 = vpop.permute.xlu0 %998  ;;  %5929 = vmatprep.subr.msk.bf16.mxu1 %vm6970_vm2, %v5927_v22 }
 0x2fe   :  { %5473 = vmatmul.mubr.msk.f32.gmra.mrb[14].mxu0 %vm455_vm1, %v780_v23  ;;  %5932 = vmatpush3.bf16.xpose.msk.msra.mxu1 %vm6970_vm2, %v5927_v22  ;;  %v149_v22 = vsel %vm143_vm11, 1, %v6667_v56  ;;  %v7115_v23 = vadd.s32 40, %v7052_v0  ;;  %vm169_vm11 = vcmp.ge.s32.totalorder %v7093_v14, %v7088_v11 }
 0x2ff   :  { %5475 = vmatprep.mubr.msk.f32.mxu0 %vm455_vm1, %v782_v15  ;;  %v133_v15 = vadd.s32 %v127_v8, %v111_v6  ;;  %v6668_v8 = vmov -1e+30  }
 0x300   :  { %v784_v26 = vpop.permute.xlu1 %783  ;;  %vm109_vm8 = vcmp.ge.s32.totalorder %v7115_v23, %v7059_v3  ;;  %vm125_vm9 = vcmp.ge.s32.totalorder %v7115_v23, %v7061_v4 }
 0x301   :  { %v1003_v27 = vpop.permute.xlu0 %1002 }
 0x302   :  { %5476 = vmatmul.mubr.msk.f32.gmra.mrb[16].mxu0 %vm455_vm1, %v784_v26  ;;  %v112_v26 = vsel %vm106_vm12, 1, %v6667_v56  ;;  %vm148_vm12 = vcmp.ge.s32.totalorder %v7115_v23, %v7071_v5 }
 0x303   :  { %5480 = vmatprep.mubr.msk.f32.mxu0 %vm455_vm1, %v995_v21  ;;  %v132_v21 = vadd.s32 %v126_v13, %v110_v12  ;;  %v154_v63 = vsel %vm148_vm12, 1, %v6667_v56 }
 0x304   :  { %v997_v24 = vpop.permute.xlu1 %996 }
 0x305   :  { %v6288_v28 = vpop.permute.xlu0 %6287  ;;  %5438 = vmatmul.mubr.msk.f32.vlgmr.msra.gmra.mrb[0].mxu1 %vm455_vm1, %v6875_v39 }
 0x306   :  { %v6290_v17 = vunpack.i.h.bf16 %v6288_v28  ;;  %v6289_v29 = vunpack.i.l.bf16 %v6288_v28  ;;  %5481 = vmatmul.mubr.msk.f32.vlgmr.msra.gmra.mrb[18].mxu0 %vm455_vm1, %v997_v24  ;;  %5440 = vmatprep.mubr.msk.f32.mxu1 %vm455_vm1, %v6891_v43  ;;  %v163_v24 = vadd.s32 %v162_v20, %v140_v18  ;;  %v173_v28 = vsel %vm167_vm14, 1, %v6667_v56 }
 0x307   :  { %5483 = vmatprep.mubr.msk.f32.mxu0 %vm455_vm1, %v999_v16  ;;  %v156_v16 = vadd.s32 %v150_v19, %v133_v15 }
 0x308   :  { %v5975_v30 = vpack.c.bf16 %v6290_v17, %v6289_v29  ;;  %v1001_v31 = vpop.permute.xlu1 %1000  ;;  %v185_v17 = vsel %vm184_vm15, 1, %v6667_v56  ;;  %v155_v29 = vadd.s32 %v149_v22, %v132_v21 }
 0x309   :  { %5441 = vmatmul.mubr.msk.f32.gmra.mrb[2].mxu1 %vm455_vm1, %v6889_v42  ;;  %v6298_v33 = vpop.permute.xlu0 %6297 }
 0x30a   :  { %5484 = vmatmul.mubr.msk.f32.gmra.mrb[20].mxu0 %vm455_vm1, %v1001_v31  ;;  %5443 = vmatprep.mubr.msk.f32.mxu1 %vm455_vm1, %v6913_v46  ;;  %v6300_v34 = vunpack.i.h.bf16 %v6298_v33  ;;  %v6299_v35 = vunpack.i.l.bf16 %v6298_v33  ;;  %v113_v31 = vsel %vm107_vm4, 1, %v6667_v56  ;;  %vm171_vm4 = vcmp.ge.s32.totalorder %v7115_v23, %v7088_v11 }
 0x30b   :  { %5486 = vmatprep.mubr.msk.f32.mxu0 %vm455_vm1, %v1003_v27  ;;  %5977 = vmatprep.subr.msk.bf16.mxu0 %vm6970_vm2, %v5975_v30  ;;  %v128_v27 = vsel %vm122_vm13, 1, %v6667_v56  ;;  %v177_v20 = vsel %vm171_vm4, 1, %v6667_v56 }
 0x30c   :  { %5980 = vmatpush3.bf16.xpose.msk.msra.mxu0 %vm6970_vm2, %v5975_v30  ;;  %v1005_v25 = vpop.permute.xlu1 %1004  ;;  %v5987_v49 = vpack.c.bf16 %v6300_v34, %v6299_v35  ;;  %v172_v30 = vsel %vm166_vm3, 1, %v6667_v56  ;;  %v134_v33 = vadd.s32 %v128_v27, %v112_v26  ;;  %v7134_v34 = vadd.s32 32, %v7052_v0 }
 0x30d   :  { %5444 = vmatmul.mubr.msk.f32.gmra.mrb[4].mxu1 %vm455_vm1, %v6909_v45  ;;  %v1342_v50 = vpop.permute.xlu0 %1341 }
 0x30e   :  { %5487 = vmatmul.mubr.msk.f32.gmra.mrb[22].mxu0 %vm455_vm1, %v1005_v25  ;;  %v129_v25 = vsel %vm123_vm5, 1, %v6667_v56  ;;  %vm108_vm13 = vcmp.ge.s32.totalorder %v7134_v34, %v7059_v3  ;;  %vm124_vm14 = vcmp.ge.s32.totalorder %v7134_v34, %v7061_v4  ;;  %vm147_vm5 = vcmp.ge.s32.totalorder %v7134_v34, %v7071_v5 }
 0x30f   :  { %v114_v7 = vsel %vm108_vm13, 1, %v6667_v56  ;;  %v130_v3 = vsel %vm124_vm14, 1, %v6667_v56  ;;  %v153_v5 = vsel %vm147_vm5, 1, %v6667_v56 }
 0x310   :  { %v6293_v32 = vpop.permute.xlu1 %6292  ;;  %v136_v21 = vadd.s32 %v130_v3, %v114_v7 }
 0x311   :  { %v6295_v36 = vunpack.i.h.bf16 %v6293_v32  ;;  %v6294_v37 = vunpack.i.l.bf16 %v6293_v32  ;;  %v1346_v53 = vpop.permute.xlu0 %1345  ;;  %v151_v32 = vsel %vm145_vm6, 1, %v6667_v56  ;;  %vm587_vm6 = vcmask 392192  }
 0x313   :  { %v5981_v38 = vpack.c.bf16 %v6295_v36, %v6294_v37  ;;  %v179_v36 = vadd.s32 %v173_v28, %v156_v16  ;;  %v7136_v37 = vadd.s32 %v185_v17, %v163_v24 }
 0x314   :  { %v1340_v48 = vpop.permute.xlu1 %1339 }
 0x315   :  { %5983 = vmatprep.subr.msk.bf16.mxu0 %vm6970_vm2, %v5981_v38  ;;  %5543 = vmatprep.mubr.msk.f32.mxu0 %vm455_vm1, %v1340_v48  ;;  %v1350_v55 = vpop.permute.xlu0 %1349  ;;  %vm188_vm15 = vcmp.eq.s32.totalorder %v179_v36, %v7136_v37 }
 0x316   :  { %5986 = vmatpush3.bf16.xpose.msk.msra.mxu0 %vm6970_vm2, %v5981_v38  ;;  %v135_v38 = vadd.s32 %v129_v25, %v113_v31  ;;  %v7165_v9 = vsel %vm188_vm15, 0.0, %v6668_v8 }
 0x317   :  { %5989 = vmatprep.subr.msk.bf16.mxu0 %vm6970_vm2, %v5987_v49 }
 0x318   :  { %v1344_v51 = vpop.permute.xlu1 %1343 }
 0x31c   :  { %v1348_v54 = vpop.permute.xlu1 %1347 }
 0x31e   :  { %5992 = vmatpush3.bf16.xpose.msk.msra.mxu0 %vm6970_vm2, %v5987_v49  ;;  %v178_v49 = vadd.s32 %v172_v30, %v155_v29  ;;  %v159_v30 = vadd.s32 %v153_v5, %v136_v21 }
 0x320   :  { %vm187_vm3 = vcmp.eq.s32.totalorder %v178_v49, %v7136_v37 }
 0x321   :  { %v7168_v19 = vsel %vm187_vm3, 0.0, %v6668_v8 }
 0x325   :  { %5544 = vmatmul.mubr.msk.f32.vlgmr.msra.gmra.mrb[24].mxu0 %vm455_vm1, %v1342_v50  ;;  %v152_v50 = vsel %vm146_vm7, 1, %v6667_v56 }
 0x326   :  { %5546 = vmatprep.mubr.msk.f32.mxu0 %vm455_vm1, %v1344_v51  ;;  %v115_v51 = vsel %vm109_vm8, 1, %v6667_v56  ;;  %vm170_vm8 = vcmp.ge.s32.totalorder %v7134_v34, %v7088_v11 }
 0x329   :  { %5547 = vmatmul.mubr.msk.f32.gmra.mrb[26].mxu0 %vm455_vm1, %v1346_v53  ;;  %v131_v53 = vsel %vm125_vm9, 1, %v6667_v56 }
 0x32a   :  { %5549 = vmatprep.mubr.msk.f32.mxu0 %vm455_vm1, %v1348_v54 }
 0x32d   :  { %5550 = vmatmul.mubr.msk.f32.gmra.mrb[28].mxu0 %vm455_vm1, %v1350_v55  ;;  %v157_v55 = vadd.s32 %v151_v32, %v134_v33  ;;  %v176_v33 = vsel %vm170_vm8, 1, %v6667_v56 }
 0x383   :  { %v5450_v57 = vpop.f32.mrb[6].mxu0 }
 0x384   :  { %v744_v58 = vpop.f32.mrb[7].mxu0 }
 0x385   :  { %v7048_v59 = vpack.c.bf16 %v5450_v57, %v744_v58  ;;  %v174_v57 = vsel %vm168_vm10, 1, %v6667_v56  ;;  %v158_v58 = vadd.s32 %v152_v50, %v135_v38 }
 0x386   :  { %v180_v6 = vadd.s32 %v174_v57, %v157_v55 }
 0x388   :  { %vm189_vm7 = vcmp.eq.s32.totalorder %v180_v6, %v7136_v37 }
 0x389   :  { %v7185_v29 = vsel %vm189_vm7, 0.0, %v6668_v8 }
 0x38c   :  { %v5453_v60 = vpop.f32.mrb[8].mxu0 }
 0x38d   :  { %v754_v61 = vpop.f32.mrb[9].mxu0 }
 0x38e   :  { %v7050_v62 = vpack.c.bf16 %v5453_v60, %v754_v61  ;;  %v137_v60 = vadd.s32 %v131_v53, %v115_v51  ;;  %v175_v61 = vsel %vm169_vm11, 1, %v6667_v56 }
 0x38f   :  { %v181_v12 = vadd.s32 %v175_v61, %v158_v58 }
 0x390   :  { %v160_v13 = vadd.s32 %v154_v63, %v137_v60 }
 0x391   :  { %vm190_vm9 = vcmp.eq.s32.totalorder %v181_v12, %v7136_v37 }
 0x392   :  { %v183_v24 = vadd.s32 %v177_v20, %v160_v13  ;;  %v7191_v32 = vsel %vm190_vm9, 0.0, %v6668_v8 }
 0x394   :  { %vm192_vm10 = vcmp.eq.s32.totalorder %v183_v24, %v7136_v37 }
 0x395   :  { %v7203_v55 = vsel %vm192_vm10, 0.0, %v6668_v8 }
 0x3c5   :  { %v5456_v35 = vpop.f32.mrb[10].mxu0 }
 0x3c6   :  { %v764_v48 = vpop.f32.mrb[11].mxu0 }
 0x3c7   :  { %v7143_v54 = vpack.c.bf16 %v5456_v35, %v764_v48  ;;  %v182_v48 = vadd.s32 %v176_v33, %v159_v30 }
 0x3c9   :  { %vm191_vm11 = vcmp.eq.s32.totalorder %v182_v48, %v7136_v37 }
 0x3cd   :  { %v5471_v4 = vpop.f32.mrb[12].mxu0 }
 0x3ce   :  { %v917_v15 = vmul.f32 0.35355338, %v5471_v4  ;;  %v887_v18 = vpop.f32.mrb[13].mxu0 }
 0x3cf   :  { %v916_v22 = vmul.f32 0.35355338, %v887_v18  ;;  %v7215_v18 = vsel %vm191_vm11, 0.0, %v6668_v8 }
 0x3d0   :  { %v7174_v16 = vadd.f32 %v917_v15, %v7165_v9 }
 0x3d1   :  { %v5474_v26 = vpop.f32.mrb[14].mxu0  ;;  %v7179_v27 = vadd.f32 %v916_v22, %v7168_v19 }
 0x3d2   :  { %v897_v28 = vpop.f32.mrb[15].mxu0  ;;  %v931_v17 = vsel %vm587_vm6, %v7174_v16, -inf  ;;  %v919_v31 = vmul.f32 0.35355338, %v5474_v26 }
 0x3d3   :  { %v918_v25 = vmul.f32 0.35355338, %v897_v28  ;;  %932 = vmax.xlane.f32.xlu0 %v931_v17  ;;  %v928_v11 = vsel %vm587_vm6, %v7179_v27, -inf }
 0x3d4   :  { %929 = vmax.xlane.f32.xlu1 %v928_v11  ;;  %v7200_v51 = vadd.f32 %v919_v31, %v7191_v32 }
 0x3d5   :  { %v5477_v35 = vpop.f32.mrb[16].mxu0  ;;  %v7194_v36 = vadd.f32 %v918_v25, %v7185_v29 }
 0x3d6   :  { %v907_v38 = vpop.f32.mrb[17].mxu0  ;;  %v921_v49 = vmul.f32 0.35355338, %v5477_v35  ;;  %v937_v7 = vsel %vm587_vm6, %v7200_v51, -inf }
 0x3d7   :  { %v934_v50 = vsel %vm587_vm6, %v7194_v36, -inf  ;;  %v920_v37 = vmul.f32 0.35355338, %v907_v38 }
 0x3d8   :  { %935 = vmax.xlane.f32.xlu0 %v934_v50  ;;  %v5439_v53 = vpop.f32.mrb[0].mxu1  ;;  %v7209_v3 = vadd.f32 %v921_v49, %v7203_v55 }
 0x3d9   :  { %v5482_v57 = vpop.f32.mrb[18].mxu0  ;;  %v546_v58 = vpop.f32.mrb[1].mxu1  ;;  %v576_v63 = vmul.f32 0.35355338, %v5439_v53  ;;  %v7230_v38 = vadd.f32 %v920_v37, %v7215_v18 }
 0x3da   :  { %v575_v60 = vmul.f32 0.35355338, %v546_v58  ;;  %v1084_v61 = vpop.f32.mrb[19].mxu0  ;;  %v943_v24 = vsel %vm587_vm6, %v7209_v3, -inf }
 0x3db   :  { %v5951_v6 = vpack.c.bf16 %v5482_v57, %v1084_v61  ;;  %v7222_v28 = vadd.f32 %v576_v63, %v7165_v9  ;;  %v940_v57 = vsel %vm587_vm6, %v7230_v38, -inf }
 0x3dc   :  { %938 = vmax.xlane.f32.xlu0 %v937_v7  ;;  %v5442_v4 = vpop.f32.mrb[2].mxu1  ;;  %v7212_v12 = vadd.f32 %v575_v60, %v7168_v19 }
 0x3dd   :  { %v5485_v13 = vpop.f32.mrb[20].mxu0  ;;  %5952 = vmatprep.subr.bf16.mxu1 %v5951_v6  ;;  %v556_v15 = vpop.f32.mrb[3].mxu1  ;;  %v578_v5 = vmul.f32 0.35355338, %v5442_v4  ;;  %v591_v50 = vsel %vm587_vm6, %v7222_v28, -inf }
 0x3de   :  { %v577_v20 = vmul.f32 0.35355338, %v556_v15  ;;  %v1094_v21 = vpop.f32.mrb[21].mxu0  ;;  %5954 = vmatpush3.bf16.msra.mxu1 %v5951_v6  ;;  %v588_v22 = vsel %vm587_vm6, %v7212_v12, -inf }
 0x3df   :  { %v5955_v26 = vpack.c.bf16 %v5485_v13, %v1094_v21  ;;  %589 = vmax.xlane.f32.xlu1 %v588_v22  ;;  %v584_v53 = vadd.f32 %v578_v5, %v7191_v32 }
 0x3e0   :  { %944 = vmax.xlane.f32.xlu0 %v943_v24  ;;  %v5445_v17 = vpop.f32.mrb[4].mxu1  ;;  %v7225_v30 = vadd.f32 %v577_v20, %v7185_v29 }
 0x3e1   :  { %v5488_v31 = vpop.f32.mrb[22].mxu0  ;;  %5956 = vmatprep.subr.bf16.mxu1 %v5955_v26  ;;  %v566_v25 = vpop.f32.mrb[5].mxu1  ;;  %v580_v48 = vmul.f32 0.35355338, %v5445_v17  ;;  %v597_v60 = vsel %vm587_vm6, %v584_v53, -inf }
 0x3e2   :  { %v579_v11 = vmul.f32 0.35355338, %v566_v25  ;;  %v1104_v33 = vpop.f32.mrb[23].mxu0  ;;  %5958 = vmatpush3.bf16.msra.mxu1 %v5955_v26  ;;  %v594_v35 = vsel %vm587_vm6, %v7225_v30, -inf }
 0x3e3   :  { %v5959_v49 = vpack.c.bf16 %v5488_v31, %v1104_v33  ;;  %595 = vmax.xlane.f32.xlu1 %v594_v35  ;;  %v586_v61 = vadd.f32 %v580_v48, %v7203_v55 }
 0x3e4   :  { %592 = vmax.xlane.f32.xlu0 %v591_v50  ;;  %v7238_v58 = vadd.f32 %v579_v11, %v7215_v18 }
 0x3e5   :  { %5960 = vmatprep.subr.bf16.mxu1 %v5959_v49  ;;  %v603_v6 = vsel %vm587_vm6, %v586_v61, -inf }
 0x3e6   :  { %5962 = vmatpush3.bf16.msra.mxu1 %v5959_v49  ;;  %v600_v63 = vsel %vm587_vm6, %v7238_v58, -inf }
 0x3e7   :  { %5964 = vmatprep.subr.bf16.mxu1 %v7048_v59  ;;  %941 = vmax.xlane.f32.xlu1 %v940_v57 }
 0x3e8   :  { %598 = vmax.xlane.f32.xlu0 %v597_v60 }
 0x3eb   :  { %601 = vmax.xlane.f32.xlu1 %v600_v63 }
 0x3ec   :  { %604 = vmax.xlane.f32.xlu0 %v603_v6 }
 0x3f8   :  { %v7246_v7 = vpop.f32.mrb[24].mxu0 }
 0x3f9   :  { %v7248_v4 = vpop.f32.mrb[25].mxu0 }
 0x3fc   :  { %v7250_v13 = vpop.f32.mrb[26].mxu0 }
 0x3fd   :  { %v7252_v15 = vpop.f32.mrb[27].mxu0 }
 0x400   :  { %v7254_v37 = vpop.f32.mrb[28].mxu0 }
 0x401   :  { %v7256_v20 = vpop.f32.mrb[29].mxu0 }
 0x460   :  { %v933_v21 = vpop.xlane.xlu0 %932 }
 0x461   :  { %v947_v22 = vsub.f32 %v7174_v16, %v933_v21  ;;  %v930_v5 = vpop.xlane.xlu1 %929 }
 0x462   :  { %v946_v26 = vsub.f32 %v7179_v27, %v930_v5 }
 0x463   :  { %v954_v24 = vmul.f32 1.442695, %v947_v22 }
 0x464   :  { %v952_v17 = vmul.f32 1.442695, %v946_v26 }
 0x465   :  { %6390 = vpow2.f32 %v954_v24  ;;  %v936_v31 = vpop.xlane.xlu0 %935 }
 0x466   :  { %6392 = vpow2.f32 %v952_v17  ;;  %v948_v33 = vsub.f32 %v7194_v36, %v936_v31 }
 0x468   :  { %v956_v27 = vmul.f32 1.442695, %v948_v33 }
 0x469   :  { %v939_v25 = vpop.xlane.xlu0 %938 }
 0x46a   :  { %v949_v11 = vsub.f32 %v7200_v51, %v939_v25 }
 0x46c   :  { %v958_v35 = vmul.f32 1.442695, %v949_v11  ;;  %v590_v48 = vpop.xlane.xlu1 %589 }
 0x46d   :  { %v606_v49 = vsub.f32 %v7212_v12, %v590_v48  ;;  %v945_v50 = vpop.xlane.xlu0 %944 }
 0x46e   :  { %6394 = vpow2.f32 %v958_v35  ;;  %v951_v16 = vsub.f32 %v7209_v3, %v945_v50 }
 0x46f   :  { %v7264_v57 = vpop.eup %6390  ;;  %v612_v60 = vmul.f32 1.442695, %v606_v49 }
 0x470   :  { %v7266_v63 = vpop.eup %6392  ;;  %v962_v6 = vmul.f32 1.442695, %v951_v16  ;;  %v596_v21 = vpop.xlane.xlu1 %595  ;;  %v967_v51 = vsel %vm587_vm6, %v7264_v57, 0.0 }
 0x471   :  { %6396 = vpow2.f32 %v612_v60  ;;  %v608_v36 = vsub.f32 %v7225_v30, %v596_v21  ;;  %968 = vadd.xlane.f32.xlu0 %v967_v51  ;;  %v593_v12 = vpop.xlane.xlu0 %592  ;;  %v964_v22 = vsel %vm587_vm6, %v7266_v63, 0.0 }
 0x472   :  { %6398 = vpow2.f32 %v962_v6  ;;  %v607_v3 = vsub.f32 %v7222_v28, %v593_v12  ;;  %965 = vadd.xlane.f32.xlu1 %v964_v22 }
 0x473   :  { %6400 = vpow2.f32 %v956_v27  ;;  %v616_v5 = vmul.f32 1.442695, %v608_v36 }
 0x474   :  { %v614_v26 = vmul.f32 1.442695, %v607_v3  ;;  %v942_v22 = vpop.xlane.xlu1 %941 }
 0x475   :  { %v599_v24 = vpop.xlane.xlu0 %598  ;;  %v950_v3 = vsub.f32 %v7230_v38, %v942_v22 }
 0x476   :  { %6402 = vpow2.f32 %v614_v26  ;;  %v609_v17 = vsub.f32 %v584_v53, %v599_v24  ;;  %v1482_v24 = vmul.f32 0.35355338, %v7248_v4 }
 0x477   :  { %6404 = vpow2.f32 %v616_v5  ;;  %v960_v5 = vmul.f32 1.442695, %v950_v3 }
 0x478   :  { %v7274_v31 = vpop.eup %6394  ;;  %v618_v25 = vmul.f32 1.442695, %v609_v17  ;;  %v7330_v17 = vadd.f32 %v1482_v24, %v7168_v19  ;;  %v602_v4 = vpop.xlane.xlu1 %601 }
 0x479   :  { %v605_v30 = vpop.xlane.xlu0 %604  ;;  %v973_v11 = vsel %vm587_vm6, %v7274_v31, 0.0 }
 0x47a   :  { %6406 = vpow2.f32 %v618_v25  ;;  %v611_v33 = vsub.f32 %v586_v61, %v605_v30  ;;  %974 = vadd.xlane.f32.xlu0 %v973_v11  ;;  %v1485_v25 = vmul.f32 0.35355338, %v7250_v13  ;;  %v1494_v30 = vsel %vm587_vm6, %v7330_v17, -inf }
 0x47b   :  { %v7278_v35 = vpop.eup %6396 }
 0x47c   :  { %v7280_v28 = vpop.eup %6398  ;;  %v622_v48 = vmul.f32 1.442695, %v611_v33  ;;  %v624_v49 = vsel %vm587_vm6, %v7278_v35, 0.0  ;;  %v1486_v33 = vmul.f32 0.35355338, %v7256_v20 }
 0x47d   :  { %v7284_v53 = vpop.eup %6400  ;;  %v979_v50 = vsel %vm587_vm6, %v7280_v28, 0.0  ;;  %625 = vadd.xlane.f32.xlu1 %v624_v49  ;;  %v610_v49 = vsub.f32 %v7238_v58, %v602_v4 }
 0x47e   :  { %6408 = vpow2.f32 %v622_v48  ;;  %980 = vadd.xlane.f32.xlu0 %v979_v50  ;;  %v970_v61 = vsel %vm587_vm6, %v7284_v53, 0.0  ;;  %v7348_v50 = vadd.f32 %v1486_v33, %v7215_v18 }
 0x47f   :  { %6410 = vpow2.f32 %v960_v5 }
 0x480   :  { %v7288_v16 = vpop.eup %6402  ;;  %v1506_v20 = vsel %vm587_vm6, %v7348_v50, -inf }
 0x481   :  { %v7292_v27 = vpop.eup %6404  ;;  %v627_v60 = vsel %vm587_vm6, %v7288_v16, 0.0  ;;  %971 = vadd.xlane.f32.xlu1 %v970_v61  ;;  %v620_v61 = vmul.f32 1.442695, %v610_v49 }
 0x482   :  { %628 = vadd.xlane.f32.xlu0 %v627_v60  ;;  %v630_v21 = vsel %vm587_vm6, %v7292_v27, 0.0 }
 0x483   :  { %6412 = vpow2.f32 %v620_v61  ;;  %v1487_v61 = vmul.f32 0.35355338, %v7254_v37 }
 0x484   :  { %v7296_v6 = vpop.eup %6406 }
 0x485   :  { %v633_v51 = vsel %vm587_vm6, %v7296_v6, 0.0  ;;  %631 = vadd.xlane.f32.xlu1 %v630_v21 }
 0x486   :  { %634 = vadd.xlane.f32.xlu0 %v633_v51 }
 0x488   :  { %v7302_v36 = vpop.eup %6408 }
 0x489   :  { %v639_v12 = vsel %vm587_vm6, %v7302_v36, 0.0  ;;  %v7321_v38 = vpop.eup %6410 }
 0x48a   :  { %640 = vadd.xlane.f32.xlu0 %v639_v12  ;;  %v976_v26 = vsel %vm587_vm6, %v7321_v38, 0.0 }
 0x48d   :  { %v7352_v60 = vpop.eup %6412 }
 0x48e   :  { %v636_v21 = vsel %vm587_vm6, %v7352_v60, 0.0 }
 0x496   :  { %1560 = vrot.lane.b32.xlu1 %v6877_v40, %s6669_s24 }
 0x4a0   :  { %1562 = vrot.lane.b32.xlu0 %v6875_v39, %s6669_s24 }
 0x4a4   :  { %1570 = vrot.lane.b32.xlu0 %v6909_v45, %s6669_s24 }
 0x4a8   :  { %6307 = vrot.lane.b32.xlu0 %v6895_v44, %s8540_s5  ;;  %v1484_v44 = vmul.f32 0.35355338, %v7252_v15  ;;  %v7342_v15 = vadd.f32 %v1485_v25, %v7191_v32 }
 0x4aa   :  { %v7336_v11 = vadd.f32 %v1484_v44, %v7185_v29  ;;  %v1503_v13 = vsel %vm587_vm6, %v7342_v15, -inf }
 0x4ac   :  { %1798 = vrot.lane.b32.xlu0 %v6877_v40, %s8538_s25  ;;  %v1500_v48 = vsel %vm587_vm6, %v7336_v11, -inf }
 0x4b0   :  { %1802 = vrot.lane.b32.xlu0 %v6891_v43, %s8538_s25 }
 0x4b4   :  { %1806 = vrot.lane.b32.xlu0 %v6913_v46, %s8538_s25 }
 0x4ba   :  { %977 = vadd.xlane.f32.xlu1 %v976_v26 }
 0x4cb   :  { %1564 = vrot.lane.b32.xlu1 %v6891_v43, %s6669_s24 }
 0x4d3   :  { %1495 = vmax.xlane.f32.xlu0 %v1494_v30 }
 0x4d7   :  { %1501 = vmax.xlane.f32.xlu0 %v1500_v48 }
 0x4db   :  { %1504 = vmax.xlane.f32.xlu0 %v1503_v13  ;;  %v1483_v13 = vmul.f32 0.35355338, %v7246_v7 }
 0x4df   :  { %1507 = vmax.xlane.f32.xlu0 %v1506_v20  ;;  %v7403_v20 = vadd.f32 %v1487_v61, %v7203_v55 }
 0x4ef   :  { %637 = vadd.xlane.f32.xlu1 %v636_v21 }
 0x4fe   :  { %v969_v58 = vpop.xlane.xlu0 %968 }
 0x4ff   :  { %6414 = vrcp.f32 %v969_v58  ;;  %v966_v51 = vpop.xlane.xlu1 %965  ;;  %v1509_v58 = vsel %vm587_vm6, %v7403_v20, -inf }
 0x500   :  { %6416 = vrcp.f32 %v966_v51  ;;  %1566 = vrot.lane.b32.xlu1 %v6889_v42, %s6669_s24 }
 0x504   :  { %1568 = vrot.lane.b32.xlu1 %v6913_v46, %s6669_s24 }
 0x507   :  { %v975_v12 = vpop.xlane.xlu0 %974 }
 0x508   :  { %6302 = vrot.lane.b32.xlu1 %v6885_v41, %s8540_s5  ;;  %6418 = vrcp.f32 %v975_v12 }
 0x509   :  { %v6415_v22 = vpop.eup %6414 }
 0x50a   :  { %v6417_v3 = vpop.eup %6416  ;;  %v626_v5 = vpop.xlane.xlu1 %625  ;;  %v989_v44 = vmul.f32 %v6415_v22, %v7264_v57 }
 0x50b   :  { %v981_v26 = vpop.xlane.xlu0 %980  ;;  %v988_v24 = vmul.f32 %v6417_v3, %v7266_v63 }
 0x50c   :  { %6312 = vrot.lane.b32.xlu1 %v6917_v47, %s8540_s5  ;;  %v205_v47 = vld [vmem:[%s8524_s6 + $0x10] sm:$0xff]  ;;  %s6673_s5 = smov 32  }
 0x50d   :  { %5501 = vmatprep.mubr.msk.f32.mxu1 %vm587_vm6, %v988_v24 }
 0x50e   :  { %5502 = vmatmul.mubr.msk.f32.vlgmr.msra.gmra.mrb[6].mxu1 %vm587_vm6, %v989_v44  ;;  %v972_v25 = vpop.xlane.xlu1 %971 }
 0x50f   :  { %5966 = vmatpush3.bf16.msra.mxu1 %v7048_v59  ;;  %v629_v41 = vpop.xlane.xlu0 %628  ;;  %6420 = vrcp.f32 %v972_v25 }
 0x510   :  { %5968 = vmatprep.subr.bf16.mxu1 %v7050_v62  ;;  %1800 = vrot.lane.b32.xlu1 %v6875_v39, %s8538_s25  ;;  %6422 = vrcp.f32 %v626_v5 }
 0x511   :  { %6424 = vrcp.f32 %v981_v26 }
 0x512   :  { %v6419_v63 = vpop.eup %6418  ;;  %v632_v21 = vpop.xlane.xlu1 %631 }
 0x513   :  { %5970 = vmatpush3.bf16.msra.mxu1 %v7050_v62  ;;  %v635_v57 = vpop.xlane.xlu0 %634  ;;  %v991_v4 = vmul.f32 %v6419_v63, %v7274_v31 }
 0x514   :  { %5972 = vmatprep.subr.bf16.mxu1 %v7143_v54  ;;  %1804 = vrot.lane.b32.xlu1 %v6889_v42, %s8538_s25 }
 0x516   :  { %v7407_v51 = vpop.permute.xlu1 %1560 }
 0x517   :  { %5974 = vmatpush3.bf16.msra.mxu1 %v7143_v54  ;;  %v7380_v59 = vpop.xlane.xlu0 %640 }
 0x518   :  { %1808 = vrot.lane.b32.xlu1 %v6909_v45, %s8538_s25  ;;  %5552 = vmatprep.subr.mxu1 %v205_v47  ;;  %s8550_s25 = smov 40  }
 0x519   :  { %v6421_v62 = vpop.eup %6420 }
 0x51a   :  { %v990_v30 = vmul.f32 %v6421_v62, %v7284_v53  ;;  %v7398_v53 = vadd.f32 %v1483_v13, %v7165_v9  ;;  %v6423_v37 = vpop.eup %6422 }
 0x51b   :  { %v7385_v33 = vpop.permute.xlu0 %1562  ;;  %v6425_v12 = vpop.eup %6424  ;;  %v648_v25 = vmul.f32 %v6423_v37, %v7278_v35 }
 0x51c   :  { %5504 = vmatprep.mubr.msk.f32.mxu1 %vm587_vm6, %v990_v30  ;;  %v1497_v31 = vsel %vm587_vm6, %v7398_v53, -inf  ;;  %v993_v24 = vmul.f32 %v6425_v12, %v7280_v28 }
 0x51d   :  { %5505 = vmatmul.mubr.msk.f32.gmra.mrb[8].mxu1 %vm587_vm6, %v991_v4 }
 0x51f   :  { %v7390_v48 = vpop.permute.xlu0 %1570 }
 0x523   :  { %v7392_v54 = vpop.permute.xlu0 %6307 }
 0x527   :  { %v1799_v49 = vpop.permute.xlu0 %1798 }
 0x528   :  { %5596 = vmatprep.mubr.msk.f32.mxu0 %vm455_vm1, %v1799_v49 }
 0x52b   :  { %v7413_v5 = vpop.permute.xlu0 %1802 }
 0x52f   :  { %v7421_v28 = vpop.permute.xlu0 %1806 }
 0x53c   :  { %1498 = vmax.xlane.f32.xlu1 %v1497_v31 }
 0x540   :  { %1510 = vmax.xlane.f32.xlu1 %v1509_v58 }
 0x547   :  { %v978_v7 = vpop.xlane.xlu1 %977 }
 0x548   :  { %6426 = vrcp.f32 %v978_v7 }
 0x549   :  { %6428 = vrcp.f32 %v629_v41 }
 0x54a   :  { %6430 = vrcp.f32 %v632_v21 }
 0x54b   :  { %6432 = vrcp.f32 %v635_v57  ;;  %v1565_v21 = vpop.permute.xlu1 %1564 }
 0x552   :  { %v6427_v22 = vpop.eup %6426 }
 0x553   :  { %v992_v3 = vmul.f32 %v6427_v22, %v7321_v38  ;;  %v6429_v44 = vpop.eup %6428 }
 0x554   :  { %v6431_v63 = vpop.eup %6430  ;;  %v649_v26 = vmul.f32 %v6429_v44, %v7288_v16 }
 0x555   :  { %5507 = vmatprep.mubr.msk.f32.mxu1 %vm587_vm6, %v992_v3  ;;  %v6433_v41 = vpop.eup %6432  ;;  %v650_v57 = vmul.f32 %v6431_v63, %v7292_v27  ;;  %v6310_v63 = vunpack.i.h.bf16 %v7392_v54 }
 0x556   :  { %5508 = vmatmul.mubr.msk.f32.gmra.mrb[10].mxu1 %vm587_vm6, %v993_v24  ;;  %v651_v35 = vmul.f32 %v6433_v41, %v7296_v6 }
 0x557   :  { %5522 = vmatprep.mubr.msk.f32.mxu1 %vm587_vm6, %v648_v25 }
 0x55a   :  { %5523 = vmatmul.mubr.msk.f32.vlgmr.msra.gmra.mrb[6].mxu1 %vm587_vm6, %v649_v26  ;;  %v6309_v26 = vunpack.i.l.bf16 %v7392_v54 }
 0x55b   :  { %5525 = vmatprep.mubr.msk.f32.mxu1 %vm587_vm6, %v650_v57  ;;  %5553 = vmatpush3.msra.mxu1 %v205_v47 }
 0x55e   :  { %5526 = vmatmul.mubr.msk.f32.gmra.mrb[8].mxu1 %vm587_vm6, %v651_v35  ;;  %v6011_v35 = vpack.c.bf16 %v6310_v63, %v6309_v26 }
 0x560   :  { %v1496_v38 = vpop.xlane.xlu0 %1495 }
 0x561   :  { %v1512_v62 = vsub.f32 %v7330_v17, %v1496_v38 }
 0x563   :  { %v1518_v30 = vmul.f32 1.442695, %v1512_v62 }
 0x564   :  { %v1502_v4 = vpop.xlane.xlu0 %1501 }
 0x565   :  { %6434 = vpow2.f32 %v1518_v30  ;;  %v1514_v16 = vsub.f32 %v7336_v11, %v1502_v4 }
 0x567   :  { %v1522_v27 = vmul.f32 1.442695, %v1514_v16 }
 0x568   :  { %v7427_v49 = vpop.xlane.xlu0 %1504 }
 0x569   :  { %6436 = vpow2.f32 %v1522_v27 }
 0x56c   :  { %v1508_v13 = vpop.xlane.xlu0 %1507 }
 0x56d   :  { %v1516_v47 = vsub.f32 %v7348_v50, %v1508_v13 }
 0x56f   :  { %v7430_v61 = vpop.eup %6434  ;;  %v1526_v6 = vmul.f32 1.442695, %v1516_v47 }
 0x570   :  { %v1530_v31 = vsel %vm587_vm6, %v7430_v61, 0.0 }
 0x571   :  { %6438 = vpow2.f32 %v1526_v6  ;;  %1531 = vadd.xlane.f32.xlu0 %v1530_v31 }
 0x572   :  { %6440 = vrcp.f32 %v7380_v59 }
 0x573   :  { %v7434_v17 = vpop.eup %6436 }
 0x574   :  { %v1536_v11 = vsel %vm587_vm6, %v7434_v17, 0.0 }
 0x575   :  { %1537 = vadd.xlane.f32.xlu0 %v1536_v11 }
 0x57b   :  { %v7438_v58 = vpop.eup %6438 }
 0x57c   :  { %v1542_v50 = vsel %vm587_vm6, %v7438_v58, 0.0  ;;  %v638_v7 = vpop.xlane.xlu1 %637  ;;  %v6441_v22 = vpop.eup %6440 }
 0x57d   :  { %1543 = vadd.xlane.f32.xlu0 %v1542_v50  ;;  %6442 = vrcp.f32 %v638_v7  ;;  %v653_v25 = vmul.f32 %v6441_v22, %v7302_v36 }
 0x580   :  { %v1567_v37 = vpop.permute.xlu1 %1566 }
 0x584   :  { %v1569_v12 = vpop.permute.xlu1 %1568 }
 0x587   :  { %v6443_v3 = vpop.eup %6442 }
 0x588   :  { %v6303_v24 = vpop.permute.xlu1 %6302  ;;  %v652_v44 = vmul.f32 %v6443_v3, %v7352_v60 }
 0x589   :  { %v6305_v59 = vunpack.i.h.bf16 %v6303_v24  ;;  %v6304_v41 = vunpack.i.l.bf16 %v6303_v24  ;;  %v206_v24 = vld [vmem:[%s8524_s6 + $0x18] sm:$0xff] }
 0x58a   :  { %5528 = vmatprep.mubr.msk.f32.mxu1 %vm587_vm6, %v652_v44 }
 0x58b   :  { %v6005_v57 = vpack.c.bf16 %v6305_v59, %v6304_v41  ;;  %5529 = vmatmul.mubr.msk.f32.gmra.mrb[10].mxu1 %vm587_vm6, %v653_v25 }
 0x58c   :  { %5554 = vmatprep.mubr.msk.f32.mxu1 %vm455_vm1, %v7407_v51  ;;  %v6313_v36 = vpop.permute.xlu1 %6312 }
 0x58d   :  { %6007 = vmatprep.subr.msk.bf16.mxu0 %vm6970_vm2, %v6005_v57  ;;  %v6315_v60 = vunpack.i.h.bf16 %v6313_v36  ;;  %v6314_v54 = vunpack.i.l.bf16 %v6313_v36 }
 0x58e   :  { %6010 = vmatpush3.bf16.xpose.msk.msra.mxu0 %vm6970_vm2, %v6005_v57 }
 0x58f   :  { %5555 = vmatmul.mubr.msk.f32.vlgmr.msra.gmra.mrb[12].mxu1 %vm455_vm1, %v7385_v33  ;;  %6013 = vmatprep.subr.msk.bf16.mxu0 %vm6970_vm2, %v6011_v35  ;;  %v6017_v51 = vpack.c.bf16 %v6315_v60, %v6314_v54 }
 0x590   :  { %5557 = vmatprep.mubr.msk.f32.mxu1 %vm455_vm1, %v1565_v21 }
 0x593   :  { %2019 = vrot.lane.b32.xlu0 %v6877_v40, %s8536_s1  ;;  %5558 = vmatmul.mubr.msk.f32.gmra.mrb[14].mxu1 %vm455_vm1, %v1567_v37  ;;  %v1801_v40 = vpop.permute.xlu1 %1800 }
 0x594   :  { %5560 = vmatprep.mubr.msk.f32.mxu1 %vm455_vm1, %v1569_v12 }
 0x596   :  { %6016 = vmatpush3.bf16.xpose.msk.msra.mxu0 %vm6970_vm2, %v6011_v35 }
 0x597   :  { %2027 = vrot.lane.b32.xlu0 %v6913_v46, %s8536_s1  ;;  %5561 = vmatmul.mubr.msk.f32.gmra.mrb[16].mxu1 %vm455_vm1, %v7390_v48  ;;  %v1805_v33 = vpop.permute.xlu1 %1804  ;;  %v1515_v48 = vsub.f32 %v7342_v15, %v7427_v49 }
 0x598   :  { %6019 = vmatprep.subr.msk.bf16.mxu0 %vm6970_vm2, %v6017_v51 }
 0x599   :  { %v1524_v30 = vmul.f32 1.442695, %v1515_v48 }
 0x59b   :  { %v1809_v46 = vpop.permute.xlu1 %1808 }
 0x59e   :  { %6022 = vmatpush3.bf16.xpose.msk.msra.mxu0 %vm6970_vm2, %v6017_v51 }
 0x5a5   :  { %5597 = vmatmul.mubr.msk.f32.vlgmr.msra.gmra.mrb[30].mxu0 %vm455_vm1, %v1801_v40 }
 0x5a6   :  { %5599 = vmatprep.mubr.msk.f32.mxu0 %vm455_vm1, %v7413_v5 }
 0x5a9   :  { %5600 = vmatmul.mubr.msk.f32.gmra.mrb[32].mxu0 %vm455_vm1, %v1805_v33 }
 0x5aa   :  { %5602 = vmatprep.mubr.msk.f32.mxu0 %vm455_vm1, %v7421_v28 }
 0x5ad   :  { %5603 = vmatmul.mubr.msk.f32.gmra.mrb[34].mxu0 %vm455_vm1, %v1809_v46 }
 0x5c9   :  { %v1499_v38 = vpop.xlane.xlu1 %1498 }
 0x5ca   :  { %v1513_v62 = vsub.f32 %v7398_v53, %v1499_v38 }
 0x5cc   :  { %v1520_v4 = vmul.f32 1.442695, %v1513_v62 }
 0x5cd   :  { %v1511_v16 = vpop.xlane.xlu1 %1510 }
 0x5ce   :  { %6444 = vpow2.f32 %v1520_v4  ;;  %v1517_v5 = vsub.f32 %v7403_v20, %v1511_v16 }
 0x5cf   :  { %6446 = vpow2.f32 %v1524_v30 }
 0x5d0   :  { %v1528_v27 = vmul.f32 1.442695, %v1517_v5 }
 0x5d2   :  { %6448 = vpow2.f32 %v1528_v27 }
 0x5d8   :  { %v6445_v13 = vpop.eup %6444 }
 0x5d9   :  { %v1533_v28 = vsel %vm587_vm6, %v6445_v13, 0.0  ;;  %v6447_v47 = vpop.eup %6446 }
 0x5da   :  { %1534 = vadd.xlane.f32.xlu1 %v1533_v28  ;;  %v1539_v6 = vsel %vm587_vm6, %v6447_v47, 0.0 }
 0x5dc   :  { %v6449_v15 = vpop.eup %6448 }
 0x5dd   :  { %v1545_v53 = vsel %vm587_vm6, %v6449_v15, 0.0 }
 0x5de   :  { %1540 = vadd.xlane.f32.xlu1 %v1539_v6 }
 0x5e2   :  { %1546 = vadd.xlane.f32.xlu1 %v1545_v53 }
 0x5f3   :  { %2021 = vrot.lane.b32.xlu1 %v6875_v39, %s8536_s1 }
 0x5f7   :  { %2023 = vrot.lane.b32.xlu1 %v6891_v43, %s8536_s1 }
 0x5fb   :  { %2025 = vrot.lane.b32.xlu1 %v6889_v42, %s8536_s1 }
 0x5fe   :  { %v1532_v20 = vpop.xlane.xlu0 %1531 }
 0x5ff   :  { %6450 = vrcp.f32 %v1532_v20  ;;  %2029 = vrot.lane.b32.xlu1 %v6909_v45, %s8536_s1 }
 0x602   :  { %v1538_v50 = vpop.xlane.xlu0 %1537 }
 0x603   :  { %6452 = vrcp.f32 %v1538_v50 }
 0x609   :  { %v6451_v49 = vpop.eup %6450 }
 0x60a   :  { %v1554_v31 = vmul.f32 %v6451_v49, %v7430_v61  ;;  %v1544_v37 = vpop.xlane.xlu0 %1543 }
 0x60c   :  { %5575 = vmatprep.mubr.msk.f32.mxu1 %vm587_vm6, %v1554_v31 }
 0x60d   :  { %v6453_v25 = vpop.eup %6452 }
 0x60e   :  { %v1556_v59 = vmul.f32 %v6453_v25, %v7434_v17  ;;  %v2020_v4 = vpop.permute.xlu0 %2019 }
 0x612   :  { %v2028_v31 = vpop.permute.xlu0 %2027 }
 0x662   :  { %v5556_v11 = vpop.f32.mrb[12].mxu1 }
 0x663   :  { %v1650_v21 = vpop.f32.mrb[13].mxu1 }
 0x664   :  { %v5993_v39 = vpack.c.bf16 %v5556_v11, %v1650_v21 }
 0x666   :  { %v5559_v7 = vpop.f32.mrb[14].mxu1  ;;  %5994 = vmatprep.subr.bf16.mxu1 %v5993_v39 }
 0x667   :  { %v1660_v43 = vpop.f32.mrb[15].mxu1  ;;  %5996 = vmatpush3.bf16.msra.mxu1 %v5993_v39  ;;  %v1535_v42 = vpop.xlane.xlu1 %1534 }
 0x668   :  { %v5997_v12 = vpack.c.bf16 %v5559_v7, %v1660_v43  ;;  %6454 = vrcp.f32 %v1535_v42 }
 0x669   :  { %6456 = vrcp.f32 %v1544_v37 }
 0x66a   :  { %v5562_v22 = vpop.f32.mrb[16].mxu1  ;;  %5998 = vmatprep.subr.bf16.mxu1 %v5997_v12 }
 0x66b   :  { %v1670_v45 = vpop.f32.mrb[17].mxu1  ;;  %6000 = vmatpush3.bf16.msra.mxu1 %v5997_v12  ;;  %v1541_v61 = vpop.xlane.xlu1 %1540 }
 0x66c   :  { %v6001_v3 = vpack.c.bf16 %v5562_v22, %v1670_v45  ;;  %6458 = vrcp.f32 %v1541_v61 }
 0x66e   :  { %6002 = vmatprep.subr.bf16.mxu1 %v6001_v3 }
 0x66f   :  { %6004 = vmatpush3.bf16.msra.mxu1 %v6001_v3  ;;  %v1547_v44 = vpop.xlane.xlu1 %1546 }
 0x670   :  { %6460 = vrcp.f32 %v1547_v44  ;;  %5605 = vmatprep.subr.mxu1 %v206_v24 }
 0x672   :  { %v6455_v63 = vpop.eup %6454 }
 0x673   :  { %v1555_v26 = vmul.f32 %v6455_v63, %v6445_v13  ;;  %v6457_v41 = vpop.eup %6456  ;;  %v2022_v35 = vpop.permute.xlu1 %2021 }
 0x674   :  { %v1558_v54 = vmul.f32 %v6457_v41, %v7438_v58 }
 0x675   :  { %5576 = vmatmul.mubr.msk.f32.vlgmr.msra.gmra.mrb[6].mxu1 %vm587_vm6, %v1555_v26 }
 0x676   :  { %v6459_v57 = vpop.eup %6458  ;;  %5578 = vmatprep.mubr.msk.f32.mxu1 %vm587_vm6, %v1556_v59  ;;  %5606 = vmatpush3.msra.mxu1 %v206_v24 }
 0x677   :  { %v1557_v36 = vmul.f32 %v6459_v57, %v6447_v47  ;;  %v2024_v38 = vpop.permute.xlu1 %2023 }
 0x678   :  { %v5598_v60 = vpop.f32.mrb[30].mxu0 }
 0x679   :  { %v1942_v51 = vmul.f32 0.35355338, %v5598_v60  ;;  %5579 = vmatmul.mubr.msk.f32.gmra.mrb[8].mxu1 %vm587_vm6, %v1557_v36  ;;  %v1912_v40 = vpop.f32.mrb[31].mxu0 }
 0x67a   :  { %v6461_v33 = vpop.eup %6460  ;;  %v1941_v46 = vmul.f32 0.35355338, %v1912_v40  ;;  %5581 = vmatprep.mubr.msk.f32.mxu1 %vm587_vm6, %v1558_v54 }
 0x67b   :  { %v1948_v17 = vadd.f32 %v1942_v51, %v7165_v9  ;;  %v1559_v48 = vmul.f32 %v6461_v33, %v6449_v15  ;;  %v2026_v6 = vpop.permute.xlu1 %2025 }
 0x67c   :  { %v1947_v62 = vadd.f32 %v1941_v46, %v7168_v19  ;;  %v5601_v30 = vpop.f32.mrb[32].mxu0 }
 0x67d   :  { %5582 = vmatmul.mubr.msk.f32.gmra.mrb[10].mxu1 %vm587_vm6, %v1559_v48  ;;  %v1922_v16 = vpop.f32.mrb[33].mxu0  ;;  %v1956_v58 = vsel %vm587_vm6, %v1948_v17, -inf  ;;  %v1944_v5 = vmul.f32 0.35355338, %v5601_v30 }
 0x67e   :  { %v1943_v27 = vmul.f32 0.35355338, %v1922_v16  ;;  %5607 = vmatprep.mubr.msk.f32.mxu1 %vm455_vm1, %v2020_v4  ;;  %1957 = vmax.xlane.f32.xlu1 %v1956_v58  ;;  %v1953_v13 = vsel %vm587_vm6, %v1947_v62, -inf  ;;  %v2275_v4 = vld [vmem:[%s8522_s4] sm:$0xff] }
 0x67f   :  { %1954 = vmax.xlane.f32.xlu0 %v1953_v13  ;;  %v1950_v15 = vadd.f32 %v1944_v5, %v7191_v32  ;;  %v2030_v21 = vpop.permute.xlu1 %2029  ;;  %v2281_v16 = vadd.f32 1.0, %v2275_v4  ;;  %v2278_v5 = vld [vmem:[%s8522_s4 + $0x18] sm:$0xff]  ;;  %v2279_v13 = vld [vmem:[%s8522_s4 + $0x20] sm:$0xff] }
 0x680   :  { %v1949_v9 = vadd.f32 %v1943_v27, %v7185_v29  ;;  %v5604_v28 = vpop.f32.mrb[34].mxu0  ;;  %v2284_v27 = vadd.f32 1.0, %v2278_v5 }
 0x681   :  { %v1946_v47 = vmul.f32 0.35355338, %v5604_v28  ;;  %v1932_v19 = vpop.f32.mrb[35].mxu0  ;;  %5608 = vmatmul.mubr.msk.f32.vlgmr.msra.gmra.mrb[18].mxu1 %vm455_vm1, %v2022_v35  ;;  %v1962_v32 = vsel %vm587_vm6, %v1950_v15, -inf  ;;  %v2285_v28 = vadd.f32 1.0, %v2279_v13 }
 0x682   :  { %v1945_v53 = vmul.f32 0.35355338, %v1932_v19  ;;  %5610 = vmatprep.mubr.msk.f32.mxu1 %vm455_vm1, %v2024_v38  ;;  %v1959_v20 = vsel %vm587_vm6, %v1949_v9, -inf  ;;  %v2276_v38 = vld [vmem:[%s8522_s4 + $0x8] sm:$0xff] }
 0x683   :  { %v1952_v49 = vadd.f32 %v1946_v47, %v7203_v55  ;;  %1960 = vmax.xlane.f32.xlu0 %v1959_v20  ;;  %v2282_v30 = vadd.f32 1.0, %v2276_v38  ;;  %v2280_v47 = vld [vmem:[%s8522_s4 + $0x28] sm:$0xff] }
 0x684   :  { %v1951_v11 = vadd.f32 %v1945_v53, %v7215_v18  ;;  %v6619_v19 = vld [vmem:[%s8521_s3 + $0x8] sm:$0xff]  ;;  %v2286_v53 = vadd.f32 1.0, %v2280_v47 }
 0x685   :  { %5611 = vmatmul.mubr.msk.f32.gmra.mrb[20].mxu1 %vm455_vm1, %v2026_v6  ;;  %v1968_v29 = vsel %vm587_vm6, %v1952_v49, -inf }
 0x686   :  { %5613 = vmatprep.mubr.msk.f32.mxu1 %vm455_vm1, %v2028_v31  ;;  %1969 = vmax.xlane.f32.xlu1 %v1968_v29  ;;  %v1965_v50 = vsel %vm587_vm6, %v1951_v11, -inf }
 0x687   :  { %1963 = vmax.xlane.f32.xlu0 %v1962_v32 }
 0x689   :  { %5614 = vmatmul.mubr.msk.f32.gmra.mrb[22].mxu1 %vm455_vm1, %v2030_v21 }
 0x68b   :  { %1966 = vmax.xlane.f32.xlu0 %v1965_v50  ;;  %v7581_v50 = vld [vmem:[%s8521_s3 + $0x10] sm:$0xff] }
 0x70b   :  { %v1958_v55 = vpop.xlane.xlu1 %1957 }
 0x70c   :  { %v1972_v39 = vsub.f32 %v1948_v17, %v1958_v55  ;;  %v1955_v7 = vpop.xlane.xlu0 %1954 }
 0x70d   :  { %v1971_v43 = vsub.f32 %v1947_v62, %v1955_v7  ;;  %v2277_v62 = vld [vmem:[%s8522_s4 + $0x10] sm:$0xff] }
 0x70e   :  { %v1979_v42 = vmul.f32 1.442695, %v1972_v39  ;;  %v2283_v58 = vadd.f32 1.0, %v2277_v62 }
 0x70f   :  { %v1977_v37 = vmul.f32 1.442695, %v1971_v43 }
 0x710   :  { %6462 = vpow2.f32 %v1979_v42  ;;  %v1961_v18 = vpop.xlane.xlu0 %1960 }
 0x711   :  { %6464 = vpow2.f32 %v1977_v37  ;;  %v1973_v12 = vsub.f32 %v1949_v9, %v1961_v18  ;;  %v6618_v9 = vld [vmem:[%s8521_s3] sm:$0xff] }
 0x713   :  { %v1981_v22 = vmul.f32 1.442695, %v1973_v12  ;;  %v1970_v45 = vpop.xlane.xlu1 %1969 }
 0x714   :  { %v1976_v61 = vsub.f32 %v1952_v49, %v1970_v45  ;;  %v1964_v3 = vpop.xlane.xlu0 %1963 }
 0x715   :  { %6466 = vpow2.f32 %v1981_v22  ;;  %v1974_v24 = vsub.f32 %v1950_v15, %v1964_v3 }
 0x716   :  { %v1987_v44 = vmul.f32 1.442695, %v1976_v61 }
 0x717   :  { %v1983_v25 = vmul.f32 1.442695, %v1974_v24 }
 0x718   :  { %v1967_v63 = vpop.xlane.xlu0 %1966 }
 0x719   :  { %6468 = vpow2.f32 %v1983_v25  ;;  %v1975_v26 = vsub.f32 %v1951_v11, %v1967_v63 }
 0x71a   :  { %v7526_v59 = vpop.eup %6462  ;;  %6470 = vpow2.f32 %v1987_v44 }
 0x71b   :  { %v7528_v41 = vpop.eup %6464  ;;  %v1985_v57 = vmul.f32 1.442695, %v1975_v26  ;;  %v1992_v35 = vsel %vm587_vm6, %v7526_v59, 0.0 }
 0x71c   :  { %1993 = vadd.xlane.f32.xlu1 %v1992_v35  ;;  %v1989_v36 = vsel %vm587_vm6, %v7528_v41, 0.0 }
 0x71d   :  { %6472 = vpow2.f32 %v1985_v57  ;;  %1990 = vadd.xlane.f32.xlu0 %v1989_v36  ;;  %v5003_v57 = vld [vmem:[%s8525_s7] ss:$0 sm:$0xff] }
 0x71f   :  { %v7534_v60 = vpop.eup %6466 }
 0x720   :  { %v1995_v54 = vsel %vm587_vm6, %v7534_v60, 0.0 }
 0x721   :  { %1996 = vadd.xlane.f32.xlu0 %v1995_v54 }
 0x723   :  { %v7538_v51 = vpop.eup %6468 }
 0x724   :  { %v1998_v40 = vsel %vm587_vm6, %v7538_v51, 0.0  ;;  %v7542_v33 = vpop.eup %6470 }
 0x725   :  { %1999 = vadd.xlane.f32.xlu1 %v1998_v40  ;;  %v2004_v17 = vsel %vm587_vm6, %v7542_v33, 0.0  ;;  %v6621_v40 = vld [vmem:[%s8520_s2 + $0x8] sm:$0xff] }
 0x727   :  { %v7544_v46 = vpop.eup %6472 }
 0x728   :  { %v2001_v48 = vsel %vm587_vm6, %v7544_v46, 0.0 }
 0x729   :  { %2005 = vadd.xlane.f32.xlu1 %v2004_v17  ;;  %2002 = vadd.xlane.f32.xlu0 %v2001_v48  ;;  %v6622_v17 = vld [vmem:[%s8520_s2] sm:$0xff] }
 0x73a   :  { %2294 = vperm.xlu1 %6317, %v2282_v30  }
 0x73e   :  { %2299 = vperm.xlu1 %6317, %v2283_v58  }
 0x73f   :  { %2289 = vperm.xlu0 %6316, %v2281_v16  }
 0x742   :  { %2304 = vperm.xlu1 %6317, %v2284_v27  }
 0x743   :  { %2461 = vrot.lane.b32.xlu0 %v6618_v9, %s6661_s26 }
 0x746   :  { %2309 = vperm.xlu1 %6317, %v2285_v28  }
 0x747   :  { %2487 = vrot.lane.b32.xlu0 %v6619_v19, %s6673_s5 }
 0x74a   :  { %2314 = vperm.xlu1 %6317, %v2286_v53  }
 0x74e   :  { %2463 = vrot.lane.b32.xlu1 %v6619_v19, %s6661_s26  ;;  %v6624_v19 = vld [vmem:[%s8520_s2 + $0x10] sm:$0xff] }
 0x752   :  { %2485 = vrot.lane.b32.xlu1 %v6618_v9, %s6673_s5  ;;  %v6623_v9 = vld [vmem:[%s8520_s2 + $0x18] sm:$0xff] }
 0x754   :  { %v5609_v6 = vpop.f32.mrb[18].mxu1 }
 0x755   :  { %v2109_v15 = vpop.f32.mrb[19].mxu1 }
 0x756   :  { %v6023_v20 = vpack.c.bf16 %v5609_v6, %v2109_v15  ;;  %2465 = vrot.lane.b32.xlu1 %v7581_v50, %s6661_s26 }
 0x758   :  { %v5612_v49 = vpop.f32.mrb[20].mxu1  ;;  %6024 = vmatprep.subr.bf16.mxu1 %v6023_v20 }
 0x759   :  { %v2119_v31 = vpop.f32.mrb[21].mxu1  ;;  %6026 = vmatpush3.bf16.msra.mxu1 %v6023_v20 }
 0x75a   :  { %v6027_v29 = vpack.c.bf16 %v5612_v49, %v2119_v31 }
 0x75c   :  { %v5615_v11 = vpop.f32.mrb[22].mxu1  ;;  %6028 = vmatprep.subr.bf16.mxu1 %v6027_v29 }
 0x75d   :  { %v2129_v32 = vpop.f32.mrb[23].mxu1  ;;  %6030 = vmatpush3.bf16.msra.mxu1 %v6027_v29 }
 0x75e   :  { %v6031_v21 = vpack.c.bf16 %v5615_v11, %v2129_v32  ;;  %v6625_v32 = vld [vmem:[%s8520_s2 + $0x28] sm:$0xff] }
 0x760   :  { %6032 = vmatprep.subr.bf16.mxu1 %v6031_v21 }
 0x761   :  { %6034 = vmatpush3.bf16.msra.mxu1 %v6031_v21 }
 0x7a9   :  { %v1994_v55 = vpop.xlane.xlu1 %1993 }
 0x7aa   :  { %6474 = vrcp.f32 %v1994_v55  ;;  %v1991_v39 = vpop.xlane.xlu0 %1990 }
 0x7ab   :  { %6476 = vrcp.f32 %v1991_v39  ;;  %v6626_v39 = vld [vmem:[%s8520_s2 + $0x20] sm:$0xff] }
 0x7ae   :  { %v1997_v7 = vpop.xlane.xlu0 %1996 }
 0x7af   :  { %6478 = vrcp.f32 %v1997_v7 }
 0x7b2   :  { %v2000_v43 = vpop.xlane.xlu1 %1999 }
 0x7b3   :  { %6480 = vrcp.f32 %v2000_v43 }
 0x7b4   :  { %v6475_v42 = vpop.eup %6474 }
 0x7b5   :  { %v6477_v37 = vpop.eup %6476  ;;  %v2014_v45 = vmul.f32 %v6475_v42, %v7526_v59 }
 0x7b6   :  { %v2006_v18 = vpop.xlane.xlu1 %2005  ;;  %v2003_v12 = vpop.xlane.xlu0 %2002  ;;  %v2013_v22 = vmul.f32 %v6477_v37, %v7528_v41 }
 0x7b7   :  { %6482 = vrcp.f32 %v2006_v18 }
 0x7b8   :  { %6484 = vrcp.f32 %v2003_v12  ;;  %5628 = vmatprep.mubr.msk.f32.mxu1 %vm587_vm6, %v2013_v22  ;;  %v6627_v22 = vld [vmem:[%s8521_s3 + $0x18] sm:$0xff] }
 0x7b9   :  { %v6479_v61 = vpop.eup %6478  ;;  %5629 = vmatmul.mubr.msk.f32.vlgmr.msra.gmra.mrb[6].mxu1 %vm587_vm6, %v2014_v45 }
 0x7ba   :  { %v2015_v3 = vmul.f32 %v6479_v61, %v7534_v60  ;;  %v2295_v41 = vpop.permute.xlu1 %2294 }
 0x7bc   :  { %5631 = vmatprep.mubr.msk.f32.mxu1 %vm587_vm6, %v2015_v3 }
 0x7bd   :  { %v6481_v24 = vpop.eup %6480 }
 0x7be   :  { %v2016_v44 = vmul.f32 %v6481_v24, %v7538_v51  ;;  %v2300_v35 = vpop.permute.xlu1 %2299 }
 0x7c0   :  { %5632 = vmatmul.mubr.msk.f32.gmra.mrb[8].mxu1 %vm587_vm6, %v2016_v44 }
 0x7c1   :  { %v6483_v25 = vpop.eup %6482 }
 0x7c2   :  { %v6485_v63 = vpop.eup %6484  ;;  %v2018_v26 = vmul.f32 %v6483_v25, %v7542_v33  ;;  %v2305_v38 = vpop.permute.xlu1 %2304 }
 0x7c3   :  { %v2017_v59 = vmul.f32 %v6485_v63, %v7544_v46  ;;  %v2290_v46 = vpop.permute.xlu0 %2289 }
 0x7c5   :  { %5634 = vmatprep.mubr.msk.f32.mxu1 %vm587_vm6, %v2017_v59 }
 0x7c6   :  { %5635 = vmatmul.mubr.msk.f32.gmra.mrb[10].mxu1 %vm587_vm6, %v2018_v26  ;;  %v2310_v47 = vpop.permute.xlu1 %2309 }
 0x7c7   :  { %v7650_v61 = vpop.permute.xlu0 %2461 }
 0x7ca   :  { %v2315_v55 = vpop.permute.xlu1 %2314 }
 0x7cb   :  { %v7654_v24 = vpop.permute.xlu0 %2487 }
 0x7ce   :  { %v7648_v45 = vpop.permute.xlu1 %2463 }
 0x7d2   :  { %v7652_v3 = vpop.permute.xlu1 %2485 }
 0x7d6   :  { %v7656_v44 = vpop.permute.xlu1 %2465 }
 0x88c   :  { %v5630_v36 = vpop.f32.mrb[6].mxu1 }
 0x88d   :  { %v2264_v60 = vadd.f32 %v5630_v36, %v5003_v57  ;;  %v2222_v54 = vpop.f32.mrb[7].mxu1 }
 0x88e   :  { %v2263_v51 = vadd.f32 %v5003_v57, %v2222_v54 }
 0x88f   :  { %v2270_v33 = vadd.f32 %v6621_v40, %v2264_v60 }
 0x890   :  { %v2269_v48 = vadd.f32 %v6622_v17, %v2263_v51 }
 0x891   :  { %v7606_v62 = vmul.f32 %v2295_v41, %v2270_v33 }
 0x892   :  { %v7608_v30 = vmul.f32 %v2290_v46, %v2269_v48 }
 0x893   :  { %v5633_v4 = vpop.f32.mrb[8].mxu1  ;;  %v2386_v16 = vsel %vm208_vm0, %v7606_v62, 0.0 }
 0x894   :  { %v2266_v58 = vadd.f32 %v5633_v4, %v5003_v57  ;;  %2387 = vadd.xlane.f32.xlu0 %v2386_v16  ;;  %v2232_v5 = vpop.f32.mrb[9].mxu1  ;;  %v2383_v27 = vsel %vm208_vm0, %v7608_v30, 0.0 }
 0x895   :  { %v2265_v13 = vadd.f32 %v5003_v57, %v2232_v5  ;;  %2384 = vadd.xlane.f32.xlu1 %v2383_v27  ;;  %v2374_v5 = vld [vmem:[%s8526_s8] sm:$0xff]  ;;  %v2375_v27 = vld [vmem:[%s8526_s8 + $0x8] sm:$0xff] }
 0x896   :  { %v2272_v28 = vadd.f32 %v6623_v9, %v2266_v58  ;;  %v6628_v58 = vld [vmem:[%s8521_s3 + $0x20] sm:$0xff]  ;;  %v2376_v9 = vld [vmem:[%s8526_s8 + $0x10] sm:$0xff] }
 0x897   :  { %v2271_v6 = vadd.f32 %v6624_v19, %v2265_v13  ;;  %v6035_v13 = vpack.c.bf16 %v2375_v27, %v2374_v5 }
 0x898   :  { %v7620_v15 = vmul.f32 %v2305_v38, %v2272_v28  ;;  %v2377_v28 = vld [vmem:[%s8526_s8 + $0x18] sm:$0xff] }
 0x899   :  { %v5636_v53 = vpop.f32.mrb[10].mxu1  ;;  %v7622_v20 = vmul.f32 %v2300_v35, %v2271_v6  ;;  %6036 = vmatprep.subr.bf16.mxu0 %v6035_v13 }
 0x89a   :  { %v2268_v49 = vadd.f32 %v5636_v53, %v5003_v57  ;;  %v2242_v31 = vpop.f32.mrb[11].mxu1  ;;  %v2392_v29 = vsel %vm208_vm0, %v7620_v15, 0.0  ;;  %6038 = vmatpush3.bf16.msra.mxu0 %v6035_v13 }
 0x89b   :  { %v2267_v11 = vadd.f32 %v5003_v57, %v2242_v31  ;;  %2393 = vadd.xlane.f32.xlu1 %v2392_v29  ;;  %v2389_v42 = vsel %vm208_vm0, %v7622_v20, 0.0 }
 0x89c   :  { %v2274_v21 = vadd.f32 %v6625_v32, %v2268_v49 }
 0x89d   :  { %v2273_v7 = vadd.f32 %v6626_v39, %v2267_v11  ;;  %v6629_v39 = vld [vmem:[%s8521_s3 + $0x28] sm:$0xff] }
 0x89e   :  { %v7632_v43 = vmul.f32 %v2315_v55, %v2274_v21 }
 0x89f   :  { %v7636_v37 = vmul.f32 %v2310_v47, %v2273_v7  ;;  %2390 = vadd.xlane.f32.xlu1 %v2389_v42  ;;  %v6039_v47 = vpack.c.bf16 %v2377_v28, %v2376_v9 }
 0x8a0   :  { %v2398_v12 = vsel %vm208_vm0, %v7632_v43, 0.0 }
 0x8a1   :  { %v2395_v18 = vsel %vm208_vm0, %v7636_v37, 0.0  ;;  %6040 = vmatprep.subr.bf16.mxu0 %v6039_v47 }
 0x8a2   :  { %2396 = vadd.xlane.f32.xlu0 %v2395_v18  ;;  %6042 = vmatpush3.bf16.msra.mxu0 %v6039_v47 }
 0x8a3   :  { %2399 = vadd.xlane.f32.xlu1 %v2398_v12 }
 0x8b4   :  { %2489 = vrot.lane.b32.xlu1 %v7581_v50, %s6673_s5 }
 0x8b8   :  { %2467 = vrot.lane.b32.xlu0 %v6627_v22, %s6661_s26 }
 0x921   :  { %v2388_v25 = vpop.xlane.xlu0 %2387 }
 0x922   :  { %v2402_v63 = vmul.f32 0.03125, %v2388_v25  ;;  %v2385_v26 = vpop.xlane.xlu1 %2384 }
 0x923   :  { %v2401_v50 = vmul.f32 0.03125, %v2385_v26 }
 0x924   :  { %v7659_v59 = vsub.f32 %v7606_v62, %v2402_v63 }
 0x925   :  { %v7662_v41 = vsub.f32 %v7608_v30, %v2401_v50 }
 0x926   :  { %v2414_v57 = vmul.f32 %v7659_v59, %v7659_v59 }
 0x927   :  { %v2413_v35 = vmul.f32 %v7662_v41, %v7662_v41 }
 0x928   :  { %v2394_v36 = vpop.xlane.xlu1 %2393  ;;  %v2422_v60 = vsel %vm208_vm0, %v2414_v57, 0.0 }
 0x929   :  { %v2404_v54 = vmul.f32 0.03125, %v2394_v36  ;;  %2423 = vadd.xlane.f32.xlu1 %v2422_v60  ;;  %v2419_v51 = vsel %vm208_vm0, %v2413_v35, 0.0 }
 0x92a   :  { %2420 = vadd.xlane.f32.xlu0 %v2419_v51 }
 0x92b   :  { %v7671_v40 = vsub.f32 %v7620_v15, %v2404_v54 }
 0x92c   :  { %v2391_v33 = vpop.xlane.xlu1 %2390 }
 0x92d   :  { %v2403_v46 = vmul.f32 0.03125, %v2391_v33  ;;  %v2416_v17 = vmul.f32 %v7671_v40, %v7671_v40 }
 0x92f   :  { %v7676_v48 = vsub.f32 %v7622_v20, %v2403_v46  ;;  %v2428_v38 = vsel %vm208_vm0, %v2416_v17, 0.0  ;;  %v2397_v53 = vpop.xlane.xlu0 %2396 }
 0x930   :  { %2429 = vadd.xlane.f32.xlu1 %v2428_v38  ;;  %v2400_v19 = vpop.xlane.xlu1 %2399  ;;  %v2405_v49 = vmul.f32 0.03125, %v2397_v53 }
 0x931   :  { %v2415_v4 = vmul.f32 %v7676_v48, %v7676_v48  ;;  %v2406_v6 = vmul.f32 0.03125, %v2400_v19 }
 0x932   :  { %v7701_v29 = vsub.f32 %v7636_v37, %v2405_v49 }
 0x933   :  { %v2425_v16 = vsel %vm208_vm0, %v2415_v4, 0.0  ;;  %v2412_v31 = vsub.f32 %v7632_v43, %v2406_v6  ;;  %v2468_v42 = vpop.permute.xlu0 %2467 }
 0x934   :  { %2426 = vadd.xlane.f32.xlu0 %v2425_v16  ;;  %v2417_v21 = vmul.f32 %v7701_v29, %v7701_v29  ;;  %v2490_v7 = vpop.permute.xlu1 %2489 }
 0x935   :  { %v2418_v11 = vmul.f32 %v2412_v31, %v2412_v31 }
 0x936   :  { %v2431_v55 = vsel %vm208_vm0, %v2417_v21, 0.0 }
 0x937   :  { %v2434_v32 = vsel %vm208_vm0, %v2418_v11, 0.0 }
 0x941   :  { %2469 = vrot.lane.b32.xlu1 %v6628_v58, %s6661_s26 }
 0x94a   :  { %2491 = vrot.lane.b32.xlu0 %v6627_v22, %s6673_s5 }
 0x965   :  { %2435 = vadd.xlane.f32.xlu1 %v2434_v32 }
 0x969   :  { %2432 = vadd.xlane.f32.xlu0 %v2431_v55 }
 0x976   :  { %2493 = vrot.lane.b32.xlu1 %v6628_v58, %s6673_s5 }
 0x97f   :  { %2471 = vrot.lane.b32.xlu0 %v6629_v39, %s6661_s26 }
 0x983   :  { %2495 = vrot.lane.b32.xlu0 %v6629_v39, %s6673_s5 }
 0x9b6   :  { %v2424_v18 = vpop.xlane.xlu1 %2423 }
 0x9b7   :  { %v2438_v12 = vmul.f32 0.03125, %v2424_v18  ;;  %v2421_v22 = vpop.xlane.xlu0 %2420 }
 0x9b8   :  { %v2437_v25 = vmul.f32 0.03125, %v2421_v22 }
 0x9b9   :  { %v2444_v63 = vadd.f32 1e-05, %v2438_v12  ;;  %v2378_v12 = vld [vmem:[%s8527_s9] sm:$0xff] }
 0x9ba   :  { %v2443_v26 = vadd.f32 1e-05, %v2437_v25  ;;  %5675 = vmatprep.subr.mxu1 %v2378_v12 }
 0x9bb   :  { %6486 = vrsqrt.f32 %v2444_v63  ;;  %5676 = vmatpush3.msra.mxu1 %v2378_v12 }
 0x9bc   :  { %6488 = vrsqrt.f32 %v2443_v26 }
 0x9bd   :  { %v2430_v50 = vpop.xlane.xlu1 %2429 }
 0x9be   :  { %v2440_v57 = vmul.f32 0.03125, %v2430_v50 }
 0x9c0   :  { %v2446_v35 = vadd.f32 1e-05, %v2440_v57 }
 0x9c1   :  { %v2427_v36 = vpop.xlane.xlu0 %2426 }
 0x9c2   :  { %6490 = vrsqrt.f32 %v2446_v35  ;;  %v2439_v60 = vmul.f32 0.03125, %v2427_v36 }
 0x9c4   :  { %v2445_v54 = vadd.f32 1e-05, %v2439_v60 }
 0x9c5   :  { %v6487_v51 = vpop.eup %6486 }
 0x9c6   :  { %v6489_v33 = vpop.eup %6488  ;;  %v2456_v46 = vmul.f32 %v6487_v51, %v7659_v59  ;;  %6492 = vrsqrt.f32 %v2445_v54 }
 0x9c7   :  { %v2455_v17 = vmul.f32 %v6489_v33, %v7662_v41 }
 0x9c8   :  { %v2480_v38 = vmul.f32 %v7648_v45, %v2456_v46  ;;  %v2492_v45 = vpop.permute.xlu0 %2491 }
 0x9c9   :  { %v2479_v4 = vmul.f32 %v7650_v61, %v2455_v17 }
 0x9ca   :  { %v2504_v5 = vadd.f32 %v7654_v24, %v2480_v38 }
 0x9cb   :  { %v2503_v16 = vadd.f32 %v7652_v3, %v2479_v4  ;;  %v2470_v3 = vpop.permute.xlu1 %2469 }
 0x9cc   :  { %v6491_v58 = vpop.eup %6490 }
 0x9cd   :  { %5645 = vmatprep.mubr.msk.f32.mxu0 %vm208_vm0, %v2503_v16  ;;  %v2458_v27 = vmul.f32 %v6491_v58, %v7671_v40 }
 0x9ce   :  { %5646 = vmatmul.mubr.msk.f32.vlgmr.msra.gmra.mrb[36].mxu0 %vm208_vm0, %v2504_v5 }
 0x9cf   :  { %v2482_v9 = vmul.f32 %v2468_v42, %v2458_v27 }
 0x9d0   :  { %v6493_v13 = vpop.eup %6492 }
 0x9d1   :  { %v2457_v59 = vmul.f32 %v6493_v13, %v7676_v48  ;;  %v2506_v61 = vadd.f32 %v2492_v45, %v2482_v9 }
 0x9d3   :  { %v2481_v41 = vmul.f32 %v7656_v44, %v2457_v59 }
 0x9d5   :  { %v2505_v28 = vadd.f32 %v2490_v7, %v2481_v41 }
 0x9d7   :  { %5648 = vmatprep.mubr.msk.f32.mxu0 %vm208_vm0, %v2505_v28 }
 0x9d8   :  { %5649 = vmatmul.mubr.msk.f32.gmra.mrb[38].mxu0 %vm208_vm0, %v2506_v61 }
 0x9f2   :  { %v2436_v24 = vpop.xlane.xlu1 %2435 }
 0x9f3   :  { %v2442_v47 = vmul.f32 0.03125, %v2436_v24 }
 0x9f5   :  { %v2448_v19 = vadd.f32 1e-05, %v2442_v47 }
 0x9f6   :  { %v2433_v40 = vpop.xlane.xlu0 %2432  ;;  %v2494_v55 = vpop.permute.xlu1 %2493 }
 0x9f7   :  { %6494 = vrsqrt.f32 %v2448_v19  ;;  %v2441_v6 = vmul.f32 0.03125, %v2433_v40 }
 0x9f9   :  { %v2447_v53 = vadd.f32 1e-05, %v2441_v6 }
 0x9fa   :  { %v2472_v49 = vpop.permute.xlu0 %2471 }
 0x9fb   :  { %6496 = vrsqrt.f32 %v2447_v53 }
 0x9fe   :  { %v2496_v39 = vpop.permute.xlu0 %2495 }
 0xa01   :  { %v6495_v48 = vpop.eup %6494 }
 0xa02   :  { %v2460_v11 = vmul.f32 %v6495_v48, %v2412_v31 }
 0xa04   :  { %v2484_v21 = vmul.f32 %v2472_v49, %v2460_v11 }
 0xa05   :  { %v6497_v44 = vpop.eup %6496 }
 0xa06   :  { %v2459_v32 = vmul.f32 %v6497_v44, %v7701_v29  ;;  %v2508_v18 = vadd.f32 %v2496_v39, %v2484_v21 }
 0xa08   :  { %v2483_v7 = vmul.f32 %v2470_v3, %v2459_v32 }
 0xa0a   :  { %v2507_v42 = vadd.f32 %v2494_v55, %v2483_v7 }
 0xa0c   :  { %5651 = vmatprep.mubr.msk.f32.mxu0 %vm208_vm0, %v2507_v42  ;;  %v2379_v42 = vld [vmem:[%s8527_s9 + $0x8] sm:$0xff] }
 0xa0d   :  { %5652 = vmatmul.mubr.msk.f32.gmra.mrb[40].mxu0 %vm208_vm0, %v2508_v18 }
 0xaa1   :  { %v7732_v31 = vpop.f32.mrb[36].mxu0 }
 0xaa2   :  { %v7734_v22 = vpop.f32.mrb[37].mxu0 }
 0xaa3   :  { %2837 = vrot.lane.b32.xlu0 %v7734_v22, %s6661_s26  ;;  %5666 = vmatprep.mubr.msk.f32.mxu0 %vm455_vm1, %v7734_v22  ;;  %v7742_v29 = vpack.i.bf16 %v7732_v31, %v7734_v22 }
 0xaa5   :  { %6319 = vrot.lane.b32.xlu1 %v7742_v29, %s6662_s27 }
 0xaa9   :  { %2839 = vrot.lane.b32.xlu1 %v7732_v31, %s6661_s26 }
 0xaab   :  { %v7748_v25 = vpop.f32.mrb[38].mxu0 }
 0xaac   :  { %v7750_v63 = vpop.f32.mrb[39].mxu0 }
 0xaad   :  { %6324 = vrot.lane.b32.xlu1 %v7742_v29, %s6660_s20  ;;  %v7756_v26 = vpack.i.bf16 %v7748_v25, %v7750_v63 }
 0xaaf   :  { %6329 = vrot.lane.b32.xlu0 %v7756_v26, %s6662_s27 }
 0xab1   :  { %2841 = vrot.lane.b32.xlu1 %v7750_v63, %s6661_s26 }
 0xab3   :  { %2843 = vrot.lane.b32.xlu0 %v7748_v25, %s6661_s26 }
 0xab5   :  { %6334 = vrot.lane.b32.xlu1 %v7756_v26, %s6660_s20 }
 0xae0   :  { %v7766_v50 = vpop.f32.mrb[40].mxu0 }
 0xae1   :  { %2847 = vrot.lane.b32.xlu1 %v7766_v50, %s6661_s26  ;;  %v7770_v57 = vpop.f32.mrb[41].mxu0 }
 0xae2   :  { %v7774_v35 = vpack.i.bf16 %v7766_v50, %v7770_v57 }
 0xae4   :  { %6339 = vrot.lane.b32.xlu0 %v7774_v35, %s6662_s27  ;;  %s5004_s27 = sld [smem:[#allocation4 + $0x1]] }
 0xae5   :  { %2958 = vrot.lane.b32.xlu1 %v7732_v31, %s6663_s28 }
 0xae8   :  { %2845 = vrot.lane.b32.xlu0 %v7770_v57, %s6661_s26 }
 0xae9   :  { %2960 = vrot.lane.b32.xlu1 %v7750_v63, %s6663_s28 }
 0xaec   :  { %2956 = vrot.lane.b32.xlu0 %v7734_v22, %s6663_s28 }
 0xaed   :  { %2964 = vrot.lane.b32.xlu1 %v7770_v57, %s6663_s28 }
 0xaf0   :  { %6344 = vrot.lane.b32.xlu0 %v7774_v35, %s6660_s20 }
 0xaf1   :  { %3177 = vrot.lane.b32.xlu1 %v7734_v22, %s6664_s29 }
 0xaf4   :  { %2962 = vrot.lane.b32.xlu0 %v7748_v25, %s6663_s28 }
 0xaf5   :  { %3181 = vrot.lane.b32.xlu1 %v7750_v63, %s6664_s29 }
 0xaf8   :  { %2966 = vrot.lane.b32.xlu0 %v7766_v50, %s6663_s28  ;;  %s5005_s28 = sld [smem:[#allocation4 + $0x2]] }
 0xaf9   :  { %3185 = vrot.lane.b32.xlu1 %v7770_v57, %s6664_s29 }
 0xafc   :  { %3179 = vrot.lane.b32.xlu0 %v7732_v31, %s6664_s29 }
 0xafd   :  { %6349 = vrot.lane.b32.xlu1 %v7742_v29, %s6665_s0 }
 0xb00   :  { %3183 = vrot.lane.b32.xlu0 %v7748_v25, %s6664_s29 }
 0xb01   :  { %3524 = vrot.lane.b32.xlu1 %v7732_v31, %s6666_s30 }
 0xb04   :  { %3187 = vrot.lane.b32.xlu0 %v7766_v50, %s6664_s29  ;;  %s8548_s29 = smov 72  }
 0xb05   :  { %3528 = vrot.lane.b32.xlu1 %v7748_v25, %s6666_s30 }
 0xb08   :  { %6354 = vrot.lane.b32.xlu0 %v7756_v26, %s6665_s0 }
 0xb09   :  { %3532 = vrot.lane.b32.xlu1 %v7766_v50, %s6666_s30 }
 0xb0c   :  { %3522 = vrot.lane.b32.xlu0 %v7734_v22, %s6666_s30 }
 0xb0d   :  { %6359 = vrot.lane.b32.xlu1 %v7774_v35, %s6665_s0  ;;  %s8549_s0 = smov 104  }
 0xb10   :  { %3526 = vrot.lane.b32.xlu0 %v7750_v63, %s6666_s30 }
 0xb14   :  { %3530 = vrot.lane.b32.xlu0 %v7770_v57, %s6666_s30 }
 0xb15   :  { %v2838_v36 = vpop.permute.xlu0 %2837 }
 0xb16   :  { %5677 = vmatprep.mubr.msk.f32.mxu1 %vm455_vm1, %v2838_v36 }
 0xb17   :  { %v6320_v60 = vpop.permute.xlu1 %6319 }
 0xb18   :  { %v6322_v54 = vunpack.i.h.bf16 %v6320_v60  ;;  %v6321_v51 = vunpack.i.l.bf16 %v6320_v60 }
 0xb1a   :  { %v6061_v33 = vpack.c.bf16 %v6322_v54, %v6321_v51 }
 0xb1b   :  { %v2840_v46 = vpop.permute.xlu1 %2839 }
 0xb1c   :  { %5678 = vmatmul.mubr.msk.f32.vlgmr.msra.gmra.mrb[24].mxu1 %vm455_vm1, %v2840_v46  ;;  %6063 = vmatprep.subr.msk.bf16.mxu1 %vm6970_vm2, %v6061_v33 }
 0xb1d   :  { %6066 = vmatpush3.bf16.xpose.msk.msra.mxu1 %vm6970_vm2, %v6061_v33 }
 0xb1f   :  { %v6325_v17 = vpop.permute.xlu1 %6324 }
 0xb20   :  { %v6327_v38 = vunpack.i.h.bf16 %v6325_v17  ;;  %v6326_v4 = vunpack.i.l.bf16 %v6325_v17 }
 0xb21   :  { %v6330_v16 = vpop.permute.xlu0 %6329 }
 0xb22   :  { %v6043_v58 = vpack.c.bf16 %v6327_v38, %v6326_v4  ;;  %v6332_v5 = vunpack.i.h.bf16 %v6330_v16  ;;  %v6331_v27 = vunpack.i.l.bf16 %v6330_v16 }
 0xb23   :  { %v2842_v13 = vpop.permute.xlu1 %2841 }
 0xb24   :  { %v6067_v59 = vpack.c.bf16 %v6332_v5, %v6331_v27  ;;  %6045 = vmatprep.subr.msk.bf16.mxu0 %vm6970_vm2, %v6043_v58  ;;  %5680 = vmatprep.mubr.msk.f32.mxu1 %vm455_vm1, %v2842_v13 }
 0xb25   :  { %6048 = vmatpush3.bf16.xpose.msk.msra.mxu0 %vm6970_vm2, %v6043_v58  ;;  %v2844_v9 = vpop.permute.xlu0 %2843 }
 0xb26   :  { %5681 = vmatmul.mubr.msk.f32.gmra.mrb[26].mxu1 %vm455_vm1, %v2844_v9  ;;  %6069 = vmatprep.subr.msk.bf16.mxu1 %vm6970_vm2, %v6067_v59 }
 0xb27   :  { %v6335_v41 = vpop.permute.xlu1 %6334  ;;  %6072 = vmatpush3.bf16.xpose.msk.msra.mxu1 %vm6970_vm2, %v6067_v59 }
 0xb28   :  { %v6337_v45 = vunpack.i.h.bf16 %v6335_v41  ;;  %v6336_v28 = vunpack.i.l.bf16 %v6335_v41 }
 0xb2a   :  { %v6049_v61 = vpack.c.bf16 %v6337_v45, %v6336_v28 }
 0xb2c   :  { %6051 = vmatprep.subr.msk.bf16.mxu0 %vm6970_vm2, %v6049_v61 }
 0xb2d   :  { %6054 = vmatpush3.bf16.xpose.msk.msra.mxu0 %vm6970_vm2, %v6049_v61 }
 0xb53   :  { %v2848_v3 = vpop.permute.xlu1 %2847 }
 0xb56   :  { %v6340_v24 = vpop.permute.xlu0 %6339 }
 0xb57   :  { %v6342_v47 = vunpack.i.h.bf16 %v6340_v24  ;;  %v6341_v19 = vunpack.i.l.bf16 %v6340_v24  ;;  %v2959_v40 = vpop.permute.xlu1 %2958 }
 0xb59   :  { %v6073_v6 = vpack.c.bf16 %v6342_v47, %v6341_v19 }
 0xb5a   :  { %v2846_v53 = vpop.permute.xlu0 %2845 }
 0xb5b   :  { %v2961_v48 = vpop.permute.xlu1 %2960  ;;  %5683 = vmatprep.mubr.msk.f32.mxu1 %vm455_vm1, %v2846_v53  ;;  %6075 = vmatprep.subr.msk.bf16.mxu1 %vm6970_vm2, %v6073_v6 }
 0xb5c   :  { %5684 = vmatmul.mubr.msk.f32.gmra.mrb[28].mxu1 %vm455_vm1, %v2848_v3 }
 0xb5d   :  { %6078 = vmatpush3.bf16.xpose.msk.msra.mxu1 %vm6970_vm2, %v6073_v6 }
 0xb5e   :  { %v2957_v49 = vpop.permute.xlu0 %2956 }
 0xb5f   :  { %v2965_v11 = vpop.permute.xlu1 %2964  ;;  %5698 = vmatprep.mubr.msk.f32.mxu1 %vm455_vm1, %v2957_v49  ;;  %v7901_v49 = vstv %s5004_s27 }
 0xb60   :  { %vm2326_vm12 = vcmp.ge.s32.totalorder %v7055_v1, %v7901_v49  ;;  %vm2337_vm13 = vcmp.ge.s32.totalorder %v7057_v2, %v7901_v49  ;;  %vm2325_vm3 = vcmp.ge.s32.totalorder %v7052_v0, %v7901_v49  ;;  %vm2327_vm5 = vcmp.ge.s32.totalorder %v7082_v10, %v7901_v49 }
 0xb61   :  { %vm2328_vm8 = vcmp.ge.s32.totalorder %v7093_v14, %v7901_v49 }
 0xb62   :  { %v6345_v44 = vpop.permute.xlu0 %6344 }
 0xb63   :  { %v6347_v32 = vunpack.i.h.bf16 %v6345_v44  ;;  %v6346_v21 = vunpack.i.l.bf16 %v6345_v44  ;;  %v3178_v55 = vpop.permute.xlu1 %3177  ;;  %v2332_v44 = vsel %vm2326_vm12, 1, %v6667_v56  ;;  %vm2330_vm12 = vcmp.ge.s32.totalorder %v7115_v23, %v7901_v49 }
 0xb64   :  { %5699 = vmatmul.mubr.msk.f32.vlgmr.msra.gmra.mrb[30].mxu1 %vm455_vm1, %v2959_v40 }
 0xb65   :  { %v6055_v39 = vpack.c.bf16 %v6347_v32, %v6346_v21  ;;  %5701 = vmatprep.mubr.msk.f32.mxu1 %vm455_vm1, %v2961_v48  ;;  %v2338_v32 = vsel %vm2337_vm13, 1, %v6667_v56 }
 0xb66   :  { %v2963_v7 = vpop.permute.xlu0 %2962 }
 0xb67   :  { %v3182_v18 = vpop.permute.xlu1 %3181  ;;  %6057 = vmatprep.subr.msk.bf16.mxu0 %vm6970_vm2, %v6055_v39 }
 0xb68   :  { %5702 = vmatmul.mubr.msk.f32.gmra.mrb[32].mxu1 %vm455_vm1, %v2963_v7  ;;  %6060 = vmatpush3.bf16.xpose.msk.msra.mxu0 %vm6970_vm2, %v6055_v39  ;;  %v2331_v39 = vsel %vm2325_vm3, 1, %v6667_v56  ;;  %vm2329_vm3 = vcmp.ge.s32.totalorder %v7134_v34, %v7901_v49 }
 0xb69   :  { %5704 = vmatprep.mubr.msk.f32.mxu1 %vm455_vm1, %v2965_v11  ;;  %5707 = vmatprep.subr.mxu0 %v2379_v42  ;;  %v7903_v11 = vstv %s5005_s28 }
 0xb6a   :  { %v2967_v12 = vpop.permute.xlu0 %2966  ;;  %vm2342_vm14 = vcmp.ge.s32.totalorder %v7055_v1, %v7903_v11  ;;  %vm2359_vm15 = vcmp.ge.s32.totalorder %v7057_v2, %v7903_v11  ;;  %vm2341_vm4 = vcmp.ge.s32.totalorder %v7052_v0, %v7903_v11  ;;  %vm2343_vm7 = vcmp.ge.s32.totalorder %v7082_v10, %v7903_v11 }
 0xb6b   :  { %v3186_v36 = vpop.permute.xlu1 %3185  ;;  %v2348_v21 = vsel %vm2342_vm14, 1, %v6667_v56  ;;  %v2347_v1 = vsel %vm2341_vm4, 1, %v6667_v56  ;;  %vm2344_vm9 = vcmp.ge.s32.totalorder %v7093_v14, %v7903_v11  ;;  %v2334_v10 = vsel %vm2328_vm8, 1, %v6667_v56 }
 0xb6c   :  { %5705 = vmatmul.mubr.msk.f32.gmra.mrb[34].mxu1 %vm455_vm1, %v2967_v12  ;;  %vm2346_vm13 = vcmp.ge.s32.totalorder %v7115_v23, %v7903_v11  ;;  %vm2345_vm4 = vcmp.ge.s32.totalorder %v7134_v34, %v7903_v11 }
 0xb6d   :  { %v2351_v34 = vsel %vm2345_vm4, 1, %v6667_v56 }
 0xb6e   :  { %v3180_v60 = vpop.permute.xlu0 %3179 }
 0xb6f   :  { %v6350_v54 = vpop.permute.xlu1 %6349  ;;  %5667 = vmatmul.mubr.msk.f32.vlgmr.msra.gmra.mrb[42].mxu0 %vm455_vm1, %v7732_v31 }
 0xb70   :  { %v6352_v51 = vunpack.i.h.bf16 %v6350_v54  ;;  %v6351_v33 = vunpack.i.l.bf16 %v6350_v54  ;;  %5669 = vmatprep.mubr.msk.f32.mxu0 %vm455_vm1, %v7750_v63  ;;  %5708 = vmatpush3.msra.mxu0 %v2379_v42  ;;  %v2354_v42 = vadd.s32 %v2348_v21, %v2332_v44  ;;  %v2349_v54 = vsel %vm2343_vm7, 1, %v6667_v56 }
 0xb72   :  { %v6103_v46 = vpack.c.bf16 %v6352_v51, %v6351_v33  ;;  %v3184_v17 = vpop.permute.xlu0 %3183  ;;  %v2350_v51 = vsel %vm2344_vm9, 1, %v6667_v56 }
 0xb73   :  { %v3525_v38 = vpop.permute.xlu1 %3524  ;;  %5670 = vmatmul.mubr.msk.f32.gmra.mrb[44].mxu0 %vm455_vm1, %v7748_v25 }
 0xb74   :  { %5672 = vmatprep.mubr.msk.f32.mxu0 %vm455_vm1, %v7770_v57  ;;  %6105 = vmatprep.subr.msk.bf16.mxu1 %vm6970_vm2, %v6103_v46 }
 0xb75   :  { %6108 = vmatpush3.bf16.xpose.msk.msra.mxu1 %vm6970_vm2, %v6103_v46 }
 0xb76   :  { %v3188_v4 = vpop.permute.xlu0 %3187 }
 0xb77   :  { %v3529_v16 = vpop.permute.xlu1 %3528  ;;  %5673 = vmatmul.mubr.msk.f32.gmra.mrb[46].mxu0 %vm455_vm1, %v7766_v50 }
 0xb78   :  { %5709 = vmatprep.mubr.msk.f32.mxu0 %vm455_vm1, %v3178_v55  ;;  %v2360_v55 = vsel %vm2359_vm15, 1, %v6667_v56 }
 0xb7a   :  { %v6355_v58 = vpop.permute.xlu0 %6354 }
 0xb7b   :  { %v6357_v5 = vunpack.i.h.bf16 %v6355_v58  ;;  %v6356_v27 = vunpack.i.l.bf16 %v6355_v58  ;;  %v3533_v13 = vpop.permute.xlu1 %3532  ;;  %5710 = vmatmul.mubr.msk.f32.vlgmr.msra.gmra.mrb[48].mxu0 %vm455_vm1, %v3180_v60  ;;  %v2333_v60 = vsel %vm2327_vm5, 1, %v6667_v56  ;;  %v2336_v58 = vsel %vm2330_vm12, 1, %v6667_v56 }
 0xb7c   :  { %5712 = vmatprep.mubr.msk.f32.mxu0 %vm455_vm1, %v3182_v18  ;;  %v7927_v18 = vadd.s32 %v2360_v55, %v2338_v32  ;;  %v2355_v33 = vadd.s32 %v2349_v54, %v2333_v60 }
 0xb7d   :  { %v6109_v59 = vpack.c.bf16 %v6357_v5, %v6356_v27  ;;  %v2352_v5 = vsel %vm2346_vm13, 1, %v6667_v56 }
 0xb7e   :  { %v3523_v9 = vpop.permute.xlu0 %3522  ;;  %vm2363_vm10 = vcmp.eq.s32.totalorder %v2354_v42, %v7927_v18  ;;  %vm2364_vm14 = vcmp.eq.s32.totalorder %v2355_v33, %v7927_v18 }
 0xb7f   :  { %v6360_v41 = vpop.permute.xlu1 %6359  ;;  %5713 = vmatmul.mubr.msk.f32.gmra.mrb[50].mxu0 %vm455_vm1, %v3184_v17  ;;  %6111 = vmatprep.subr.msk.bf16.mxu1 %vm6970_vm2, %v6109_v59  ;;  %v7946_v14 = vsel %vm2363_vm10, 0.0, %v6668_v8  ;;  %v2356_v17 = vadd.s32 %v2350_v51, %v2334_v10 }
 0xb80   :  { %v6362_v45 = vunpack.i.h.bf16 %v6360_v41  ;;  %v6361_v28 = vunpack.i.l.bf16 %v6360_v41  ;;  %5772 = vmatprep.mubr.msk.f32.mxu1 %vm455_vm1, %v3523_v9  ;;  %5715 = vmatprep.mubr.msk.f32.mxu0 %vm455_vm1, %v3186_v36  ;;  %v2353_v36 = vadd.s32 %v2347_v1, %v2331_v39  ;;  %v2358_v9 = vadd.s32 %v2352_v5, %v2336_v58 }
 0xb81   :  { %6114 = vmatpush3.bf16.xpose.msk.msra.mxu1 %vm6970_vm2, %v6109_v59  ;;  %vm2365_vm15 = vcmp.eq.s32.totalorder %v2356_v17, %v7927_v18  ;;  %v7962_v41 = vsel %vm2364_vm14, 0.0, %v6668_v8 }
 0xb82   :  { %v6115_v61 = vpack.c.bf16 %v6362_v45, %v6361_v28  ;;  %v3527_v3 = vpop.permute.xlu0 %3526  ;;  %vm2362_vm11 = vcmp.eq.s32.totalorder %v2353_v36, %v7927_v18  ;;  %vm2367_vm5 = vcmp.eq.s32.totalorder %v2358_v9, %v7927_v18 }
 0xb83   :  { %5716 = vmatmul.mubr.msk.f32.gmra.mrb[52].mxu0 %vm455_vm1, %v3188_v4  ;;  %v7949_v4 = vsel %vm2362_vm11, 0.0, %v6668_v8  ;;  %v7987_v21 = vsel %vm2367_vm5, 0.0, %v6668_v8 }
 0xb84   :  { %6117 = vmatprep.subr.msk.bf16.mxu1 %vm6970_vm2, %v6115_v61 }
 0xb86   :  { %v3531_v24 = vpop.permute.xlu0 %3530 }
 0xb89   :  { %6120 = vmatpush3.bf16.xpose.msk.msra.mxu1 %vm6970_vm2, %v6115_v61 }
 0xb90   :  { %5773 = vmatmul.mubr.msk.f32.vlgmr.msra.gmra.mrb[36].mxu1 %vm455_vm1, %v3525_v38 }
 0xb91   :  { %5775 = vmatprep.mubr.msk.f32.mxu1 %vm455_vm1, %v3527_v3 }
 0xb94   :  { %5776 = vmatmul.mubr.msk.f32.gmra.mrb[38].mxu1 %vm455_vm1, %v3529_v16 }
 0xb95   :  { %5778 = vmatprep.mubr.msk.f32.mxu1 %vm455_vm1, %v3531_v24 }
 0xb98   :  { %5779 = vmatmul.mubr.msk.f32.gmra.mrb[40].mxu1 %vm455_vm1, %v3533_v13 }
 0xbef   :  { %v5679_v47 = vpop.f32.mrb[24].mxu1 }
 0xbf0   :  { %v2927_v19 = vpop.f32.mrb[25].mxu1 }
 0xbf1   :  { %v7897_v40 = vpack.c.bf16 %v5679_v47, %v2927_v19  ;;  %v7973_v47 = vsel %vm2365_vm15, 0.0, %v6668_v8 }
 0xbf9   :  { %v5682_v6 = vpop.f32.mrb[26].mxu1 }
 0xbfa   :  { %v2937_v53 = vpop.f32.mrb[27].mxu1 }
 0xbfb   :  { %v7899_v48 = vpack.c.bf16 %v5682_v6, %v2937_v53  ;;  %v2335_v53 = vsel %vm2329_vm3, 1, %v6667_v56 }
 0xbfc   :  { %v2357_v55 = vadd.s32 %v2351_v34, %v2335_v53 }
 0xbfe   :  { %vm2366_vm7 = vcmp.eq.s32.totalorder %v2357_v55, %v7927_v18 }
 0xc2f   :  { %v5685_v7 = vpop.f32.mrb[28].mxu1 }
 0xc30   :  { %v2947_v2 = vpop.f32.mrb[29].mxu1 }
 0xc31   :  { %v7929_v12 = vpack.c.bf16 %v5685_v7, %v2947_v2 }
 0xc37   :  { %v5700_v46 = vpop.f32.mrb[30].mxu1 }
 0xc38   :  { %v3100_v38 = vmul.f32 0.35355338, %v5700_v46  ;;  %v3070_v16 = vpop.f32.mrb[31].mxu1  ;;  %v8001_v46 = vsel %vm2366_vm7, 0.0, %v6668_v8 }
 0xc39   :  { %v3099_v27 = vmul.f32 0.35355338, %v3070_v16 }
 0xc3a   :  { %v7955_v13 = vadd.f32 %v3100_v38, %v7946_v14 }
 0xc3b   :  { %v7958_v23 = vadd.f32 %v3099_v27, %v7949_v4  ;;  %v5703_v59 = vpop.f32.mrb[32].mxu1 }
 0xc3c   :  { %v3080_v45 = vpop.f32.mrb[33].mxu1  ;;  %v3114_v28 = vsel %vm587_vm6, %v7955_v13, -inf  ;;  %v3102_v61 = vmul.f32 0.35355338, %v5703_v59 }
 0xc3d   :  { %v3101_v3 = vmul.f32 0.35355338, %v3080_v45  ;;  %3115 = vmax.xlane.f32.xlu1 %v3114_v28  ;;  %v3111_v24 = vsel %vm587_vm6, %v7958_v23, -inf }
 0xc3e   :  { %3112 = vmax.xlane.f32.xlu0 %v3111_v24  ;;  %v7982_v11 = vadd.f32 %v3102_v61, %v7973_v47 }
 0xc3f   :  { %v7976_v19 = vadd.f32 %v3101_v3, %v7962_v41  ;;  %v5706_v6 = vpop.f32.mrb[34].mxu1 }
 0xc40   :  { %v3090_v49 = vpop.f32.mrb[35].mxu1  ;;  %v3104_v44 = vmul.f32 0.35355338, %v5706_v6  ;;  %v3120_v42 = vsel %vm587_vm6, %v7982_v11, -inf }
 0xc41   :  { %v3117_v32 = vsel %vm587_vm6, %v7976_v19, -inf  ;;  %v3103_v10 = vmul.f32 0.35355338, %v3090_v49 }
 0xc42   :  { %3118 = vmax.xlane.f32.xlu0 %v3117_v32  ;;  %v5668_v39 = vpop.f32.mrb[42].mxu0  ;;  %v7990_v2 = vadd.f32 %v3104_v44, %v7987_v21 }
 0xc43   :  { %v2730_v1 = vpop.f32.mrb[43].mxu0  ;;  %v2760_v56 = vmul.f32 0.35355338, %v5668_v39  ;;  %v8012_v27 = vadd.f32 %v3103_v10, %v8001_v46 }
 0xc44   :  { %v2759_v7 = vmul.f32 0.35355338, %v2730_v1  ;;  %v3126_v18 = vsel %vm587_vm6, %v7990_v2, -inf }
 0xc45   :  { %v8004_v17 = vadd.f32 %v2760_v56, %v7946_v14  ;;  %v3123_v53 = vsel %vm587_vm6, %v8012_v27, -inf }
 0xc46   :  { %v7996_v36 = vadd.f32 %v2759_v7, %v7949_v4  ;;  %3121 = vmax.xlane.f32.xlu0 %v3120_v42  ;;  %v5671_v60 = vpop.f32.mrb[44].mxu0 }
 0xc47   :  { %v2740_v54 = vpop.f32.mrb[45].mxu0  ;;  %v2762_v38 = vmul.f32 0.35355338, %v5671_v60  ;;  %v2774_v28 = vsel %vm587_vm6, %v8004_v17, -inf }
 0xc48   :  { %v2761_v51 = vmul.f32 0.35355338, %v2740_v54  ;;  %v2771_v33 = vsel %vm587_vm6, %v7996_v36, -inf }
 0xc49   :  { %2772 = vmax.xlane.f32.xlu1 %v2771_v33  ;;  %v8017_v9 = vadd.f32 %v2762_v38, %v7973_v47 }
 0xc4a   :  { %v8009_v16 = vadd.f32 %v2761_v51, %v7962_v41  ;;  %3127 = vmax.xlane.f32.xlu0 %v3126_v18  ;;  %v5674_v58 = vpop.f32.mrb[46].mxu0 }
 0xc4b   :  { %v2750_v5 = vpop.f32.mrb[47].mxu0  ;;  %v2764_v45 = vmul.f32 0.35355338, %v5674_v58  ;;  %v2780_v49 = vsel %vm587_vm6, %v8017_v9, -inf }
 0xc4c   :  { %v2763_v59 = vmul.f32 0.35355338, %v2750_v5  ;;  %v2777_v8 = vsel %vm587_vm6, %v8009_v16, -inf }
 0xc4d   :  { %2778 = vmax.xlane.f32.xlu1 %v2777_v8  ;;  %v8027_v34 = vadd.f32 %v2764_v45, %v7987_v21 }
 0xc4e   :  { %2775 = vmax.xlane.f32.xlu0 %v2774_v28  ;;  %v5711_v61 = vpop.f32.mrb[48].mxu0  ;;  %v8022_v24 = vadd.f32 %v2763_v59, %v8001_v46 }
 0xc4f   :  { %v3267_v3 = vpop.f32.mrb[49].mxu0  ;;  %v2786_v1 = vsel %vm587_vm6, %v8027_v34, -inf }
 0xc50   :  { %v6079_v6 = vpack.c.bf16 %v5711_v61, %v3267_v3  ;;  %v2783_v39 = vsel %vm587_vm6, %v8022_v24, -inf }
 0xc51   :  { %3124 = vmax.xlane.f32.xlu1 %v3123_v53 }
 0xc52   :  { %2781 = vmax.xlane.f32.xlu0 %v2780_v49  ;;  %v5714_v44 = vpop.f32.mrb[50].mxu0  ;;  %6080 = vmatprep.subr.bf16.mxu0 %v6079_v6 }
 0xc53   :  { %v3277_v32 = vpop.f32.mrb[51].mxu0  ;;  %6082 = vmatpush3.bf16.msra.mxu0 %v6079_v6 }
 0xc54   :  { %v6083_v55 = vpack.c.bf16 %v5714_v44, %v3277_v32 }
 0xc55   :  { %2784 = vmax.xlane.f32.xlu1 %v2783_v39 }
 0xc56   :  { %2787 = vmax.xlane.f32.xlu0 %v2786_v1  ;;  %v5717_v7 = vpop.f32.mrb[52].mxu0  ;;  %6084 = vmatprep.subr.bf16.mxu0 %v6083_v55 }
 0xc57   :  { %v3287_v56 = vpop.f32.mrb[53].mxu0  ;;  %6086 = vmatpush3.bf16.msra.mxu0 %v6083_v55 }
 0xc58   :  { %v6087_v42 = vpack.c.bf16 %v5717_v7, %v3287_v56 }
 0xc5a   :  { %6088 = vmatprep.subr.bf16.mxu0 %v6087_v42 }
 0xc5b   :  { %6090 = vmatpush3.bf16.msra.mxu0 %v6087_v42 }
 0xc5c   :  { %6092 = vmatprep.subr.bf16.mxu0 %v7897_v40 }
 0xc63   :  { %v8036_v60 = vpop.f32.mrb[36].mxu1 }
 0xc64   :  { %v8038_v54 = vpop.f32.mrb[37].mxu1 }
 0xc67   :  { %v8040_v10 = vpop.f32.mrb[38].mxu1 }
 0xc68   :  { %v8042_v51 = vpop.f32.mrb[39].mxu1 }
 0xc6b   :  { %v8044_v33 = vpop.f32.mrb[40].mxu1 }
 0xc6c   :  { %v8046_v38 = vpop.f32.mrb[41].mxu1 }
 0xcca   :  { %v3116_v18 = vpop.xlane.xlu1 %3115 }
 0xccb   :  { %v3130_v58 = vsub.f32 %v7955_v13, %v3116_v18  ;;  %v3113_v5 = vpop.xlane.xlu0 %3112 }
 0xccc   :  { %v3129_v59 = vsub.f32 %v7958_v23, %v3113_v5 }
 0xccd   :  { %v3137_v8 = vmul.f32 1.442695, %v3130_v58 }
 0xcce   :  { %v3135_v45 = vmul.f32 1.442695, %v3129_v59 }
 0xccf   :  { %6498 = vpow2.f32 %v3137_v8  ;;  %v3119_v28 = vpop.xlane.xlu0 %3118 }
 0xcd0   :  { %6500 = vpow2.f32 %v3135_v45  ;;  %v3131_v6 = vsub.f32 %v7976_v19, %v3119_v28 }
 0xcd2   :  { %v3139_v23 = vmul.f32 1.442695, %v3131_v6 }
 0xcd3   :  { %v3122_v61 = vpop.xlane.xlu0 %3121 }
 0xcd4   :  { %v3132_v3 = vsub.f32 %v7982_v11, %v3122_v61 }
 0xcd6   :  { %v3141_v53 = vmul.f32 1.442695, %v3132_v3  ;;  %v2773_v49 = vpop.xlane.xlu1 %2772 }
 0xcd7   :  { %v2789_v44 = vsub.f32 %v7996_v36, %v2773_v49  ;;  %v3128_v32 = vpop.xlane.xlu0 %3127 }
 0xcd8   :  { %6502 = vpow2.f32 %v3141_v53  ;;  %v3134_v13 = vsub.f32 %v7990_v2, %v3128_v32 }
 0xcd9   :  { %v8054_v55 = vpop.eup %6498  ;;  %v2795_v39 = vmul.f32 1.442695, %v2789_v44 }
 0xcda   :  { %v8056_v1 = vpop.eup %6500  ;;  %v3145_v7 = vmul.f32 1.442695, %v3134_v13  ;;  %v2779_v56 = vpop.xlane.xlu1 %2778  ;;  %v3150_v11 = vsel %vm587_vm6, %v8054_v55, 0.0 }
 0xcdb   :  { %6504 = vpow2.f32 %v2795_v39  ;;  %v2791_v19 = vsub.f32 %v8009_v16, %v2779_v56  ;;  %3151 = vadd.xlane.f32.xlu0 %v3150_v11  ;;  %v2776_v36 = vpop.xlane.xlu0 %2775  ;;  %v3147_v42 = vsel %vm587_vm6, %v8056_v1, 0.0 }
 0xcdc   :  { %6506 = vpow2.f32 %v3145_v7  ;;  %v2790_v2 = vsub.f32 %v8004_v17, %v2776_v36  ;;  %3148 = vadd.xlane.f32.xlu1 %v3147_v42 }
 0xcdd   :  { %6508 = vpow2.f32 %v3139_v23  ;;  %v2799_v18 = vmul.f32 1.442695, %v2791_v19 }
 0xcde   :  { %v2797_v58 = vmul.f32 1.442695, %v2790_v2  ;;  %v3125_v19 = vpop.xlane.xlu1 %3124 }
 0xcdf   :  { %v2782_v5 = vpop.xlane.xlu0 %2781  ;;  %v3133_v36 = vsub.f32 %v8012_v27, %v3125_v19 }
 0xce0   :  { %6510 = vpow2.f32 %v2797_v58  ;;  %v2792_v59 = vsub.f32 %v8017_v9, %v2782_v5  ;;  %v3669_v5 = vmul.f32 0.35355338, %v8046_v38 }
 0xce1   :  { %6512 = vpow2.f32 %v2799_v18  ;;  %v3143_v42 = vmul.f32 1.442695, %v3133_v36  ;;  %v3667_v18 = vmul.f32 0.35355338, %v8042_v51 }
 0xce2   :  { %v8065_v8 = vpop.eup %6502  ;;  %v2801_v16 = vmul.f32 1.442695, %v2792_v59  ;;  %v2785_v59 = vpop.xlane.xlu1 %2784 }
 0xce3   :  { %v2788_v45 = vpop.xlane.xlu0 %2787  ;;  %v3156_v28 = vsel %vm587_vm6, %v8065_v8, 0.0  ;;  %v8127_v58 = vadd.f32 %v3667_v18, %v7962_v41 }
 0xce4   :  { %6514 = vpow2.f32 %v2801_v16  ;;  %v2794_v61 = vsub.f32 %v8027_v34, %v2788_v45  ;;  %3157 = vadd.xlane.f32.xlu0 %v3156_v28  ;;  %v2793_v45 = vsub.f32 %v8022_v24, %v2785_v59  ;;  %v8134_v28 = vadd.f32 %v3669_v5, %v8001_v46 }
 0xce5   :  { %v8070_v17 = vpop.eup %6504 }
 0xce6   :  { %v8072_v3 = vpop.eup %6506  ;;  %v2805_v6 = vmul.f32 1.442695, %v2794_v61  ;;  %v2807_v9 = vsel %vm587_vm6, %v8070_v17, 0.0  ;;  %v2803_v51 = vmul.f32 1.442695, %v2793_v45  ;;  %v3689_v61 = vsel %vm587_vm6, %v8134_v28, -inf }
 0xce7   :  { %v8076_v53 = vpop.eup %6508  ;;  %v3162_v49 = vsel %vm587_vm6, %v8072_v3, 0.0  ;;  %2808 = vadd.xlane.f32.xlu1 %v2807_v9 }
 0xce8   :  { %6516 = vpow2.f32 %v2805_v6  ;;  %3163 = vadd.xlane.f32.xlu0 %v3162_v49  ;;  %v3153_v34 = vsel %vm587_vm6, %v8076_v53, 0.0 }
 0xce9   :  { %6518 = vpow2.f32 %v3143_v42 }
 0xcea   :  { %v8080_v44 = vpop.eup %6510  ;;  %6520 = vpow2.f32 %v2803_v51 }
 0xceb   :  { %v8084_v32 = vpop.eup %6512  ;;  %v2810_v13 = vsel %vm587_vm6, %v8080_v44, 0.0  ;;  %3154 = vadd.xlane.f32.xlu1 %v3153_v34 }
 0xcec   :  { %2811 = vadd.xlane.f32.xlu0 %v2810_v13  ;;  %v2813_v39 = vsel %vm587_vm6, %v8084_v32, 0.0 }
 0xcee   :  { %v8088_v23 = vpop.eup %6514 }
 0xcef   :  { %v2816_v7 = vsel %vm587_vm6, %v8088_v23, 0.0  ;;  %2814 = vadd.xlane.f32.xlu1 %v2813_v39 }
 0xcf0   :  { %2817 = vadd.xlane.f32.xlu0 %v2816_v7 }
 0xcf2   :  { %v8094_v56 = vpop.eup %6516 }
 0xcf3   :  { %v2822_v11 = vsel %vm587_vm6, %v8094_v56, 0.0  ;;  %v8113_v2 = vpop.eup %6518 }
 0xcf4   :  { %2823 = vadd.xlane.f32.xlu0 %v2822_v11  ;;  %v3159_v27 = vsel %vm587_vm6, %v8113_v2, 0.0  ;;  %v8140_v38 = vpop.eup %6520 }
 0xcf5   :  { %v2819_v6 = vsel %vm587_vm6, %v8140_v38, 0.0 }
 0xd00   :  { %3743 = vrot.lane.b32.xlu1 %v7734_v22, %s6669_s24 }
 0xd0a   :  { %3745 = vrot.lane.b32.xlu0 %v7732_v31, %s6669_s24 }
 0xd0e   :  { %3751 = vrot.lane.b32.xlu0 %v7770_v57, %s6669_s24 }
 0xd12   :  { %6364 = vrot.lane.b32.xlu0 %v7742_v29, %s8548_s29  ;;  %v3666_v29 = vmul.f32 0.35355338, %v8036_v60  ;;  %v3683_v60 = vsel %vm587_vm6, %v8127_v58, -inf }
 0xd16   :  { %6374 = vrot.lane.b32.xlu0 %v7774_v35, %s8548_s29  ;;  %v8123_v35 = vadd.f32 %v3666_v29, %v7946_v14 }
 0xd18   :  { %v3680_v16 = vsel %vm587_vm6, %v8123_v35, -inf }
 0xd1a   :  { %3983 = vrot.lane.b32.xlu0 %v7732_v31, %s8549_s0 }
 0xd1e   :  { %3987 = vrot.lane.b32.xlu0 %v7748_v25, %s8549_s0 }
 0xd22   :  { %3991 = vrot.lane.b32.xlu0 %v7766_v50, %s8549_s0 }
 0xd24   :  { %3160 = vadd.xlane.f32.xlu1 %v3159_v27 }
 0xd35   :  { %3747 = vrot.lane.b32.xlu1 %v7750_v63, %s6669_s24 }
 0xd41   :  { %3681 = vmax.xlane.f32.xlu0 %v3680_v16 }
 0xd45   :  { %3684 = vmax.xlane.f32.xlu0 %v3683_v60  ;;  %v3668_v60 = vmul.f32 0.35355338, %v8040_v10 }
 0xd47   :  { %v8188_v51 = vadd.f32 %v3668_v60, %v7973_v47 }
 0xd49   :  { %3690 = vmax.xlane.f32.xlu0 %v3689_v61  ;;  %v3670_v61 = vmul.f32 0.35355338, %v8044_v33 }
 0xd59   :  { %2820 = vadd.xlane.f32.xlu1 %v2819_v6 }
 0xd68   :  { %v3152_v24 = vpop.xlane.xlu0 %3151 }
 0xd69   :  { %6522 = vrcp.f32 %v3152_v24  ;;  %v3149_v9 = vpop.xlane.xlu1 %3148  ;;  %v8194_v24 = vadd.f32 %v3670_v61, %v7987_v21 }
 0xd6a   :  { %6524 = vrcp.f32 %v3149_v9  ;;  %3749 = vrot.lane.b32.xlu1 %v7748_v25, %s6669_s24 }
 0xd6b   :  { %v3692_v10 = vsel %vm587_vm6, %v8194_v24, -inf }
 0xd6e   :  { %3753 = vrot.lane.b32.xlu1 %v7766_v50, %s6669_s24 }
 0xd71   :  { %v3158_v49 = vpop.xlane.xlu0 %3157 }
 0xd72   :  { %6369 = vrot.lane.b32.xlu1 %v7756_v26, %s8548_s29  ;;  %6526 = vrcp.f32 %v3158_v49 }
 0xd73   :  { %v6523_v34 = vpop.eup %6522 }
 0xd74   :  { %v6525_v13 = vpop.eup %6524  ;;  %v2809_v39 = vpop.xlane.xlu1 %2808  ;;  %v3172_v19 = vmul.f32 %v6523_v34, %v8054_v55 }
 0xd75   :  { %v3164_v7 = vpop.xlane.xlu0 %3163  ;;  %v3171_v11 = vmul.f32 %v6525_v13, %v8056_v1  ;;  %v2380_v1 = vld [vmem:[%s8527_s9 + $0x10] sm:$0xff] }
 0xd76   :  { %3981 = vrot.lane.b32.xlu1 %v7734_v22, %s8549_s0 }
 0xd77   :  { %5730 = vmatprep.mubr.msk.f32.mxu0 %vm587_vm6, %v3171_v11 }
 0xd78   :  { %5731 = vmatmul.mubr.msk.f32.vlgmr.msra.gmra.mrb[54].mxu0 %vm587_vm6, %v3172_v19  ;;  %v3155_v36 = vpop.xlane.xlu1 %3154 }
 0xd79   :  { %6094 = vmatpush3.bf16.msra.mxu0 %v7897_v40  ;;  %v2812_v26 = vpop.xlane.xlu0 %2811  ;;  %6528 = vrcp.f32 %v3155_v36 }
 0xd7a   :  { %6096 = vmatprep.subr.bf16.mxu0 %v7899_v48  ;;  %3985 = vrot.lane.b32.xlu1 %v7750_v63, %s8549_s0  ;;  %6530 = vrcp.f32 %v2809_v39 }
 0xd7b   :  { %6532 = vrcp.f32 %v3164_v7 }
 0xd7c   :  { %v6527_v42 = vpop.eup %6526  ;;  %v2815_v9 = vpop.xlane.xlu1 %2814 }
 0xd7d   :  { %6098 = vmatpush3.bf16.msra.mxu0 %v7899_v48  ;;  %v2818_v55 = vpop.xlane.xlu0 %2817  ;;  %v3174_v18 = vmul.f32 %v6527_v42, %v8065_v8 }
 0xd7e   :  { %6100 = vmatprep.subr.bf16.mxu0 %v7929_v12  ;;  %3989 = vrot.lane.b32.xlu1 %v7770_v57, %s8549_s0 }
 0xd80   :  { %v3744_v49 = vpop.permute.xlu1 %3743 }
 0xd81   :  { %6102 = vmatpush3.bf16.msra.mxu0 %v7929_v12  ;;  %v8168_v40 = vpop.xlane.xlu0 %2823 }
 0xd82   :  { %5781 = vmatprep.subr.mxu0 %v2380_v1 }
 0xd83   :  { %v6529_v27 = vpop.eup %6528 }
 0xd84   :  { %v3173_v29 = vmul.f32 %v6529_v27, %v8076_v53  ;;  %v3665_v53 = vmul.f32 0.35355338, %v8038_v54  ;;  %v3686_v54 = vsel %vm587_vm6, %v8188_v51, -inf  ;;  %v6531_v13 = vpop.eup %6530 }
 0xd85   :  { %v8171_v48 = vpop.permute.xlu0 %3745  ;;  %v6533_v11 = vpop.eup %6532  ;;  %v2831_v39 = vmul.f32 %v6531_v13, %v8070_v17 }
 0xd86   :  { %5733 = vmatprep.mubr.msk.f32.mxu0 %vm587_vm6, %v3173_v29  ;;  %v8184_v8 = vadd.f32 %v3665_v53, %v7949_v4  ;;  %v3176_v27 = vmul.f32 %v6533_v11, %v8072_v3 }
 0xd87   :  { %5734 = vmatmul.mubr.msk.f32.gmra.mrb[56].mxu0 %vm587_vm6, %v3174_v18 }
 0xd88   :  { %v3677_v6 = vsel %vm587_vm6, %v8184_v8, -inf }
 0xd89   :  { %v8176_v5 = vpop.permute.xlu0 %3751 }
 0xd8d   :  { %v6365_v59 = vpop.permute.xlu0 %6364 }
 0xd8e   :  { %v6367_v16 = vunpack.i.h.bf16 %v6365_v59  ;;  %v6366_v12 = vunpack.i.l.bf16 %v6365_v59 }
 0xd90   :  { %v6133_v45 = vpack.c.bf16 %v6367_v16, %v6366_v12 }
 0xd91   :  { %v6375_v34 = vpop.permute.xlu0 %6374 }
 0xd92   :  { %6135 = vmatprep.subr.msk.bf16.mxu1 %vm6970_vm2, %v6133_v45 }
 0xd93   :  { %6138 = vmatpush3.bf16.xpose.msk.msra.mxu1 %vm6970_vm2, %v6133_v45 }
 0xd95   :  { %v3984_v42 = vpop.permute.xlu0 %3983 }
 0xd99   :  { %v3988_v59 = vpop.permute.xlu0 %3987 }
 0xd9d   :  { %v3992_v17 = vpop.permute.xlu0 %3991 }
 0xda2   :  { %3678 = vmax.xlane.f32.xlu1 %v3677_v6 }
 0xda6   :  { %3687 = vmax.xlane.f32.xlu1 %v3686_v54 }
 0xdaa   :  { %3693 = vmax.xlane.f32.xlu1 %v3692_v10  ;;  %v6376_v10 = vunpack.i.l.bf16 %v6375_v34 }
 0xdb1   :  { %v3161_v33 = vpop.xlane.xlu1 %3160 }
 0xdb2   :  { %6534 = vrcp.f32 %v3161_v33 }
 0xdb3   :  { %6536 = vrcp.f32 %v2812_v26 }
 0xdb4   :  { %6538 = vrcp.f32 %v2815_v9  ;;  %v6377_v9 = vunpack.i.h.bf16 %v6375_v34 }
 0xdb5   :  { %6540 = vrcp.f32 %v2818_v55  ;;  %v3748_v45 = vpop.permute.xlu1 %3747 }
 0xdbc   :  { %v6535_v19 = vpop.eup %6534 }
 0xdbd   :  { %v3175_v36 = vmul.f32 %v6535_v19, %v8113_v2  ;;  %v6537_v29 = vpop.eup %6536  ;;  %v6145_v19 = vpack.c.bf16 %v6377_v9, %v6376_v10  ;;  %v2381_v9 = vld [vmem:[%s8527_s9 + $0x18] sm:$0xff] }
 0xdbe   :  { %v6539_v7 = vpop.eup %6538  ;;  %v2832_v26 = vmul.f32 %v6537_v29, %v8080_v44 }
 0xdbf   :  { %5736 = vmatprep.mubr.msk.f32.mxu0 %vm587_vm6, %v3175_v36  ;;  %v6541_v55 = vpop.eup %6540  ;;  %v2833_v18 = vmul.f32 %v6539_v7, %v8084_v32 }
 0xdc0   :  { %5737 = vmatmul.mubr.msk.f32.gmra.mrb[58].mxu0 %vm587_vm6, %v3176_v27  ;;  %v2834_v3 = vmul.f32 %v6541_v55, %v8088_v23 }
 0xdc1   :  { %5751 = vmatprep.mubr.msk.f32.mxu0 %vm587_vm6, %v2831_v39 }
 0xdc4   :  { %5752 = vmatmul.mubr.msk.f32.vlgmr.msra.gmra.mrb[54].mxu0 %vm587_vm6, %v2832_v26 }
 0xdc5   :  { %5754 = vmatprep.mubr.msk.f32.mxu0 %vm587_vm6, %v2833_v18  ;;  %5782 = vmatpush3.msra.mxu0 %v2380_v1 }
 0xdc8   :  { %5755 = vmatmul.mubr.msk.f32.gmra.mrb[56].mxu0 %vm587_vm6, %v2834_v3 }
 0xdce   :  { %v3682_v2 = vpop.xlane.xlu0 %3681 }
 0xdcf   :  { %v3696_v16 = vsub.f32 %v8123_v35, %v3682_v2 }
 0xdd1   :  { %v3703_v12 = vmul.f32 1.442695, %v3696_v16 }
 0xdd3   :  { %6542 = vpow2.f32 %v3703_v12 }
 0xdd4   :  { %6544 = vrcp.f32 %v8168_v40 }
 0xddd   :  { %v8213_v44 = vpop.eup %6542 }
 0xdde   :  { %v3716_v32 = vsel %vm587_vm6, %v8213_v44, 0.0  ;;  %v6545_v60 = vpop.eup %6544 }
 0xddf   :  { %3717 = vadd.xlane.f32.xlu1 %v3716_v32  ;;  %v2836_v54 = vmul.f32 %v6545_v60, %v8094_v56 }
 0xde6   :  { %v2821_v1 = vpop.xlane.xlu1 %2820 }
 0xde7   :  { %6546 = vrcp.f32 %v2821_v1 }
 0xdea   :  { %v3750_v23 = vpop.permute.xlu1 %3749 }
 0xdee   :  { %v3754_v53 = vpop.permute.xlu1 %3753 }
 0xdf1   :  { %v6547_v61 = vpop.eup %6546 }
 0xdf2   :  { %v6370_v6 = vpop.permute.xlu1 %6369  ;;  %v2835_v35 = vmul.f32 %v6547_v61, %v8140_v38 }
 0xdf3   :  { %v6372_v33 = vunpack.i.h.bf16 %v6370_v6  ;;  %v6371_v13 = vunpack.i.l.bf16 %v6370_v6 }
 0xdf4   :  { %5757 = vmatprep.mubr.msk.f32.mxu0 %vm587_vm6, %v2835_v35 }
 0xdf5   :  { %v6139_v11 = vpack.c.bf16 %v6372_v33, %v6371_v13  ;;  %5758 = vmatmul.mubr.msk.f32.gmra.mrb[58].mxu0 %vm587_vm6, %v2836_v54 }
 0xdf6   :  { %5783 = vmatprep.mubr.msk.f32.mxu0 %vm455_vm1, %v3744_v49  ;;  %v3982_v40 = vpop.permute.xlu1 %3981 }
 0xdf7   :  { %6141 = vmatprep.subr.msk.bf16.mxu1 %vm6970_vm2, %v6139_v11  ;;  %5825 = vmatprep.mubr.msk.f32.mxu1 %vm455_vm1, %v3982_v40 }
 0xdf8   :  { %6144 = vmatpush3.bf16.xpose.msk.msra.mxu1 %vm6970_vm2, %v6139_v11 }
 0xdf9   :  { %5784 = vmatmul.mubr.msk.f32.vlgmr.msra.gmra.mrb[60].mxu0 %vm455_vm1, %v8171_v48  ;;  %6147 = vmatprep.subr.msk.bf16.mxu1 %vm6970_vm2, %v6145_v19  ;;  %v3685_v48 = vpop.xlane.xlu0 %3684 }
 0xdfa   :  { %5786 = vmatprep.mubr.msk.f32.mxu0 %vm455_vm1, %v3748_v45  ;;  %v3986_v56 = vpop.permute.xlu1 %3985 }
 0xdfd   :  { %5787 = vmatmul.mubr.msk.f32.gmra.mrb[62].mxu0 %vm455_vm1, %v3750_v23  ;;  %v3691_v49 = vpop.xlane.xlu0 %3690 }
 0xdfe   :  { %5789 = vmatprep.mubr.msk.f32.mxu0 %vm455_vm1, %v8176_v5  ;;  %v3990_v38 = vpop.permute.xlu1 %3989  ;;  %v3697_v5 = vsub.f32 %v8127_v58, %v3685_v48  ;;  %v3699_v27 = vsub.f32 %v8134_v28, %v3691_v49 }
 0xe00   :  { %6150 = vmatpush3.bf16.xpose.msk.msra.mxu1 %vm6970_vm2, %v6145_v19  ;;  %v3705_v36 = vmul.f32 1.442695, %v3697_v5  ;;  %v3709_v7 = vmul.f32 1.442695, %v3699_v27 }
 0xe01   :  { %5790 = vmatmul.mubr.msk.f32.gmra.mrb[64].mxu0 %vm455_vm1, %v3754_v53 }
 0xe07   :  { %5826 = vmatmul.mubr.msk.f32.vlgmr.msra.gmra.mrb[42].mxu1 %vm455_vm1, %v3984_v42 }
 0xe08   :  { %5828 = vmatprep.mubr.msk.f32.mxu1 %vm455_vm1, %v3986_v56 }
 0xe0b   :  { %5829 = vmatmul.mubr.msk.f32.gmra.mrb[44].mxu1 %vm455_vm1, %v3988_v59 }
 0xe0c   :  { %5831 = vmatprep.mubr.msk.f32.mxu1 %vm455_vm1, %v3990_v38 }
 0xe0f   :  { %5832 = vmatmul.mubr.msk.f32.gmra.mrb[46].mxu1 %vm455_vm1, %v3992_v17 }
 0xe2f   :  { %v3679_v52 = vpop.xlane.xlu1 %3678 }
 0xe30   :  { %v3695_v34 = vsub.f32 %v8184_v8, %v3679_v52 }
 0xe32   :  { %v3701_v42 = vmul.f32 1.442695, %v3695_v34 }
 0xe33   :  { %v3688_v29 = vpop.xlane.xlu1 %3687 }
 0xe34   :  { %6548 = vpow2.f32 %v3701_v42  ;;  %v3698_v39 = vsub.f32 %v8188_v51, %v3688_v29 }
 0xe35   :  { %6550 = vpow2.f32 %v3705_v36 }
 0xe36   :  { %v3707_v26 = vmul.f32 1.442695, %v3698_v39 }
 0xe37   :  { %v3694_v55 = vpop.xlane.xlu1 %3693 }
 0xe38   :  { %6552 = vpow2.f32 %v3707_v26  ;;  %v3700_v18 = vsub.f32 %v8194_v24, %v3694_v55 }
 0xe39   :  { %6554 = vpow2.f32 %v3709_v7 }
 0xe3a   :  { %v3711_v58 = vmul.f32 1.442695, %v3700_v18 }
 0xe3c   :  { %6556 = vpow2.f32 %v3711_v58 }
 0xe3e   :  { %v6549_v59 = vpop.eup %6548 }
 0xe3f   :  { %v3713_v8 = vsel %vm587_vm6, %v6549_v59, 0.0  ;;  %v6551_v3 = vpop.eup %6550 }
 0xe40   :  { %3714 = vadd.xlane.f32.xlu0 %v3713_v8  ;;  %v3719_v17 = vsel %vm587_vm6, %v6551_v3, 0.0 }
 0xe42   :  { %v8250_v28 = vpop.eup %6552 }
 0xe43   :  { %v3722_v51 = vsel %vm587_vm6, %v8250_v28, 0.0  ;;  %v8255_v2 = vpop.eup %6554 }
 0xe44   :  { %3720 = vadd.xlane.f32.xlu0 %v3719_v17  ;;  %3723 = vadd.xlane.f32.xlu1 %v3722_v51  ;;  %v3725_v16 = vsel %vm587_vm6, %v8255_v2, 0.0 }
 0xe46   :  { %v8257_v24 = vpop.eup %6556 }
 0xe47   :  { %v3728_v12 = vsel %vm587_vm6, %v8257_v24, 0.0 }
 0xe48   :  { %3726 = vadd.xlane.f32.xlu0 %v3725_v16  ;;  %3729 = vadd.xlane.f32.xlu1 %v3728_v12 }
 0xe59   :  { %4204 = vrot.lane.b32.xlu1 %v7732_v31, %s8550_s25 }
 0xe5d   :  { %4206 = vrot.lane.b32.xlu1 %v7750_v63, %s8550_s25 }
 0xe5e   :  { %4202 = vrot.lane.b32.xlu0 %v7734_v22, %s8550_s25 }
 0xe61   :  { %4210 = vrot.lane.b32.xlu1 %v7770_v57, %s8550_s25 }
 0xe62   :  { %4208 = vrot.lane.b32.xlu0 %v7748_v25, %s8550_s25 }
 0xe66   :  { %4212 = vrot.lane.b32.xlu0 %v7766_v50, %s8550_s25 }
 0xe6c   :  { %v3718_v32 = vpop.xlane.xlu1 %3717 }
 0xe6d   :  { %6558 = vrcp.f32 %v3718_v32 }
 0xe77   :  { %v6559_v54 = vpop.eup %6558 }
 0xe78   :  { %v3738_v13 = vmul.f32 %v6559_v54, %v8213_v44 }
 0xecc   :  { %v5785_v45 = vpop.f32.mrb[60].mxu0 }
 0xecd   :  { %v3833_v1 = vpop.f32.mrb[61].mxu0  ;;  %v3715_v31 = vpop.xlane.xlu0 %3714 }
 0xece   :  { %v6121_v23 = vpack.c.bf16 %v5785_v45, %v3833_v1  ;;  %6560 = vrcp.f32 %v3715_v31 }
 0xed0   :  { %v5788_v63 = vpop.f32.mrb[62].mxu0  ;;  %6122 = vmatprep.subr.bf16.mxu0 %v6121_v23 }
 0xed1   :  { %v3843_v53 = vpop.f32.mrb[63].mxu0  ;;  %6124 = vmatpush3.bf16.msra.mxu0 %v6121_v23  ;;  %v3721_v22 = vpop.xlane.xlu0 %3720 }
 0xed2   :  { %v6125_v60 = vpack.c.bf16 %v5788_v63, %v3843_v53  ;;  %6562 = vrcp.f32 %v3721_v22  ;;  %v3724_v57 = vpop.xlane.xlu1 %3723 }
 0xed3   :  { %6564 = vrcp.f32 %v3724_v57 }
 0xed4   :  { %v5791_v25 = vpop.f32.mrb[64].mxu0  ;;  %6126 = vmatprep.subr.bf16.mxu0 %v6125_v60 }
 0xed5   :  { %v3853_v61 = vpop.f32.mrb[65].mxu0  ;;  %6128 = vmatpush3.bf16.msra.mxu0 %v6125_v60  ;;  %v3727_v50 = vpop.xlane.xlu0 %3726 }
 0xed6   :  { %v6129_v6 = vpack.c.bf16 %v5791_v25, %v3853_v61  ;;  %6566 = vrcp.f32 %v3727_v50  ;;  %v3730_v35 = vpop.xlane.xlu1 %3729 }
 0xed7   :  { %6568 = vrcp.f32 %v3730_v35 }
 0xed8   :  { %v6561_v10 = vpop.eup %6560  ;;  %6130 = vmatprep.subr.bf16.mxu0 %v6129_v6 }
 0xed9   :  { %6132 = vmatpush3.bf16.msra.mxu0 %v6129_v6  ;;  %v3737_v33 = vmul.f32 %v6561_v10, %v6549_v59  ;;  %v4203_v8 = vpop.permute.xlu0 %4202 }
 0xeda   :  { %v5827_v11 = vpop.f32.mrb[42].mxu1  ;;  %5834 = vmatprep.subr.mxu0 %v2381_v9  ;;  %v4205_v39 = vpop.permute.xlu1 %4204 }
 0xedb   :  { %v4125_v40 = vmul.f32 0.35355338, %v5827_v11  ;;  %5804 = vmatprep.mubr.msk.f32.mxu0 %vm587_vm6, %v3737_v33  ;;  %v4095_v19 = vpop.f32.mrb[43].mxu1 }
 0xedc   :  { %v6563_v56 = vpop.eup %6562  ;;  %v4124_v38 = vmul.f32 0.35355338, %v4095_v19  ;;  %5805 = vmatmul.mubr.msk.f32.vlgmr.msra.gmra.mrb[54].mxu0 %vm587_vm6, %v3738_v13 }
 0xedd   :  { %v6565_v48 = vpop.eup %6564  ;;  %v4131_v5 = vadd.f32 %v4125_v40, %v7946_v14  ;;  %v3739_v49 = vmul.f32 %v6563_v56, %v6551_v3  ;;  %5835 = vmatpush3.msra.mxu0 %v2381_v9  ;;  %v4209_v32 = vpop.permute.xlu0 %4208 }
 0xede   :  { %v4130_v52 = vadd.f32 %v4124_v38, %v7949_v4  ;;  %v5830_v34 = vpop.f32.mrb[44].mxu1  ;;  %v3740_v44 = vmul.f32 %v6565_v48, %v8250_v28 }
 0xedf   :  { %v4127_v36 = vmul.f32 0.35355338, %v5830_v34  ;;  %5807 = vmatprep.mubr.msk.f32.mxu0 %vm587_vm6, %v3739_v49  ;;  %v4105_v27 = vpop.f32.mrb[45].mxu1  ;;  %v4139_v42 = vsel %vm587_vm6, %v4131_v5, -inf }
 0xee0   :  { %v6567_v29 = vpop.eup %6566  ;;  %v4126_v7 = vmul.f32 0.35355338, %v4105_v27  ;;  %5808 = vmatmul.mubr.msk.f32.gmra.mrb[56].mxu0 %vm587_vm6, %v3740_v44  ;;  %4140 = vmax.xlane.f32.xlu0 %v4139_v42  ;;  %v4136_v14 = vsel %vm587_vm6, %v4130_v52, -inf }
 0xee1   :  { %v6569_v26 = vpop.eup %6568  ;;  %v4133_v4 = vadd.f32 %v4127_v36, %v7973_v47  ;;  %4137 = vmax.xlane.f32.xlu1 %v4136_v14  ;;  %v3741_v55 = vmul.f32 %v6567_v29, %v8255_v2 }
 0xee2   :  { %v4132_v18 = vadd.f32 %v4126_v7, %v7962_v41  ;;  %v5833_v58 = vpop.f32.mrb[46].mxu1  ;;  %v3742_v59 = vmul.f32 %v6569_v26, %v8257_v24  ;;  %v4207_v41 = vpop.permute.xlu1 %4206 }
 0xee3   :  { %v4129_v3 = vmul.f32 0.35355338, %v5833_v58  ;;  %5810 = vmatprep.mubr.msk.f32.mxu0 %vm587_vm6, %v3741_v55  ;;  %v4115_v28 = vpop.f32.mrb[47].mxu1  ;;  %v4145_v17 = vsel %vm587_vm6, %v4133_v4, -inf }
 0xee4   :  { %v4128_v51 = vmul.f32 0.35355338, %v4115_v28  ;;  %5811 = vmatmul.mubr.msk.f32.gmra.mrb[58].mxu0 %vm587_vm6, %v3742_v59  ;;  %v4142_v47 = vsel %vm587_vm6, %v4132_v18, -inf }
 0xee5   :  { %v4135_v16 = vadd.f32 %v4129_v3, %v7987_v21  ;;  %5836 = vmatprep.mubr.msk.f32.mxu0 %vm455_vm1, %v4203_v8  ;;  %4146 = vmax.xlane.f32.xlu1 %v4145_v17  ;;  %v4213_v21 = vpop.permute.xlu0 %4212 }
 0xee6   :  { %v4134_v2 = vadd.f32 %v4128_v51, %v8001_v46  ;;  %4143 = vmax.xlane.f32.xlu0 %v4142_v47  ;;  %v4211_v45 = vpop.permute.xlu1 %4210 }
 0xee7   :  { %v4151_v24 = vsel %vm587_vm6, %v4135_v16, -inf }
 0xee8   :  { %5837 = vmatmul.mubr.msk.f32.vlgmr.msra.gmra.mrb[66].mxu0 %vm455_vm1, %v4205_v39  ;;  %v4148_v12 = vsel %vm587_vm6, %v4134_v2, -inf }
 0xee9   :  { %5839 = vmatprep.mubr.msk.f32.mxu0 %vm455_vm1, %v4207_v41  ;;  %4152 = vmax.xlane.f32.xlu1 %v4151_v24 }
 0xeea   :  { %4149 = vmax.xlane.f32.xlu0 %v4148_v12 }
 0xeec   :  { %5840 = vmatmul.mubr.msk.f32.gmra.mrb[68].mxu0 %vm455_vm1, %v4209_v32 }
 0xeed   :  { %5842 = vmatprep.mubr.msk.f32.mxu0 %vm455_vm1, %v4211_v45 }
 0xef0   :  { %5843 = vmatmul.mubr.msk.f32.gmra.mrb[70].mxu0 %vm455_vm1, %v4213_v21 }
 0xf6d   :  { %v4141_v46 = vpop.xlane.xlu0 %4140 }
 0xf6e   :  { %v4155_v1 = vsub.f32 %v4131_v5, %v4141_v46  ;;  %v4138_v31 = vpop.xlane.xlu1 %4137  ;;  %v5108_v46 = vld [vmem:[%s8528_s10] ss:$0 sm:$0xff] }
 0xf6f   :  { %v4154_v23 = vsub.f32 %v4130_v52, %v4138_v31 }
 0xf70   :  { %v4162_v63 = vmul.f32 1.442695, %v4155_v1 }
 0xf71   :  { %v4160_v53 = vmul.f32 1.442695, %v4154_v23 }
 0xf72   :  { %6570 = vpow2.f32 %v4162_v63  ;;  %v4147_v22 = vpop.xlane.xlu1 %4146 }
 0xf73   :  { %6572 = vpow2.f32 %v4160_v53  ;;  %v4157_v60 = vsub.f32 %v4133_v4, %v4147_v22  ;;  %v4144_v57 = vpop.xlane.xlu0 %4143 }
 0xf74   :  { %v4156_v25 = vsub.f32 %v4132_v18, %v4144_v57 }
 0xf75   :  { %v4166_v61 = vmul.f32 1.442695, %v4157_v60 }
 0xf76   :  { %v4164_v50 = vmul.f32 1.442695, %v4156_v25  ;;  %v4153_v6 = vpop.xlane.xlu1 %4152 }
 0xf77   :  { %6574 = vpow2.f32 %v4166_v61  ;;  %v4159_v35 = vsub.f32 %v4135_v16, %v4153_v6  ;;  %v4150_v54 = vpop.xlane.xlu0 %4149 }
 0xf78   :  { %6576 = vpow2.f32 %v4164_v50  ;;  %v4158_v9 = vsub.f32 %v4134_v2, %v4150_v54 }
 0xf79   :  { %v4170_v10 = vmul.f32 1.442695, %v4159_v35 }
 0xf7a   :  { %v4168_v33 = vmul.f32 1.442695, %v4158_v9 }
 0xf7b   :  { %6578 = vpow2.f32 %v4170_v10 }
 0xf7c   :  { %v6571_v13 = vpop.eup %6570  ;;  %6580 = vpow2.f32 %v4168_v33 }
 0xf7d   :  { %v6573_v11 = vpop.eup %6572  ;;  %v4175_v40 = vsel %vm587_vm6, %v6571_v13, 0.0 }
 0xf7e   :  { %4176 = vadd.xlane.f32.xlu1 %v4175_v40  ;;  %v4172_v19 = vsel %vm587_vm6, %v6573_v11, 0.0 }
 0xf7f   :  { %4173 = vadd.xlane.f32.xlu0 %v4172_v19 }
 0xf81   :  { %v6575_v56 = vpop.eup %6574 }
 0xf82   :  { %v6577_v38 = vpop.eup %6576  ;;  %v4181_v48 = vsel %vm587_vm6, %v6575_v56, 0.0 }
 0xf83   :  { %4182 = vadd.xlane.f32.xlu1 %v4181_v48  ;;  %v4178_v5 = vsel %vm587_vm6, %v6577_v38, 0.0 }
 0xf84   :  { %4179 = vadd.xlane.f32.xlu0 %v4178_v5 }
 0xf85   :  { %v6579_v49 = vpop.eup %6578 }
 0xf86   :  { %v6581_v52 = vpop.eup %6580  ;;  %v4187_v34 = vsel %vm587_vm6, %v6579_v49, 0.0 }
 0xf87   :  { %4188 = vadd.xlane.f32.xlu1 %v4187_v34  ;;  %v4184_v44 = vsel %vm587_vm6, %v6581_v52, 0.0 }
 0xf88   :  { %4185 = vadd.xlane.f32.xlu0 %v4184_v44 }
 0xfbb   :  { %v5838_v36 = vpop.f32.mrb[66].mxu0 }
 0xfbc   :  { %v4292_v27 = vpop.f32.mrb[67].mxu0 }
 0xfbd   :  { %v6151_v42 = vpack.c.bf16 %v5838_v36, %v4292_v27 }
 0xfbf   :  { %v5841_v29 = vpop.f32.mrb[68].mxu0  ;;  %6152 = vmatprep.subr.bf16.mxu0 %v6151_v42 }
 0xfc0   :  { %v4302_v39 = vpop.f32.mrb[69].mxu0  ;;  %6154 = vmatpush3.bf16.msra.mxu0 %v6151_v42 }
 0xfc1   :  { %v6155_v7 = vpack.c.bf16 %v5841_v29, %v4302_v39 }
 0xfc3   :  { %v5844_v14 = vpop.f32.mrb[70].mxu0  ;;  %6156 = vmatprep.subr.bf16.mxu0 %v6155_v7 }
 0xfc4   :  { %v4312_v26 = vpop.f32.mrb[71].mxu0  ;;  %6158 = vmatpush3.bf16.msra.mxu0 %v6155_v7 }
 0xfc5   :  { %v6159_v4 = vpack.c.bf16 %v5844_v14, %v4312_v26 }
 0xfc7   :  { %6160 = vmatprep.subr.bf16.mxu0 %v6159_v4 }
 0xfc8   :  { %6162 = vmatpush3.bf16.msra.mxu0 %v6159_v4 }
0x100b   :  { %v4177_v55 = vpop.xlane.xlu1 %4176 }
0x100c   :  { %6582 = vrcp.f32 %v4177_v55  ;;  %v4174_v18 = vpop.xlane.xlu0 %4173 }
0x100d   :  { %6584 = vrcp.f32 %v4174_v18 }
0x1010   :  { %v4183_v58 = vpop.xlane.xlu1 %4182 }
0x1011   :  { %6586 = vrcp.f32 %v4183_v58  ;;  %v4180_v59 = vpop.xlane.xlu0 %4179 }
0x1012   :  { %6588 = vrcp.f32 %v4180_v59 }
0x1014   :  { %v4189_v8 = vpop.xlane.xlu1 %4188 }
0x1015   :  { %6590 = vrcp.f32 %v4189_v8  ;;  %v4186_v3 = vpop.xlane.xlu0 %4185 }
0x1016   :  { %v6583_v28 = vpop.eup %6582  ;;  %6592 = vrcp.f32 %v4186_v3 }
0x1017   :  { %v6585_v17 = vpop.eup %6584  ;;  %v4197_v47 = vmul.f32 %v6583_v28, %v6571_v13 }
0x1018   :  { %v4196_v51 = vmul.f32 %v6585_v17, %v6573_v11 }
0x101a   :  { %5857 = vmatprep.mubr.msk.f32.mxu0 %vm587_vm6, %v4196_v51 }
0x101b   :  { %v6587_v16 = vpop.eup %6586  ;;  %5858 = vmatmul.mubr.msk.f32.vlgmr.msra.gmra.mrb[54].mxu0 %vm587_vm6, %v4197_v47 }
0x101c   :  { %v6589_v41 = vpop.eup %6588  ;;  %v4199_v2 = vmul.f32 %v6587_v16, %v6575_v56  ;;  %v4563_v16 = vld [vmem:[%s8531_s13 + $0x8] sm:$0xff] }
0x101d   :  { %v4198_v24 = vmul.f32 %v6589_v41, %v6577_v38  ;;  %v4565_v41 = vld [vmem:[%s8531_s13 + $0x18] sm:$0xff] }
0x101f   :  { %v6591_v12 = vpop.eup %6590  ;;  %5860 = vmatprep.mubr.msk.f32.mxu0 %vm587_vm6, %v4198_v24  ;;  %v4562_v24 = vld [vmem:[%s8531_s13] sm:$0xff] }
0x1020   :  { %v6593_v32 = vpop.eup %6592  ;;  %5861 = vmatmul.mubr.msk.f32.gmra.mrb[56].mxu0 %vm587_vm6, %v4199_v2  ;;  %v4201_v45 = vmul.f32 %v6591_v12, %v6579_v49  ;;  %v6163_v2 = vpack.c.bf16 %v4565_v41, %v4563_v16  ;;  %v4564_v12 = vld [vmem:[%s8531_s13 + $0x10] sm:$0xff] }
0x1021   :  { %v4200_v21 = vmul.f32 %v6593_v32, %v6581_v52  ;;  %v6165_v32 = vpack.c.bf16 %v4564_v12, %v4562_v24  ;;  %v4763_v24 = vld [vmem:[%s8533_s15 + $0x10] sm:$0xff]  ;;  %v4764_v12 = vld [vmem:[%s8533_s15 + $0x18] sm:$0xff] }
0x1022   :  { %6164 = vmatprep.subr.bf16.mxu1 %v6163_v2  ;;  %v4762_v2 = vld [vmem:[%s8533_s15 + $0x8] sm:$0xff] }
0x1023   :  { %5863 = vmatprep.mubr.msk.f32.mxu0 %vm587_vm6, %v4200_v21  ;;  %6166 = vmatpush1.bf16.msra.mxu1 %v6165_v32  ;;  %v4569_v21 = vld [vmem:[%s8531_s13 + $0x38] sm:$0xff]  ;;  %v6175_v32 = vpack.c.bf16 %v4764_v12, %v4763_v24 }
0x1024   :  { %5864 = vmatmul.mubr.msk.f32.gmra.mrb[58].mxu0 %vm587_vm6, %v4201_v45  ;;  %v4567_v45 = vld [vmem:[%s8531_s13 + $0x28] sm:$0xff] }
0x10ee   :  { %v5859_v1 = vpop.f32.mrb[54].mxu0 }
0x10ef   :  { %v4447_v31 = vadd.f32 %v5859_v1, %v5108_v46  ;;  %v4405_v23 = vpop.f32.mrb[55].mxu0  ;;  %v4566_v1 = vld [vmem:[%s8531_s13 + $0x20] sm:$0xff] }
0x10f0   :  { %v4446_v63 = vadd.f32 %v5108_v46, %v4405_v23 }
0x10f1   :  { %v8322_v53 = vadd.f32 %v4447_v31, %v7606_v62  ;;  %v4568_v31 = vld [vmem:[%s8531_s13 + $0x30] sm:$0xff] }
0x10f2   :  { %v8325_v22 = vadd.f32 %v4446_v63, %v7608_v30  ;;  %v6169_v23 = vpack.c.bf16 %v4568_v31, %v4566_v1  ;;  %v6674_v63 = vmov 0.0   ;;  %v4767_v1 = vld [vmem:[%s8533_s15 + $0x30] sm:$0xff]  ;;  %v4768_v31 = vld [vmem:[%s8533_s15 + $0x38] sm:$0xff] }
0x10f3   :  { %v5862_v60 = vpop.f32.mrb[56].mxu0  ;;  %v4461_v57 = vsel %vm208_vm0, %v8322_v53, 0.0  ;;  %4664 = vmatprep.mubr.f32.mxu1 %v6674_v63 }
0x10f4   :  { %v4449_v25 = vadd.f32 %v5862_v60, %v5108_v46  ;;  %v4415_v61 = vpop.f32.mrb[57].mxu0  ;;  %4462 = vadd.xlane.f32.xlu1 %v4461_v57  ;;  %v4458_v50 = vsel %vm208_vm0, %v8325_v22, 0.0 }
0x10f5   :  { %v4448_v6 = vadd.f32 %v5108_v46, %v4415_v61  ;;  %4459 = vadd.xlane.f32.xlu0 %v4458_v50 }
0x10f6   :  { %v8332_v35 = vadd.f32 %v4449_v25, %v7620_v15 }
0x10f7   :  { %v8335_v62 = vadd.f32 %v4448_v6, %v7622_v20  ;;  %v5865_v30 = vpop.f32.mrb[58].mxu0 }
0x10f8   :  { %v4451_v54 = vadd.f32 %v5865_v30, %v5108_v46  ;;  %v4425_v9 = vpop.f32.mrb[59].mxu0  ;;  %v4467_v10 = vsel %vm208_vm0, %v8332_v35, 0.0 }
0x10f9   :  { %v4450_v33 = vadd.f32 %v5108_v46, %v4425_v9  ;;  %4468 = vadd.xlane.f32.xlu1 %v4467_v10  ;;  %v4464_v13 = vsel %vm208_vm0, %v8335_v62, 0.0  ;;  %v6167_v46 = vpack.c.bf16 %v4569_v21, %v4567_v45  ;;  %v4765_v45 = vld [vmem:[%s8533_s15 + $0x20] sm:$0xff]  ;;  %v4766_v21 = vld [vmem:[%s8533_s15 + $0x28] sm:$0xff] }
0x10fa   :  { %v8342_v11 = vadd.f32 %v4451_v54, %v7632_v43  ;;  %4465 = vadd.xlane.f32.xlu0 %v4464_v13 }
0x10fb   :  { %v8345_v15 = vadd.f32 %v4450_v33, %v7636_v37  ;;  %6168 = vmatprep.subr.bf16.mxu1 %v6167_v46  ;;  %v6179_v46 = vpack.c.bf16 %v4766_v21, %v4765_v45 }
0x10fc   :  { %v4473_v20 = vsel %vm208_vm0, %v8342_v11, 0.0  ;;  %6170 = vmatpush1.bf16.msra.mxu1 %v6169_v23  ;;  %v6183_v23 = vpack.c.bf16 %v4768_v31, %v4767_v1 }
0x10fd   :  { %4474 = vadd.xlane.f32.xlu1 %v4473_v20  ;;  %v4470_v40 = vsel %vm208_vm0, %v8345_v15, 0.0 }
0x10fe   :  { %4471 = vadd.xlane.f32.xlu0 %v4470_v40 }
0x1181   :  { %v4463_v19 = vpop.xlane.xlu1 %4462 }
0x1182   :  { %v4477_v56 = vmul.f32 0.03125, %v4463_v19  ;;  %v4460_v38 = vpop.xlane.xlu0 %4459 }
0x1183   :  { %v4476_v48 = vmul.f32 0.03125, %v4460_v38 }
0x1184   :  { %v8352_v5 = vsub.f32 %v8322_v53, %v4477_v56 }
0x1185   :  { %v8355_v43 = vsub.f32 %v8325_v22, %v4476_v48 }
0x1186   :  { %v4469_v37 = vpop.xlane.xlu1 %4468  ;;  %v4489_v49 = vmul.f32 %v8352_v5, %v8352_v5 }
0x1187   :  { %v4479_v52 = vmul.f32 0.03125, %v4469_v37  ;;  %v4466_v34 = vpop.xlane.xlu0 %4465  ;;  %v4488_v44 = vmul.f32 %v8355_v43, %v8355_v43 }
0x1188   :  { %v4478_v36 = vmul.f32 0.03125, %v4466_v34  ;;  %v4497_v27 = vsel %vm208_vm0, %v4489_v49, 0.0  ;;  %v5109_v49 = vld [vmem:[%s8529_s11] ss:$0 sm:$0xff] }
0x1189   :  { %v8363_v42 = vsub.f32 %v8332_v35, %v4479_v52  ;;  %4498 = vadd.xlane.f32.xlu1 %v4497_v27  ;;  %v4494_v29 = vsel %vm208_vm0, %v4488_v44, 0.0 }
0x118a   :  { %v8367_v39 = vsub.f32 %v8335_v62, %v4478_v36  ;;  %v4475_v7 = vpop.xlane.xlu1 %4474  ;;  %4495 = vadd.xlane.f32.xlu0 %v4494_v29  ;;  %v5110_v36 = vld [vmem:[%s8530_s12] ss:$0 sm:$0xff] }
0x118b   :  { %v4481_v14 = vmul.f32 0.03125, %v4475_v7  ;;  %v4472_v26 = vpop.xlane.xlu0 %4471  ;;  %v4491_v4 = vmul.f32 %v8363_v42, %v8363_v42 }
0x118c   :  { %v4480_v55 = vmul.f32 0.03125, %v4472_v26  ;;  %v4490_v18 = vmul.f32 %v8367_v39, %v8367_v39 }
0x118d   :  { %v8374_v58 = vsub.f32 %v8342_v11, %v4481_v14  ;;  %v4503_v59 = vsel %vm208_vm0, %v4491_v4, 0.0 }
0x118e   :  { %v8378_v8 = vsub.f32 %v8345_v15, %v4480_v55  ;;  %4504 = vadd.xlane.f32.xlu1 %v4503_v59  ;;  %v4500_v3 = vsel %vm208_vm0, %v4490_v18, 0.0 }
0x118f   :  { %4501 = vadd.xlane.f32.xlu0 %v4500_v3  ;;  %v4493_v28 = vmul.f32 %v8374_v58, %v8374_v58 }
0x1190   :  { %v4492_v17 = vmul.f32 %v8378_v8, %v8378_v8 }
0x1191   :  { %v4509_v51 = vsel %vm208_vm0, %v4493_v28, 0.0 }
0x1192   :  { %4510 = vadd.xlane.f32.xlu1 %v4509_v51  ;;  %v4506_v47 = vsel %vm208_vm0, %v4492_v17, 0.0 }
0x1193   :  { %4507 = vadd.xlane.f32.xlu0 %v4506_v47 }
0x1216   :  { %v4499_v60 = vpop.xlane.xlu1 %4498 }
0x1217   :  { %v4513_v57 = vmul.f32 0.03125, %v4499_v60  ;;  %v4496_v25 = vpop.xlane.xlu0 %4495  ;;  %v4770_v60 = vld [vmem:[%s8533_s15 + $0x48] sm:$0xff] }
0x1218   :  { %v4512_v61 = vmul.f32 0.03125, %v4496_v25  ;;  %v4771_v25 = vld [vmem:[%s8533_s15 + $0x50] sm:$0xff] }
0x1219   :  { %v4519_v50 = vadd.f32 1e-05, %v4513_v57 }
0x121a   :  { %v4518_v6 = vadd.f32 1e-05, %v4512_v61  ;;  %v4772_v61 = vld [vmem:[%s8533_s15 + $0x58] sm:$0xff] }
0x121b   :  { %6594 = vrsqrt.f32 %v4519_v50  ;;  %v4505_v30 = vpop.xlane.xlu1 %4504  ;;  %v6191_v50 = vpack.c.bf16 %v4772_v61, %v4771_v25 }
0x121c   :  { %6596 = vrsqrt.f32 %v4518_v6  ;;  %v4515_v54 = vmul.f32 0.03125, %v4505_v30  ;;  %v4502_v9 = vpop.xlane.xlu0 %4501  ;;  %v4773_v6 = vld [vmem:[%s8533_s15 + $0x60] sm:$0xff]  ;;  %v4774_v30 = vld [vmem:[%s8533_s15 + $0x68] sm:$0xff] }
0x121d   :  { %v4514_v10 = vmul.f32 0.03125, %v4502_v9  ;;  %v4775_v9 = vld [vmem:[%s8533_s15 + $0x70] sm:$0xff] }
0x121e   :  { %v4521_v33 = vadd.f32 1e-05, %v4515_v54  ;;  %v6195_v54 = vpack.c.bf16 %v4774_v30, %v4773_v6 }
0x121f   :  { %v4520_v13 = vadd.f32 1e-05, %v4514_v10  ;;  %v4511_v20 = vpop.xlane.xlu1 %4510  ;;  %v4776_v10 = vld [vmem:[%s8533_s15 + $0x78] sm:$0xff] }
0x1220   :  { %v4508_v40 = vpop.xlane.xlu0 %4507  ;;  %v4517_v56 = vmul.f32 0.03125, %v4511_v20  ;;  %v4570_v20 = vld [vmem:[%s8532_s14] sm:$0x3] }
0x1221   :  { %6598 = vrsqrt.f32 %v4520_v13  ;;  %v4516_v19 = vmul.f32 0.03125, %v4508_v40  ;;  %v4578_v13 = vsub.s32 1, %v7052_v0 }
0x1222   :  { %6600 = vrsqrt.f32 %v4521_v33  ;;  %v4523_v52 = vadd.f32 1e-05, %v4517_v56  ;;  %v6199_v33 = vpack.c.bf16 %v4776_v10, %v4775_v9 }
0x1223   :  { %v4522_v38 = vadd.f32 1e-05, %v4516_v19  ;;  %v4579_v40 = vrot.slane %v4570_v20, %v4578_v13 }
0x1225   :  { %v6595_v48 = vpop.eup %6594  ;;  %6602 = vrsqrt.f32 %v4522_v38 }
0x1226   :  { %v6597_v37 = vpop.eup %6596  ;;  %v4531_v44 = vmul.f32 %v6595_v48, %v8352_v5  ;;  %6604 = vrsqrt.f32 %v4523_v52 }
0x1227   :  { %v4530_v34 = vmul.f32 %v6597_v37, %v8355_v43 }
0x1228   :  { %v4544_v14 = vmul.f32 %v5109_v49, %v4531_v44 }
0x1229   :  { %v4543_v27 = vmul.f32 %v5109_v49, %v4530_v34 }
0x122a   :  { %v4557_v55 = vadd.f32 %v5110_v36, %v4544_v14 }
0x122b   :  { %v6599_v29 = vpop.eup %6598  ;;  %v4556_v7 = vadd.f32 %v5110_v36, %v4543_v27 }
0x122c   :  { %v6601_v26 = vpop.eup %6600  ;;  %v4532_v4 = vmul.f32 %v6599_v29, %v8367_v39 }
0x122d   :  { %5111 = vmatmul.mubr.msk.f32.vlgmr.msra.gmra.mrb[48].mxu1 %vm208_vm0, %v4556_v7  ;;  %v4533_v43 = vmul.f32 %v6601_v26, %v8363_v42 }
0x122e   :  { %4670 = vmatprep.mubr.f32.mxu1 %v6674_v63  ;;  %v4545_v18 = vmul.f32 %v5109_v49, %v4532_v4 }
0x122f   :  { %v6603_v5 = vpop.eup %6602  ;;  %v4546_v3 = vmul.f32 %v5109_v49, %v4533_v43 }
0x1230   :  { %v4558_v59 = vadd.f32 %v5110_v36, %v4545_v18  ;;  %v4534_v28 = vmul.f32 %v6603_v5, %v8378_v8  ;;  %v6605_v17 = vpop.eup %6604  ;;  %v4761_v8 = vld [vmem:[%s8533_s15] sm:$0xff] }
0x1231   :  { %5112 = vmatmul.mubr.msk.f32.gmra.mrb[50].mxu1 %vm208_vm0, %v4557_v55  ;;  %v4559_v39 = vadd.f32 %v5110_v36, %v4546_v3  ;;  %v4535_v47 = vmul.f32 %v6605_v17, %v8374_v58  ;;  %v6171_v58 = vpack.c.bf16 %v4762_v2, %v4761_v8 }
0x1232   :  { %4676 = vmatprep.mubr.f32.mxu1 %v6674_v63  ;;  %v4547_v51 = vmul.f32 %v5109_v49, %v4534_v28 }
0x1233   :  { %v4548_v16 = vmul.f32 %v5109_v49, %v4535_v47  ;;  %6172 = vmatprep.subr.bf16.mxu1 %v6171_v58 }
0x1234   :  { %v4560_v42 = vadd.f32 %v5110_v36, %v4547_v51  ;;  %6174 = vmatpush3.bf16.msra.mxu1 %v6171_v58 }
0x1235   :  { %5113 = vmatmul.mubr.msk.f32.gmra.mrb[52].mxu1 %vm208_vm0, %v4558_v59  ;;  %v4561_v41 = vadd.f32 %v5110_v36, %v4548_v16  ;;  %6176 = vmatprep.subr.bf16.mxu1 %v6175_v32 }
0x1236   :  { %4682 = vmatprep.mubr.f32.mxu1 %v6674_v63 }
0x1238   :  { %6178 = vmatpush3.bf16.msra.mxu1 %v6175_v32  ;;  %v4574_v32 = vsub.s32 0, %v7052_v0 }
0x1239   :  { %5114 = vmatmul.mubr.msk.f32.gmra.mrb[54].mxu1 %vm208_vm0, %v4559_v39  ;;  %6180 = vmatprep.subr.bf16.mxu1 %v6179_v46 }
0x123a   :  { %4688 = vmatprep.mubr.f32.mxu1 %v6674_v63 }
0x123c   :  { %6182 = vmatpush3.bf16.msra.mxu1 %v6179_v46 }
0x123d   :  { %5115 = vmatmul.mubr.msk.f32.gmra.mrb[56].mxu1 %vm208_vm0, %v4560_v42  ;;  %6184 = vmatprep.subr.bf16.mxu1 %v6183_v23 }
0x123e   :  { %4694 = vmatprep.mubr.f32.mxu1 %v6674_v63  ;;  %v4769_v63 = vld [vmem:[%s8533_s15 + $0x40] sm:$0xff] }
0x123f   :  { %v6187_v57 = vpack.c.bf16 %v4770_v60, %v4769_v63 }
0x1240   :  { %6186 = vmatpush3.bf16.msra.mxu1 %v6183_v23 }
0x1241   :  { %5116 = vmatmul.mubr.msk.f32.gmra.mrb[58].mxu1 %vm208_vm0, %v4561_v41  ;;  %6188 = vmatprep.subr.bf16.mxu1 %v6187_v57 }
0x1244   :  { %6190 = vmatpush3.bf16.msra.mxu1 %v6187_v57  ;;  %v4575_v57 = vrot.slane %v4570_v20, %v4574_v32 }
0x1245   :  { %6192 = vmatprep.subr.bf16.mxu1 %v6191_v50 }
0x1248   :  { %6194 = vmatpush3.bf16.msra.mxu1 %v6191_v50 }
0x1249   :  { %6196 = vmatprep.subr.bf16.mxu1 %v6195_v54 }
0x124c   :  { %6198 = vmatpush3.bf16.msra.mxu1 %v6195_v54 }
0x124d   :  { %6200 = vmatprep.subr.bf16.mxu1 %v6199_v33 }
0x1250   :  { %6202 = vmatpush3.bf16.msra.mxu1 %v6199_v33 }
0x1300   :  { %v4666_v19 = vpop.f32.mrb[48].mxu1 }
0x1301   :  { %v4668_v56 = vpop.f32.mrb[49].mxu1  ;;  %v4667_v10 = vadd.f32 %v4666_v19, %v4575_v57 }
0x1302   :  { %v4669_v38 = vadd.f32 %v4668_v56, %v4579_v40 }
0x1304   :  { %v4701_v48 = vmul.f32 %v4669_v38, %v4669_v38  ;;  %v4672_v37 = vpop.f32.mrb[50].mxu1 }
0x1305   :  { %v4674_v49 = vpop.f32.mrb[51].mxu1 }
0x1306   :  { %v4707_v52 = vmul.f32 %v4701_v48, %v4669_v38  ;;  %v4675_v34 = vadd.f32 %v4674_v49, %v4579_v40 }
0x1308   :  { %v4713_v44 = vmul.f32 0.044715, %v4707_v52  ;;  %v4702_v36 = vmul.f32 %v4675_v34, %v4675_v34  ;;  %v8481_v27 = vpop.f32.mrb[52].mxu1  ;;  %v4673_v52 = vadd.f32 %v4672_v37, %v4575_v57 }
0x1309   :  { %v4680_v29 = vpop.f32.mrb[53].mxu1 }
0x130a   :  { %v4719_v7 = vadd.f32 %v4713_v44, %v4669_v38  ;;  %v4708_v14 = vmul.f32 %v4702_v36, %v4675_v34  ;;  %v4681_v26 = vadd.f32 %v4680_v29, %v4579_v40 }
0x130c   :  { %v4725_v4 = vmul.f32 0.7978846, %v4719_v7  ;;  %v4714_v55 = vmul.f32 0.044715, %v4708_v14  ;;  %v4703_v18 = vmul.f32 %v4681_v26, %v4681_v26  ;;  %v4684_v43 = vpop.f32.mrb[54].mxu1  ;;  %v4679_v14 = vadd.f32 %v8481_v27, %v4575_v57 }
0x130d   :  { %v4686_v5 = vpop.f32.mrb[55].mxu1 }
0x130e   :  { %6606 = vtanh.f32 %v4725_v4  ;;  %v4720_v59 = vadd.f32 %v4714_v55, %v4675_v34  ;;  %v4709_v3 = vmul.f32 %v4703_v18, %v4681_v26  ;;  %v4687_v28 = vadd.f32 %v4686_v5, %v4579_v40 }
0x130f   :  { %v4685_v5 = vadd.f32 %v4684_v43, %v4575_v57  ;;  %v5117_v43 = vld [vmem:[%s8534_s16] ss:$0 sm:$0xff] }
0x1310   :  { %v4726_v17 = vmul.f32 0.7978846, %v4720_v59  ;;  %v4715_v39 = vmul.f32 0.044715, %v4709_v3  ;;  %v4704_v51 = vmul.f32 %v4687_v28, %v4687_v28  ;;  %v4690_v47 = vpop.f32.mrb[56].mxu1 }
0x1311   :  { %v4692_v42 = vpop.f32.mrb[57].mxu1 }
0x1312   :  { %6608 = vtanh.f32 %v4726_v17  ;;  %v4721_v16 = vadd.f32 %v4715_v39, %v4681_v26  ;;  %v4710_v41 = vmul.f32 %v4704_v51, %v4687_v28  ;;  %v4693_v8 = vadd.f32 %v4692_v42, %v4579_v40 }
0x1313   :  { %v4691_v39 = vadd.f32 %v4690_v47, %v4575_v57 }
0x1314   :  { %v4727_v2 = vmul.f32 0.7978846, %v4721_v16  ;;  %v4716_v58 = vmul.f32 0.044715, %v4710_v41  ;;  %v4705_v24 = vmul.f32 %v4693_v8, %v4693_v8  ;;  %v4696_v12 = vpop.f32.mrb[58].mxu1 }
0x1315   :  { %v4698_v45 = vpop.f32.mrb[59].mxu1  ;;  %v4697_v27 = vadd.f32 %v4696_v12, %v4575_v57 }
0x1316   :  { %6610 = vtanh.f32 %v4727_v2  ;;  %v4722_v21 = vadd.f32 %v4716_v58, %v4687_v28  ;;  %v4711_v46 = vmul.f32 %v4705_v24, %v4693_v8  ;;  %v4699_v1 = vadd.f32 %v4698_v45, %v4579_v40 }
0x1318   :  { %v6607_v31 = vpop.eup %6606  ;;  %v4728_v23 = vmul.f32 0.7978846, %v4722_v21  ;;  %v4717_v63 = vmul.f32 0.044715, %v4711_v46  ;;  %v4706_v60 = vmul.f32 %v4699_v1, %v4699_v1 }
0x1319   :  { %v4737_v25 = vadd.f32 1.0, %v6607_v31 }
0x131a   :  { %6612 = vtanh.f32 %v4728_v23  ;;  %v4723_v61 = vadd.f32 %v4717_v63, %v4693_v8  ;;  %v4712_v50 = vmul.f32 %v4706_v60, %v4699_v1 }
0x131b   :  { %v4743_v6 = vmul.f32 0.5, %v4737_v25 }
0x131c   :  { %v6609_v30 = vpop.eup %6608  ;;  %v4729_v54 = vmul.f32 0.7978846, %v4723_v61  ;;  %v4718_v9 = vmul.f32 0.044715, %v4712_v50 }
0x131d   :  { %v4738_v0 = vadd.f32 1.0, %v6609_v30  ;;  %v4749_v33 = vmul.f32 %v4743_v6, %v4669_v38 }
0x131e   :  { %6614 = vtanh.f32 %v4729_v54  ;;  %v4724_v13 = vadd.f32 %v4718_v9, %v4699_v1 }
0x131f   :  { %v4744_v56 = vmul.f32 0.5, %v4738_v0  ;;  %v4755_v40 = vmul.f32 %v4749_v33, %v4667_v10 }
0x1320   :  { %v6611_v48 = vpop.eup %6610  ;;  %v4730_v49 = vmul.f32 0.7978846, %v4724_v13 }
0x1321   :  { %v4750_v44 = vmul.f32 %v4744_v56, %v4675_v34  ;;  %5898 = vmatprep.mubr.f32.mxu1 %v4755_v40  ;;  %v4739_v20 = vadd.f32 1.0, %v6611_v48 }
0x1322   :  { %6616 = vtanh.f32 %v4730_v49 }
0x1323   :  { %v4756_v36 = vmul.f32 %v4750_v44, %v4673_v52  ;;  %v4745_v29 = vmul.f32 0.5, %v4739_v20 }
0x1324   :  { %v6613_v7 = vpop.eup %6612 }
0x1325   :  { %5899 = vmatmul.mubr.f32.vlgmr.msra.gmra.mrb[60].mxu1 %v4756_v36  ;;  %v4751_v19 = vmul.f32 %v4745_v29, %v4681_v26  ;;  %v4740_v4 = vadd.f32 1.0, %v6613_v7 }
0x1327   :  { %v4757_v38 = vmul.f32 %v4751_v19, %v4679_v14  ;;  %v4746_v55 = vmul.f32 0.5, %v4740_v4 }
0x1328   :  { %v6615_v18 = vpop.eup %6614 }
0x1329   :  { %5901 = vmatprep.mubr.f32.mxu1 %v4757_v38  ;;  %v4752_v59 = vmul.f32 %v4746_v55, %v4687_v28  ;;  %v4741_v3 = vadd.f32 1.0, %v6615_v18 }
0x132b   :  { %v4758_v37 = vmul.f32 %v4752_v59, %v4685_v5  ;;  %v4747_v34 = vmul.f32 0.5, %v4741_v3 }
0x132c   :  { %v6617_v17 = vpop.eup %6616 }
0x132d   :  { %5902 = vmatmul.mubr.f32.gmra.mrb[62].mxu1 %v4758_v37  ;;  %v4753_v51 = vmul.f32 %v4747_v34, %v4693_v8  ;;  %v4742_v42 = vadd.f32 1.0, %v6617_v17 }
0x132f   :  { %v4759_v16 = vmul.f32 %v4753_v51, %v4691_v39  ;;  %v4748_v41 = vmul.f32 0.5, %v4742_v42 }
0x1331   :  { %5904 = vmatprep.mubr.f32.mxu1 %v4759_v16  ;;  %v4754_v26 = vmul.f32 %v4748_v41, %v4699_v1 }
0x1333   :  { %v4760_v2 = vmul.f32 %v4754_v26, %v4697_v27 }
0x1335   :  { %5905 = vmatmul.mubr.f32.gmra.mrb[64].mxu1 %v4760_v2 }
0x13f8   :  { %v5900_v28 = vpop.f32.mrb[60].mxu1 }
0x13f9   :  { %v4856_v58 = vadd.f32 %v5900_v28, %v5117_v43  ;;  %v4850_v24 = vpop.f32.mrb[61].mxu1 }
0x13fa   :  { %v4851_v32 = vadd.f32 %v5117_v43, %v4850_v24 }
0x13fb   :  { %v4880_v47 = vadd.f32 %v4856_v58, %v8322_v53 }
0x13fc   :  { %v4879_v8 = vadd.f32 %v4851_v32, %v8325_v22 }
0x13fd   :  { %4886 = vst.msk [vmem:[%s8535_s17 + $0x8] sm:$0xff] %vm208_vm0, %v4880_v47 }
0x13fe   :  { %4885 = vst.msk [vmem:[%s8535_s17] sm:$0xff] %vm208_vm0, %v4879_v8 }
0x1400   :  { %v5903_v12 = vpop.f32.mrb[62].mxu1 }
0x1401   :  { %v4866_v45 = vadd.f32 %v5903_v12, %v5117_v43  ;;  %v4860_v21 = vpop.f32.mrb[63].mxu1 }
0x1402   :  { %v4861_v46 = vadd.f32 %v5117_v43, %v4860_v21 }
0x1403   :  { %v4882_v1 = vadd.f32 %v4866_v45, %v8332_v35 }
0x1404   :  { %v4881_v53 = vadd.f32 %v4861_v46, %v8335_v62 }
0x1405   :  { %4888 = vst.msk [vmem:[%s8535_s17 + $0x18] sm:$0xff] %vm208_vm0, %v4882_v1 }
0x1406   :  { %4887 = vst.msk [vmem:[%s8535_s17 + $0x10] sm:$0xff] %vm208_vm0, %v4881_v53 }
0x1408   :  { %v5906_v22 = vpop.f32.mrb[64].mxu1 }
0x1409   :  { %v4876_v31 = vadd.f32 %v5906_v22, %v5117_v43  ;;  %v4870_v23 = vpop.f32.mrb[65].mxu1 }
0x140a   :  { %v4871_v63 = vadd.f32 %v5117_v43, %v4870_v23 }
0x140b   :  { %v4884_v60 = vadd.f32 %v4876_v31, %v8342_v11 }
0x140c   :  { %v4883_v35 = vadd.f32 %v4871_v63, %v8345_v15 }
0x140d   :  { %4890 = vst.msk [vmem:[%s8535_s17 + $0x28] sm:$0xff] %vm208_vm0, %v4884_v60 }
0x140e   :  { %4889 = vst.msk [vmem:[%s8535_s17 + $0x20] sm:$0xff] %vm208_vm0, %v4883_v35 }
0x140f   :  { %4895 = vsyncpa [#allocation3], 1 }
0x1410   :  { %4896 = vsyncpa [#allocation5], 1 }

</bundles_post_ra>
